<compile_context>
chip_gen: v7x
topology: tpu7x:2x2x1
jax: 0.10.0
libtpu: 0.0.40
codegen_flags: <defaults>
</compile_context>

<pallas_src>
import jax
import jax.numpy as jnp
from jax.experimental import pallas as pl
from jax.experimental.pallas import tpu as pltpu

FEAT = 2048   # regression head is nn.Linear(2048, 1)
_LANE = 128


# ----------------------------------------------------------------------------
# Kernel
# ----------------------------------------------------------------------------
def piaa_kernel(x_ref, wc_ref, wgr_ref, bc_ref, wr_ref, bias_ref,
                out_ref, acc_c_ref, acc_g_ref):
    """Fused PIAA forward, grid = (feature_blocks, K_tiles), K innermost.

    x_ref   : [B, tk]        f32   flattened-image tile
    wc_ref  : [tk, fb]       bf16  Contrast-encoder weight tile
    wgr_ref : [1, tk]        f32   folded GIAA weights (wg @ wr)^T tile
    bc_ref  : [1, fb]        f32   Contrast-encoder bias block
    wr_ref  : [1, fb]        f32   regression weights block (lane-major row)
    bias_ref: [1, 1]         f32   bg @ wr + br  (folded scalar bias)
    out_ref : [B, 1]         f32   pre-sigmoid partial score for this f block
    acc_c   : [B, fb]        f32   VMEM accumulator for the contrast features
    acc_g   : [B, 1]         f32   VMEM accumulator for the folded GIAA path
    """
    f = pl.program_id(0)
    k = pl.program_id(1)

    @pl.when(k == 0)
    def _init():
        acc_c_ref[...] = jnp.zeros_like(acc_c_ref)
        acc_g_ref[...] = jnp.zeros_like(acc_g_ref)

    x = x_ref[...]                                             # [B, tk] f32

    # Contrast_feature partial product: bf16 MXU matmul, f32 accumulation.
    acc_c_ref[...] += jnp.dot(x.astype(jnp.bfloat16), wc_ref[...],
                              preferred_element_type=jnp.float32)

    # Folded GIAA path: x @ (wg @ wr) as a VPU multiply + XLU lane reduce.
    # Only computed on feature block 0 so it is added exactly once.
    @pl.when(f == 0)
    def _giaa():
        acc_g_ref[...] += jnp.sum(x * wgr_ref[...], axis=-1, keepdims=True)

    @pl.when(k == pl.num_programs(1) - 1)
    def _finalize():
        # tanh(Contrast) then the regression weights for this feature block.
        piaa = jnp.tanh(acc_c_ref[...] + bc_ref[...])                 # [B, fb]
        partial = jnp.sum(piaa * wr_ref[...], axis=-1, keepdims=True)  # [B, 1]
        once = acc_g_ref[...] + bias_ref[...]                          # [B, 1]
        out_ref[...] = partial + jnp.where(f == 0, once,
                                           jnp.zeros_like(once))


# ----------------------------------------------------------------------------
# One-time model preparation + jitted forward
# ----------------------------------------------------------------------------
def _round_up(n, m):
    return ((n + m - 1) // m) * m


def _num_feature_blocks():
    """2 feature blocks on a 2-TensorCore v7x chip (parallel axis uses both
    cores); 1 on single-core v5e/v6e."""
    try:
        kind = jax.devices()[0].device_kind.lower()
    except Exception:
        return 1
    return 2 if "v7" in kind else 1


def _pick_tk(d_pad):
    """Largest K tile (preferring 2048) that divides the padded Din."""
    for tk in (2048, 1024, 512, 256, 128):
        if d_pad % tk == 0:
            return tk
    return _LANE  # unreachable: d_pad is always a multiple of 128


def _vmem_limit_bytes(batch, tk, f_block):
    need = (2 * tk * f_block * 2          # double-buffered bf16 wc tiles
            + 2 * batch * tk * 4          # double-buffered x tiles
            + 2 * tk * 4                  # double-buffered folded-GIAA tiles
            + 2 * 2 * f_block * 4         # bc / wr rows (buffered)
            + batch * f_block * 4         # contrast accumulator
            + batch * 4                   # GIAA accumulator
            + (1 << 20))                  # slack (out, bias, internal scratch)
    # generous headroom; stay below v7x's 64 MiB physical VMEM per core
    return int(min(max(need * 3 // 2, 32 << 20), 56 << 20))


def build_piaa_forward(params, n_f=None):
    """Call ONCE at model-load time.

    Folds the (linear) GIAA branch through the regression head, casts the
    dominant Contrast weight stream to bf16, zero-pads the contraction axis to
    a lane multiple, fixes the tiling, and returns a jitted `forward(x_nchw)`
    that does no per-call weight preprocessing.
    """
    wg, bg, wc, bc, wr, br = params
    d_in, feat = wc.shape
    assert feat == FEAT and wg.shape == (d_in, feat)

    hi = jax.lax.Precision.HIGHEST
    wgr_row = jnp.dot(wg, wr, precision=hi).reshape(1, d_in)       # [1, Din]
    bias = (jnp.dot(bg, wr, precision=hi) + br).reshape(1, 1)      # [1, 1]

    d_pad = _round_up(d_in, _LANE)
    pad = d_pad - d_in
    wc_bf = jnp.pad(wc, ((0, pad), (0, 0))).astype(jnp.bfloat16)   # [Dp, F]
    wgr_row = jnp.pad(wgr_row, ((0, 0), (0, pad))).astype(jnp.float32)
    bc_row = bc.reshape(1, feat).astype(jnp.float32)               # [1, F]
    wr_row = wr.reshape(1, feat).astype(jnp.float32)               # [1, F]
    bias = bias.astype(jnp.float32)

    if n_f is None:
        n_f = _num_feature_blocks()
    f_block = feat // n_f
    tk = _pick_tk(d_pad)
    n_k = d_pad // tk

    def _forward(x_nchw, wc_bf, wgr_row, bc_row, wr_row, bias):
        batch = x_nchw.shape[0]
        x = x_nchw.reshape(batch, -1).astype(jnp.float32)  # torch .view(B, -1)
        if pad:
            x = jnp.pad(x, ((0, 0), (0, pad)))             # exact: zeros

        grid_spec = pltpu.PrefetchScalarGridSpec(
            num_scalar_prefetch=0,
            grid=(n_f, n_k),                               # K innermost
            in_specs=[
                pl.BlockSpec((batch, tk), lambda f, k: (0, k)),     # x tile
                pl.BlockSpec((tk, f_block), lambda f, k: (k, f)),   # wc tile
                pl.BlockSpec((1, tk), lambda f, k: (0, k)),         # wgr tile
                pl.BlockSpec((1, f_block), lambda f, k: (0, f)),    # bc block
                pl.BlockSpec((1, f_block), lambda f, k: (0, f)),    # wr block
                pl.BlockSpec((1, 1), lambda f, k: (0, 0)),          # bias
            ],
            out_specs=pl.BlockSpec((None, batch, 1), lambda f, k: (f, 0, 0)),
            scratch_shapes=[
                pltpu.VMEM((batch, f_block), jnp.float32),  # contrast acc
                pltpu.VMEM((batch, 1), jnp.float32),        # folded GIAA acc
            ],
        )

        partials = pl.pallas_call(
            piaa_kernel,
            out_shape=jax.ShapeDtypeStruct((n_f, batch, 1), jnp.float32),
            grid_spec=grid_spec,
            compiler_params=pltpu.CompilerParams(
                dimension_semantics=("parallel", "arbitrary"),
                vmem_limit_bytes=_vmem_limit_bytes(batch, tk, f_block)),
        )(x, wc_bf, wgr_row, bc_row, wr_row, bias)

        # Tiny combine of per-feature-block pre-sigmoid partials + sigmoid.
        return jax.nn.sigmoid(jnp.sum(partials, axis=0))

    run = jax.jit(_forward)

    def forward(x_nchw):
        return run(x_nchw, wc_bf, wgr_row, bc_row, wr_row, bias)

    return forward


# ----------------------------------------------------------------------------
# Synthetic parameters & references
# ----------------------------------------------------------------------------
def make_params(key, d_in, feat=FEAT):
    """Deterministic synthetic parameters (no checkpoint loading)."""
    k = jax.random.split(key, 6)
    scale = 0.02
    wg = scale * jax.random.normal(k[0], (d_in, feat), jnp.float32)
    bg = scale * jax.random.normal(k[1], (1, feat), jnp.float32)
    wc = scale * jax.random.normal(k[2], (d_in, feat), jnp.float32)
    bc = scale * jax.random.normal(k[3], (1, feat), jnp.float32)
    wr = scale * jax.random.normal(k[4], (feat, 1), jnp.float32)
    br = scale * jax.random.normal(k[5], (1, 1), jnp.float32)
    return wg, bg, wc, bc, wr, br


def piaa_reference(x_nchw, params):
    """Pure-JAX f32 reference of the original PyTorch forward."""
    batch = x_nchw.shape[0]
    x = x_nchw.reshape(batch, -1).astype(jnp.float32)
    wg, bg, wc, bc, wr, br = params
    hi = jax.lax.Precision.HIGHEST
    giaa = jnp.dot(x, wg, precision=hi) + bg
    contrast = jnp.dot(x, wc, precision=hi) + bc
    piaa = jnp.tanh(contrast) + giaa
    return jax.nn.sigmoid(jnp.dot(piaa, wr, precision=hi) + br)


def piaa_reference_kernel_numerics(x_nchw, params):
    """Pure-JAX model of exactly the math the kernel does (bf16 contrast
    weights, folded GIAA branch) — tight-tolerance check of kernel logic."""
    batch = x_nchw.shape[0]
    x = x_nchw.reshape(batch, -1).astype(jnp.float32)
    wg, bg, wc, bc, wr, br = params
    hi = jax.lax.Precision.HIGHEST
    wgr = jnp.dot(wg, wr, precision=hi).reshape(1, -1)
    bias = (jnp.dot(bg, wr, precision=hi) + br).reshape(1, 1)
    contrast = jnp.dot(x.astype(jnp.bfloat16), wc.astype(jnp.bfloat16),
                       preferred_element_type=jnp.float32) + bc.reshape(1, -1)
    piaa = jnp.tanh(contrast)
    score = jnp.sum(piaa * wr.reshape(1, -1), axis=-1, keepdims=True)
    score = score + jnp.sum(x * wgr, axis=-1, keepdims=True) + bias
    return jax.nn.sigmoid(score)


# ----------------------------------------------------------------------------
# Main
# ----------------------------------------------------------------------------
if __name__ == "__main__":
    key = jax.random.PRNGKey(0)
    kx, kp = jax.random.split(key)

    # Small input consistent with the module: NCHW image batch.
    B, C, H, W = 2, 4, 16, 16
    x = jax.random.normal(kx, (B, C, H, W), jnp.float32)

    d_in = C * H * W            # 1024 flattened input features
    params = make_params(kp, d_in, feat=FEAT)

    # One-time model preparation (weight folding / bf16 cast / padding) — this
    # is deliberately OUTSIDE the per-inference path.
    forward = build_piaa_forward(params)

    out = jax.block_until_ready(forward(x))
    assert out.shape == (B, 1)

    # Tight check against the same numerics the kernel uses.
    ref_tight = piaa_reference_kernel_numerics(x, params)
    assert jnp.allclose(out, ref_tight, atol=1e-4, rtol=1e-4), (out, ref_tight)

    # Looser check against the original full-f32 forward (bf16 weight stream
    # introduces a small, bounded deviation).
    ref_full = piaa_reference(x, params)
    assert jnp.allclose(out, ref_full, atol=1e-2, rtol=1e-2), (out, ref_full)

    print("KERNEL_OK")
</pallas_src>

<mosaic_0001>
module attributes {stable_mosaic.version = 11 : i64} {
  func.func @piaa_kernel(%arg0: i32, %arg1: i32, %arg2: memref<2x1024xf32, #tpu.memory_space<vmem>>, %arg3: memref<1024x2048xbf16, #tpu.memory_space<vmem>>, %arg4: memref<1x1024xf32, #tpu.memory_space<vmem>>, %arg5: memref<1x2048xf32, #tpu.memory_space<vmem>>, %arg6: memref<1x2048xf32, #tpu.memory_space<vmem>>, %arg7: memref<1x1xf32, #tpu.memory_space<vmem>>, %arg8: memref<1x2x1xf32, #tpu.memory_space<vmem>>, %arg9: memref<2x2048xf32, #tpu.memory_space<vmem>>, %arg10: memref<2x1xf32, #tpu.memory_space<vmem>>) attributes {dimension_semantics = [#tpu.dimension_semantics<parallel>, #tpu.dimension_semantics<arbitrary>], iteration_bounds = array<i64: 1, 1>, scalar_prefetch = 0 : i64, scratch_operands = 2 : i64, tpu.core_type = #tpu.core_type<tc>, window_params = [{transform_indices = @transform_0, window_bounds = array<i64: 2, 1024>}, {transform_indices = @transform_1, window_bounds = array<i64: 1024, 2048>}, {transform_indices = @transform_2, window_bounds = array<i64: 1, 1024>}, {transform_indices = @transform_3, window_bounds = array<i64: 1, 2048>}, {transform_indices = @transform_4, window_bounds = array<i64: 1, 2048>}, {pipeline_mode = #tpu.pipeline_mode<synchronous>, transform_indices = @transform_5, window_bounds = array<i64: 1, 1>}, {transform_indices = @transform_6, window_bounds = array<i64: 1, 2, 1>}]} {
    %c0_i32 = arith.constant 0 : i32
    %0 = arith.cmpi eq, %arg1, %c0_i32 : i32
    %1 = arith.extui %0 : i1 to i32
    %c0_i32_0 = arith.constant 0 : i32
    %2 = arith.cmpi ne, %1, %c0_i32_0 : i32
    scf.if %2 {
      %cst_12 = arith.constant 0.000000e+00 : f32
      %16 = vector.broadcast %cst_12 : f32 to vector<2x2048xf32>
      %c0_13 = arith.constant 0 : index
      %c0_14 = arith.constant 0 : index
      %17 = vector.load %arg9[%c0_13, %c0_14] : memref<2x2048xf32, #tpu.memory_space<vmem>>, vector<2x2048xf32>
      tpu.vector_store %arg9[%c0_13, %c0_14], %16 {strides = array<i32>} : memref<2x2048xf32, #tpu.memory_space<vmem>>, vector<2x2048xf32>,
      %cst_15 = arith.constant 0.000000e+00 : f32
      %18 = vector.broadcast %cst_15 : f32 to vector<2x1xf32>
      %c0_16 = arith.constant 0 : index
      %c0_17 = arith.constant 0 : index
      %19 = vector.load %arg10[%c0_16, %c0_17] : memref<2x1xf32, #tpu.memory_space<vmem>>, vector<2x1xf32>
      tpu.vector_store %arg10[%c0_16, %c0_17], %18 {strides = array<i32>} : memref<2x1xf32, #tpu.memory_space<vmem>>, vector<2x1xf32>,
    } else {
    }
    %c0 = arith.constant 0 : index
    %c0_1 = arith.constant 0 : index
    %3 = vector.load %arg2[%c0, %c0_1] : memref<2x1024xf32, #tpu.memory_space<vmem>>, vector<2x1024xf32>
    %c0_2 = arith.constant 0 : index
    %c0_3 = arith.constant 0 : index
    %4 = vector.load %arg9[%c0_2, %c0_3] : memref<2x2048xf32, #tpu.memory_space<vmem>>, vector<2x2048xf32>
    %5 = arith.truncf %3 : vector<2x1024xf32> to vector<2x1024xbf16>
    %c0_4 = arith.constant 0 : index
    %c0_5 = arith.constant 0 : index
    %6 = vector.load %arg3[%c0_4, %c0_5] : memref<1024x2048xbf16, #tpu.memory_space<vmem>>, vector<1024x2048xbf16>
    %cst = arith.constant dense<0.000000e+00> : vector<2x2048xf32>
    %7 = tpu.matmul %5, %6, %cst {dimension_numbers = #tpu.dot_dimension_numbers<[1], [0], [0], [1], [0, 0, 1, 1], [], []>} : vector<2x1024xbf16>, vector<1024x2048xbf16>, vector<2x2048xf32> -> vector<2x2048xf32>
    %8 = arith.addf %4, %7 : vector<2x2048xf32>
    %c0_6 = arith.constant 0 : index
    %c0_7 = arith.constant 0 : index
    %9 = vector.load %arg9[%c0_6, %c0_7] : memref<2x2048xf32, #tpu.memory_space<vmem>>, vector<2x2048xf32>
    tpu.vector_store %arg9[%c0_6, %c0_7], %8 {strides = array<i32>} : memref<2x2048xf32, #tpu.memory_space<vmem>>, vector<2x2048xf32>,
    %c0_i32_8 = arith.constant 0 : i32
    %10 = arith.cmpi eq, %arg0, %c0_i32_8 : i32
    %11 = arith.extui %10 : i1 to i32
    %c0_i32_9 = arith.constant 0 : i32
    %12 = arith.cmpi ne, %11, %c0_i32_9 : i32
    scf.if %12 {
      %c0_12 = arith.constant 0 : index
      %c0_13 = arith.constant 0 : index
      %16 = vector.load %arg10[%c0_12, %c0_13] : memref<2x1xf32, #tpu.memory_space<vmem>>, vector<2x1xf32>
      %c0_14 = arith.constant 0 : index
      %c0_15 = arith.constant 0 : index
      %17 = vector.load %arg4[%c0_14, %c0_15] : memref<1x1024xf32, #tpu.memory_space<vmem>>, vector<1x1024xf32>
      %18 = vector.broadcast %17 : vector<1x1024xf32> to vector<2x1024xf32>
      %19 = arith.mulf %3, %18 : vector<2x1024xf32>
      %cst_16 = arith.constant dense<0.000000e+00> : vector<2xf32>
      %20 = vector.multi_reduction <add>, %19, %cst_16 [1] : vector<2x1024xf32> to vector<2xf32>
      %21 = vector.shape_cast %20 : vector<2xf32> to vector<2x1xf32>
      %22 = arith.addf %16, %21 : vector<2x1xf32>
      %c0_17 = arith.constant 0 : index
      %c0_18 = arith.constant 0 : index
      %23 = vector.load %arg10[%c0_17, %c0_18] : memref<2x1xf32, #tpu.memory_space<vmem>>, vector<2x1xf32>
      tpu.vector_store %arg10[%c0_17, %c0_18], %22 {strides = array<i32>} : memref<2x1xf32, #tpu.memory_space<vmem>>, vector<2x1xf32>,
    } else {
    }
    %c0_i32_10 = arith.constant 0 : i32
    %13 = arith.cmpi eq, %arg1, %c0_i32_10 : i32
    %14 = arith.extui %13 : i1 to i32
    %c0_i32_11 = arith.constant 0 : i32
    %15 = arith.cmpi ne, %14, %c0_i32_11 : i32
    scf.if %15 {
      %c0_12 = arith.constant 0 : index
      %c0_13 = arith.constant 0 : index
      %16 = vector.load %arg9[%c0_12, %c0_13] : memref<2x2048xf32, #tpu.memory_space<vmem>>, vector<2x2048xf32>
      %c0_14 = arith.constant 0 : index
      %c0_15 = arith.constant 0 : index
      %17 = vector.load %arg5[%c0_14, %c0_15] : memref<1x2048xf32, #tpu.memory_space<vmem>>, vector<1x2048xf32>
      %18 = vector.broadcast %17 : vector<1x2048xf32> to vector<2x2048xf32>
      %19 = arith.addf %16, %18 : vector<2x2048xf32>
      %20 = math.tanh %19 : vector<2x2048xf32>
      %c0_16 = arith.constant 0 : index
      %c0_17 = arith.constant 0 : index
      %21 = vector.load %arg6[%c0_16, %c0_17] : memref<1x2048xf32, #tpu.memory_space<vmem>>, vector<1x2048xf32>
      %22 = vector.broadcast %21 : vector<1x2048xf32> to vector<2x2048xf32>
      %23 = arith.mulf %20, %22 : vector<2x2048xf32>
      %cst_18 = arith.constant dense<0.000000e+00> : vector<2xf32>
      %24 = vector.multi_reduction <add>, %23, %cst_18 [1] : vector<2x2048xf32> to vector<2xf32>
      %25 = vector.shape_cast %24 : vector<2xf32> to vector<2x1xf32>
      %c0_19 = arith.constant 0 : index
      %c0_20 = arith.constant 0 : index
      %26 = vector.load %arg10[%c0_19, %c0_20] : memref<2x1xf32, #tpu.memory_space<vmem>>, vector<2x1xf32>
      %c0_21 = arith.constant 0 : index
      %c0_22 = arith.constant 0 : index
      %27 = vector.load %arg7[%c0_21, %c0_22] : memref<1x1xf32, #tpu.memory_space<vmem>>, vector<1x1xf32>
      %28 = vector.broadcast %27 : vector<1x1xf32> to vector<2x1xf32>
      %29 = arith.addf %26, %28 : vector<2x1xf32>
      %c0_i32_23 = arith.constant 0 : i32
      %30 = arith.cmpi eq, %arg0, %c0_i32_23 : i32
      %cst_24 = arith.constant 0.000000e+00 : f32
      %31 = vector.broadcast %cst_24 : f32 to vector<2x1xf32>
      %32 = arith.select %30, %29, %31 : vector<2x1xf32>
      %33 = arith.addf %25, %32 : vector<2x1xf32>
      %c0_25 = arith.constant 0 : index
      %c0_26 = arith.constant 0 : index
      %c0_27 = arith.constant 0 : index
      %34 = vector.load %arg8[%c0_25, %c0_26, %c0_27] : memref<1x2x1xf32, #tpu.memory_space<vmem>>, vector<1x2x1xf32>
      %35 = vector.shape_cast %34 : vector<1x2x1xf32> to vector<2x1xf32>
      %36 = vector.shape_cast %33 : vector<2x1xf32> to vector<1x2x1xf32>
      tpu.vector_store %arg8[%c0_25, %c0_26, %c0_27], %36 {strides = array<i32>} : memref<1x2x1xf32, #tpu.memory_space<vmem>>, vector<1x2x1xf32>,
    } else {
    }
    return
  }
  func.func @transform_0(%arg0: i32, %arg1: i32) -> (i32, i32) {
    %c0_i32 = arith.constant 0 : i32
    %c0_i32_0 = arith.constant 0 : i32
    return %c0_i32, %arg1 : i32, i32
  }
  func.func @transform_1(%arg0: i32, %arg1: i32) -> (i32, i32) {
    %c0_i32 = arith.constant 0 : i32
    return %arg1, %arg0 : i32, i32
  }
  func.func @transform_2(%arg0: i32, %arg1: i32) -> (i32, i32) {
    %c0_i32 = arith.constant 0 : i32
    %c0_i32_0 = arith.constant 0 : i32
    return %c0_i32, %arg1 : i32, i32
  }
  func.func @transform_3(%arg0: i32, %arg1: i32) -> (i32, i32) {
    %c0_i32 = arith.constant 0 : i32
    %c0_i32_0 = arith.constant 0 : i32
    return %c0_i32, %arg0 : i32, i32
  }
  func.func @transform_4(%arg0: i32, %arg1: i32) -> (i32, i32) {
    %c0_i32 = arith.constant 0 : i32
    %c0_i32_0 = arith.constant 0 : i32
    return %c0_i32, %arg0 : i32, i32
  }
  func.func @transform_5(%arg0: i32, %arg1: i32) -> (i32, i32) {
    %c0_i32 = arith.constant 0 : i32
    %c0_i32_0 = arith.constant 0 : i32
    %c0_i32_1 = arith.constant 0 : i32
    return %c0_i32, %c0_i32_0 : i32, i32
  }
  func.func @transform_6(%arg0: i32, %arg1: i32) -> (i32, i32, i32) {
    %c0_i32 = arith.constant 0 : i32
    %c0_i32_0 = arith.constant 0 : i32
    %c0_i32_1 = arith.constant 0 : i32
    return %arg0, %c0_i32, %c0_i32_0 : i32, i32, i32
  }
}

</mosaic_0001>

<bundles_post_ra>
// kernel: _forward.1
= control target key start
LH: loop header
LB: loop body
LE: loop exit
PB: predicated region body
PF: predicated region fallthrough
CT: control target
= control target key end

     0   :  { %s9945_s0 = inlined_call_operand.vmem [shape: f32[2,1024], index: 0, kind: input, shape index: {}]   ;;  %s9946_s1 = inlined_call_operand.hbm [shape: bf16[1024,2048], index: 1, kind: input, shape index: {}]   ;;  %s9947_s2 = inlined_call_operand.hbm [shape: f32[1,1024], index: 2, kind: input, shape index: {}]   ;;  %s9948_s3 = inlined_call_operand.hbm [shape: f32[1,2048], index: 3, kind: input, shape index: {}]   ;;  %s9949_s4 = inlined_call_operand.hbm [shape: f32[1,2048], index: 4, kind: input, shape index: {}]   ;;  %s9950_s5 = inlined_call_operand.<no memory space> [shape: f32[1,1], index: 5, kind: input, shape index: {}]   ;;  %s9951_s6 = inlined_call_operand.vmem [shape: f32[1,2,1], index: 6, kind: output, shape index: {}]  }
   0x1   :  { %v11_v0 = vstv %s9950_s5 }
   0x2   :  { %12 = vst [vmem:[#allocation4] sm:$0x1] %v11_v0 }
   0x3   :  { %13 = vsyncpa [#allocation6], 0 }
   0x4   :  { %14 = vsyncpa [#allocation8], 0 }
   0x5   :  { %15 = vsyncpa [#allocation11], 0  ;;  %s9515_s23 = smov [#allocation7]   ;;  %s9516_s25 = smov [#allocation5]  }
   0x6   :  { %s36_s24 = sshll.u32 %s9515_s23, 4  ;;  %s23_s26 = sshll.u32 %s9516_s25, 4  ;;  %s37_s24 = int_to_ptr.vmem [resolvable:$true] %s36_s24  ;;  %s9561_s26 = int_to_ptr.vmem [resolvable:$true] %s23_s26 }
   0x7   :  { %s9421_s29 = scalar_lea.hbm %s9947_s2, 128 }
   0x8   :  { %p9422_p0 = scmp.ne.s32.totalorder %s9947_s2, %s9421_s29  ;;  %p9425_p1 = scmp.lt.u32.totalorder %s9421_s29, %s9947_s2 }
   0xa   :  { %p9427_p2 = pnand %p9425_p1, %p9422_p0 }
   0xc   :  { %9430 = shalt.err (!%p9427_p2)
}
   0xd   :  { %s9431_s9 = scalar_lea.vmem %s37_s24, 128  ;;  %p9436_p4 = scmp.lt.s32.totalorder %s37_s24, %s37_s24 }
   0xe   :  { %p9432_p3 = scmp.ne.s32.totalorder %s37_s24, %s9431_s9  ;;  %p9437_p5 = scmp.lt.s32.totalorder %s9431_s9, %s9431_s9 }
  0x10   :  { %p9438_p6 = por %p9437_p5, %p9436_p4 }
  0x12   :  { %p9439_p7 = pnand %p9438_p6, %p9432_p3 }
  0x14   :  { %9442 = shalt.err (!%p9439_p7)
}
  0x15   :  { %39 = dma.hbm_to_vmem [thread:$0]  %s9947_s2, 128, %s37_s24, [#allocation8]  }
  0x16   :  { %s9443_s14 = scalar_lea.hbm %s9946_s1, 131072 }
  0x17   :  { %p9444_p8 = scmp.ne.s32.totalorder %s9946_s1, %s9443_s14  ;;  %p9447_p9 = scmp.lt.u32.totalorder %s9443_s14, %s9946_s1 }
  0x19   :  { %p9449_p10 = pnand %p9447_p9, %p9444_p8 }
  0x1b   :  { %9452 = shalt.err (!%p9449_p10)
}
  0x1c   :  { %s9453_s19 = scalar_lea.vmem %s9561_s26, 131072  ;;  %p9458_p12 = scmp.lt.s32.totalorder %s9561_s26, %s9561_s26 }
  0x1d   :  { %p9454_p11 = scmp.ne.s32.totalorder %s9561_s26, %s9453_s19  ;;  %p9459_p13 = scmp.lt.s32.totalorder %s9453_s19, %s9453_s19 }
  0x1f   :  { %p9460_p0 = por %p9459_p13, %p9458_p12 }
  0x21   :  { %p9461_p1 = pnand %p9460_p0, %p9454_p11 }
  0x23   :  { %9464 = shalt.err (!%p9461_p1)
}
  0x24   :  { %s9517_s2 = smov 1024   ;;  %s9518_s20 = smov 64  }
  0x25   :  { %29 = dma.hbm_to_vmem [thread:$0]  %s9946_s1, 131072, %s9561_s26, [#allocation6], %s9517_s2, %s9517_s2, %s9518_s20  }
  0x26   :  { %s9519_s23 = smov [#allocation9]   ;;  %s9520_s25 = smov [#allocation10]  }
  0x27   :  { %s46_s24 = sshll.u32 %s9519_s23, 4  ;;  %s56_s27 = sshll.u32 %s9520_s25, 4  ;;  %s47_s24 = int_to_ptr.vmem [resolvable:$true] %s46_s24  ;;  %s57_s27 = int_to_ptr.vmem [resolvable:$true] %s56_s27 }
  0x28   :  { %s9465_s30 = scalar_lea.hbm %s9948_s3, 256 }
  0x29   :  { %p9466_p2 = scmp.ne.s32.totalorder %s9948_s3, %s9465_s30  ;;  %p9469_p3 = scmp.lt.u32.totalorder %s9465_s30, %s9948_s3 }
  0x2b   :  { %p9471_p4 = pnand %p9469_p3, %p9466_p2 }
  0x2d   :  { %9474 = shalt.err (!%p9471_p4)
}
  0x2e   :  { %s9475_s1 = scalar_lea.vmem %s47_s24, 256  ;;  %p9480_p6 = scmp.lt.s32.totalorder %s47_s24, %s47_s24 }
  0x2f   :  { %p9476_p5 = scmp.ne.s32.totalorder %s47_s24, %s9475_s1  ;;  %p9481_p7 = scmp.lt.s32.totalorder %s9475_s1, %s9475_s1 }
  0x31   :  { %p9482_p8 = por %p9481_p7, %p9480_p6 }
  0x33   :  { %p9483_p9 = pnand %p9482_p8, %p9476_p5 }
  0x35   :  { %9486 = shalt.err (!%p9483_p9)
}
  0x36   :  { %49 = dma.hbm_to_vmem [thread:$0]  %s9948_s3, 256, %s47_s24, [#allocation8]  }
  0x37   :  { %s9487_s13 = scalar_lea.hbm %s9949_s4, 256 }
  0x38   :  { %p9488_p10 = scmp.ne.s32.totalorder %s9949_s4, %s9487_s13  ;;  %p9491_p11 = scmp.lt.u32.totalorder %s9487_s13, %s9949_s4 }
  0x3a   :  { %p9493_p12 = pnand %p9491_p11, %p9488_p10 }
  0x3c   :  { %9496 = shalt.err (!%p9493_p12)
}
  0x3d   :  { %s9497_s18 = scalar_lea.vmem %s57_s27, 256  ;;  %p9502_p0 = scmp.lt.s32.totalorder %s57_s27, %s57_s27 }
  0x3e   :  { %p9498_p13 = scmp.ne.s32.totalorder %s57_s27, %s9497_s18  ;;  %p9503_p1 = scmp.lt.s32.totalorder %s9497_s18, %s9497_s18 }
  0x40   :  { %p9504_p2 = por %p9503_p1, %p9502_p0 }
  0x42   :  { %p9505_p3 = pnand %p9504_p2, %p9498_p13 }
  0x44   :  { %9508 = shalt.err (!%p9505_p3)
}
  0x45   :  { %59 = dma.hbm_to_vmem [thread:$0]  %s9949_s4, 256, %s57_s27, [#allocation11]  }
  0x46   :  { %9509 = dma.done.wait [#allocation6], 131072  }
  0x47   :  { %9510 = vsyncadd [#allocation6], 4294836224 }
  0x48   :  { %9511 = dma.done.wait [#allocation8], 384  }
  0x49   :  { %9512 = vsyncadd [#allocation8], 4294966912 }
  0x4a   :  { %9513 = dma.done.wait [#allocation11], 256  }
  0x4b   :  { %9514 = vsyncadd [#allocation11], 4294967040  ;;  %v142_v1 = vld [vmem:[#allocation5] sm:$0xff]  ;;  %v143_v3 = vld [vmem:[#allocation5 + $0x8] sm:$0xff]  ;;  %v9521_v33 = vmov 1983009808   ;;  %v96_v35 = vlaneseq }
  0x4c   :  { %v150_v2 = vld [vmem:[#allocation5 + $0x40] sm:$0xff]  ;;  %v151_v5 = vld [vmem:[#allocation5 + $0x48] sm:$0xff]  ;;  %v94_v34 = vunpack.c.l.s4 %v9521_v33  ;;  %vm7815_vm0 = vcmask 1041408   ;;  %vm82_vm1 = vcmask 1024  }
  0x4d   :  { %v8281_v4 = vcombine.high %v142_v1, %v150_v2  ;;  %v8280_v6 = vcombine.low %v142_v1, %v150_v2  ;;  %v158_v7 = vld [vmem:[#allocation5 + $0x80] sm:$0xff]  ;;  %v8283_v9 = vcombine.high %v143_v3, %v151_v5  ;;  %v8282_v10 = vcombine.low %v143_v3, %v151_v5  ;;  %v159_v12 = vld [vmem:[#allocation5 + $0x88] sm:$0xff] }
  0x4e   :  { %v166_v8 = vld [vmem:[#allocation5 + $0xc0] sm:$0xff]  ;;  %v167_v13 = vld [vmem:[#allocation5 + $0xc8] sm:$0xff]  ;;  %v95_v44 = vunpack.c.0.s8 %v94_v34  ;;  %v9616_v45 = vshrl.u32 %v96_v35, 7 }
  0x4f   :  { %v8297_v11 = vcombine.high %v158_v7, %v166_v8  ;;  %v174_v14 = vld [vmem:[#allocation5 + $0x100] sm:$0xff]  ;;  %6286 = vmatprep.subr.bf16.mxu0 %v8281_v4  ;;  %v8299_v15 = vcombine.high %v159_v12, %v167_v13  ;;  %v175_v17 = vld [vmem:[#allocation5 + $0x108] sm:$0xff]  ;;  %6450 = vmatprep.subr.bf16.mxu1 %v8283_v9  ;;  %v8296_v19 = vcombine.low %v158_v7, %v166_v8 }
  0x50   :  { %v182_v16 = vld [vmem:[#allocation5 + $0x140] sm:$0xff]  ;;  %v183_v18 = vld [vmem:[#allocation5 + $0x148] sm:$0xff]  ;;  %6287 = vmatpush1.bf16.msra.mxu0 %v8280_v6  ;;  %6451 = vmatpush1.bf16.msra.mxu1 %v8282_v10  ;;  %v8298_v20 = vcombine.low %v159_v12, %v167_v13  ;;  %v9619_v54 = vsub.s32 %v95_v44, %v9616_v45 }
  0x51   :  { %6288 = vmatprep.subr.bf16.mxu0 %v8297_v11  ;;  %v8313_v21 = vcombine.high %v174_v14, %v182_v16  ;;  %6452 = vmatprep.subr.bf16.mxu1 %v8299_v15  ;;  %v8315_v22 = vcombine.high %v175_v17, %v183_v18  ;;  %v190_v23 = vld [vmem:[#allocation5 + $0x180] sm:$0xff]  ;;  %v191_v25 = vld [vmem:[#allocation5 + $0x188] sm:$0xff]  ;;  %v8312_v27 = vcombine.low %v174_v14, %v182_v16 }
  0x52   :  { %v198_v24 = vld [vmem:[#allocation5 + $0x1c0] sm:$0xff]  ;;  %v199_v26 = vld [vmem:[#allocation5 + $0x1c8] sm:$0xff]  ;;  %v8314_v28 = vcombine.low %v175_v17, %v183_v18 }
  0x53   :  { %v8329_v29 = vcombine.high %v190_v23, %v198_v24  ;;  %v8331_v30 = vcombine.high %v191_v25, %v199_v26  ;;  %v206_v31 = vld [vmem:[#allocation5 + $0x200] sm:$0xff]  ;;  %v207_v36 = vld [vmem:[#allocation5 + $0x208] sm:$0xff]  ;;  %v8328_v38 = vcombine.low %v190_v23, %v198_v24  ;;  %v8330_v39 = vcombine.low %v191_v25, %v199_v26 }
  0x54   :  { %6289 = vmatpush1.bf16.msra.mxu0 %v8296_v19  ;;  %6453 = vmatpush1.bf16.msra.mxu1 %v8298_v20  ;;  %v214_v32 = vld [vmem:[#allocation5 + $0x240] sm:$0xff]  ;;  %v215_v37 = vld [vmem:[#allocation5 + $0x248] sm:$0xff] }
  0x55   :  { %6290 = vmatprep.subr.bf16.mxu0 %v8313_v21  ;;  %6454 = vmatprep.subr.bf16.mxu1 %v8315_v22  ;;  %v8345_v40 = vcombine.high %v206_v31, %v214_v32  ;;  %v8347_v41 = vcombine.high %v207_v36, %v215_v37  ;;  %v222_v42 = vld [vmem:[#allocation5 + $0x280] sm:$0xff]  ;;  %v223_v46 = vld [vmem:[#allocation5 + $0x288] sm:$0xff]  ;;  %v8344_v48 = vcombine.low %v206_v31, %v214_v32 }
  0x56   :  { %v230_v43 = vld [vmem:[#allocation5 + $0x2c0] sm:$0xff]  ;;  %v231_v47 = vld [vmem:[#allocation5 + $0x2c8] sm:$0xff]  ;;  %v8346_v49 = vcombine.low %v207_v36, %v215_v37 }
  0x57   :  { %v8361_v50 = vcombine.high %v222_v42, %v230_v43  ;;  %v8363_v51 = vcombine.high %v223_v46, %v231_v47  ;;  %v238_v52 = vld [vmem:[#allocation5 + $0x300] sm:$0xff]  ;;  %v239_v55 = vld [vmem:[#allocation5 + $0x308] sm:$0xff]  ;;  %v8360_v57 = vcombine.low %v222_v42, %v230_v43  ;;  %v8362_v58 = vcombine.low %v223_v46, %v231_v47 }
  0x58   :  { %6291 = vmatpush1.bf16.msra.mxu0 %v8312_v27  ;;  %6455 = vmatpush1.bf16.msra.mxu1 %v8314_v28  ;;  %v246_v53 = vld [vmem:[#allocation5 + $0x340] sm:$0xff]  ;;  %v247_v56 = vld [vmem:[#allocation5 + $0x348] sm:$0xff] }
  0x59   :  { %6292 = vmatprep.subr.bf16.mxu0 %v8329_v29  ;;  %6456 = vmatprep.subr.bf16.mxu1 %v8331_v30  ;;  %v8377_v59 = vcombine.high %v238_v52, %v246_v53  ;;  %v9624_v60 = vld [vmem:[%s9945_s0] sm:$0xff]  ;;  %v8379_v61 = vcombine.high %v239_v55, %v247_v56  ;;  %v255_v1 = vld [vmem:[#allocation5 + $0x388] sm:$0xff]  ;;  %v8376_v3 = vcombine.low %v238_v52, %v246_v53 }
  0x5a   :  { %v254_v62 = vld [vmem:[#allocation5 + $0x380] sm:$0xff]  ;;  %v9628_v0 = vrot.slane %v9624_v60, %v9619_v54  ;;  %v263_v2 = vld [vmem:[#allocation5 + $0x3c8] sm:$0xff]  ;;  %v8378_v5 = vcombine.low %v239_v55, %v247_v56 }
  0x5b   :  { %v262_v63 = vld [vmem:[#allocation5 + $0x3c0] sm:$0xff]  ;;  %v8395_v7 = vcombine.high %v255_v1, %v263_v2  ;;  %v271_v11 = vld [vmem:[#allocation5 + $0x408] sm:$0xff]  ;;  %v8394_v14 = vcombine.low %v255_v1, %v263_v2 }
  0x5c   :  { %6293 = vmatpush1.bf16.msra.mxu0 %v8328_v38  ;;  %6457 = vmatpush1.bf16.msra.mxu1 %v8330_v39  ;;  %v107_v4 = vcombine.high %v9628_v0, %v9628_v0  ;;  %v8393_v6 = vcombine.high %v254_v62, %v262_v63  ;;  %v270_v8 = vld [vmem:[#allocation5 + $0x400] sm:$0xff]  ;;  %v279_v12 = vld [vmem:[#allocation5 + $0x448] sm:$0xff]  ;;  %v8392_v13 = vcombine.low %v254_v62, %v262_v63 }
  0x5d   :  { %6294 = vmatprep.subr.bf16.mxu0 %v8345_v40  ;;  %6458 = vmatprep.subr.bf16.mxu1 %v8347_v41  ;;  %v278_v9 = vld [vmem:[#allocation5 + $0x440] sm:$0xff]  ;;  %v8411_v16 = vcombine.high %v271_v11, %v279_v12  ;;  %v287_v19 = vld [vmem:[#allocation5 + $0x488] sm:$0xff]  ;;  %v8410_v22 = vcombine.low %v271_v11, %v279_v12 }
  0x5e   :  { %v9632_v10 = vpack.c.bf16 %v107_v4, %v107_v4  ;;  %v8409_v15 = vcombine.high %v270_v8, %v278_v9  ;;  %v286_v17 = vld [vmem:[#allocation5 + $0x480] sm:$0xff]  ;;  %v295_v20 = vld [vmem:[#allocation5 + $0x4c8] sm:$0xff]  ;;  %v8408_v21 = vcombine.low %v270_v8, %v278_v9 }
  0x5f   :  { %v294_v18 = vld [vmem:[#allocation5 + $0x4c0] sm:$0xff]  ;;  %v8427_v24 = vcombine.high %v287_v19, %v295_v20  ;;  %v303_v27 = vld [vmem:[#allocation5 + $0x508] sm:$0xff]  ;;  %v8426_v30 = vcombine.low %v287_v19, %v295_v20 }
  0x60   :  { %6295 = vmatpush1.bf16.msra.mxu0 %v8344_v48  ;;  %6459 = vmatpush1.bf16.msra.mxu1 %v8346_v49  ;;  %v8425_v23 = vcombine.high %v286_v17, %v294_v18  ;;  %v302_v25 = vld [vmem:[#allocation5 + $0x500] sm:$0xff]  ;;  %v311_v28 = vld [vmem:[#allocation5 + $0x548] sm:$0xff]  ;;  %v8424_v29 = vcombine.low %v286_v17, %v294_v18 }
  0x61   :  { %6296 = vmatprep.subr.bf16.mxu0 %v8361_v50  ;;  %6460 = vmatprep.subr.bf16.mxu1 %v8363_v51  ;;  %v310_v26 = vld [vmem:[#allocation5 + $0x540] sm:$0xff]  ;;  %v8443_v32 = vcombine.high %v303_v27, %v311_v28  ;;  %v319_v35 = vld [vmem:[#allocation5 + $0x588] sm:$0xff]  ;;  %v8442_v38 = vcombine.low %v303_v27, %v311_v28 }
  0x62   :  { %6318 = vmatprep.mubr.bf16.mxu0 %v9632_v10  ;;  %6482 = vmatprep.mubr.bf16.mxu1 %v9632_v10  ;;  %v8441_v31 = vcombine.high %v302_v25, %v310_v26  ;;  %v318_v33 = vld [vmem:[#allocation5 + $0x580] sm:$0xff]  ;;  %v327_v36 = vld [vmem:[#allocation5 + $0x5c8] sm:$0xff]  ;;  %v8440_v37 = vcombine.low %v302_v25, %v310_v26  ;;  %v9645_v26 = vpack.c.bf16 %v9628_v0, %v9628_v0 }
  0x63   :  { %v326_v34 = vld [vmem:[#allocation5 + $0x5c0] sm:$0xff]  ;;  %v8459_v40 = vcombine.high %v319_v35, %v327_v36  ;;  %v335_v43 = vld [vmem:[#allocation5 + $0x608] sm:$0xff]  ;;  %v8458_v47 = vcombine.low %v319_v35, %v327_v36 }
  0x64   :  { %6297 = vmatpush1.bf16.msra.mxu0 %v8360_v57  ;;  %6461 = vmatpush1.bf16.msra.mxu1 %v8362_v58  ;;  %v8457_v39 = vcombine.high %v318_v33, %v326_v34  ;;  %v334_v41 = vld [vmem:[#allocation5 + $0x600] sm:$0xff]  ;;  %v343_v44 = vld [vmem:[#allocation5 + $0x648] sm:$0xff]  ;;  %v8456_v46 = vcombine.low %v318_v33, %v326_v34 }
  0x65   :  { %6298 = vmatprep.subr.bf16.mxu0 %v8377_v59  ;;  %6462 = vmatprep.subr.bf16.mxu1 %v8379_v61  ;;  %v342_v42 = vld [vmem:[#allocation5 + $0x640] sm:$0xff]  ;;  %v8475_v49 = vcombine.high %v335_v43, %v343_v44  ;;  %v351_v52 = vld [vmem:[#allocation5 + $0x688] sm:$0xff]  ;;  %v8474_v56 = vcombine.low %v335_v43, %v343_v44 }
  0x66   :  { %v8473_v48 = vcombine.high %v334_v41, %v342_v42  ;;  %v350_v50 = vld [vmem:[#allocation5 + $0x680] sm:$0xff]  ;;  %v359_v53 = vld [vmem:[#allocation5 + $0x6c8] sm:$0xff]  ;;  %v8472_v55 = vcombine.low %v334_v41, %v342_v42 }
  0x67   :  { %v358_v51 = vld [vmem:[#allocation5 + $0x6c0] sm:$0xff]  ;;  %v8491_v58 = vcombine.high %v351_v52, %v359_v53  ;;  %v367_v62 = vld [vmem:[#allocation5 + $0x708] sm:$0xff]  ;;  %v8490_v2 = vcombine.low %v351_v52, %v359_v53 }
  0x68   :  { %6299 = vmatpush1.bf16.msra.mxu0 %v8376_v3  ;;  %6463 = vmatpush1.bf16.msra.mxu1 %v8378_v5  ;;  %v8489_v57 = vcombine.high %v350_v50, %v358_v51  ;;  %v366_v59 = vld [vmem:[#allocation5 + $0x700] sm:$0xff]  ;;  %v375_v63 = vld [vmem:[#allocation5 + $0x748] sm:$0xff]  ;;  %v8488_v1 = vcombine.low %v350_v50, %v358_v51 }
  0x69   :  { %6300 = vmatprep.subr.bf16.mxu0 %v8393_v6  ;;  %6464 = vmatprep.subr.bf16.mxu1 %v8395_v7  ;;  %v374_v61 = vld [vmem:[#allocation5 + $0x740] sm:$0xff]  ;;  %v8507_v4 = vcombine.high %v367_v62, %v375_v63  ;;  %v92_v7 = vcombine.high %v9624_v60, %v9624_v60  ;;  %v383_v8 = vld [vmem:[#allocation5 + $0x788] sm:$0xff]  ;;  %v8506_v12 = vcombine.low %v367_v62, %v375_v63 }
  0x6a   :  { %v8505_v3 = vcombine.high %v366_v59, %v374_v61  ;;  %v382_v5 = vld [vmem:[#allocation5 + $0x780] sm:$0xff]  ;;  %v391_v9 = vld [vmem:[#allocation5 + $0x7c8] sm:$0xff]  ;;  %v8504_v11 = vcombine.low %v366_v59, %v374_v61 }
  0x6b   :  { %v390_v6 = vld [vmem:[#allocation5 + $0x7c0] sm:$0xff]  ;;  %v9639_v17 = vrot.slane %v92_v7, %v9619_v54  ;;  %v399_v18 = vld [vmem:[#allocation5 + $0x808] sm:$0xff]  ;;  %v8522_v60 = vcombine.low %v383_v8, %v391_v9 }
  0x6c   :  { %6301 = vmatpush1.bf16.msra.mxu0 %v8392_v13  ;;  %6465 = vmatpush1.bf16.msra.mxu1 %v8394_v14  ;;  %v8521_v13 = vcombine.high %v382_v5, %v390_v6  ;;  %v8523_v14 = vcombine.high %v383_v8, %v391_v9  ;;  %v407_v19 = vld [vmem:[#allocation5 + $0x848] sm:$0xff]  ;;  %v8520_v20 = vcombine.low %v382_v5, %v390_v6  ;;  %v430_v33 = vld [vmem:[#allocation5 + $0x900] sm:$0xff] }
  0x6d   :  { %6302 = vmatprep.subr.bf16.mxu0 %v8409_v15  ;;  %6466 = vmatprep.subr.bf16.mxu1 %v8411_v16  ;;  %v398_v15 = vld [vmem:[#allocation5 + $0x800] sm:$0xff]  ;;  %v108_v25 = vcombine.high %v9639_v17, %v9639_v17  ;;  %v415_v27 = vld [vmem:[#allocation5 + $0x888] sm:$0xff] }
  0x6e   :  { %v406_v16 = vld [vmem:[#allocation5 + $0x840] sm:$0xff]  ;;  %v423_v28 = vld [vmem:[#allocation5 + $0x8c8] sm:$0xff] }
  0x6f   :  { %v438_v34 = vld [vmem:[#allocation5 + $0x940] sm:$0xff]  ;;  %v9647_v35 = vpack.c.bf16 %v108_v25, %v108_v25  ;;  %v431_v36 = vld [vmem:[#allocation5 + $0x908] sm:$0xff] }
  0x70   :  { %6303 = vmatpush1.bf16.msra.mxu0 %v8408_v21  ;;  %6467 = vmatpush1.bf16.msra.mxu1 %v8410_v22  ;;  %v8537_v21 = vcombine.high %v398_v15, %v406_v16  ;;  %v8539_v22 = vcombine.high %v399_v18, %v407_v19  ;;  %v446_v41 = vld [vmem:[#allocation5 + $0x980] sm:$0xff]  ;;  %v447_v43 = vld [vmem:[#allocation5 + $0x988] sm:$0xff] }
  0x71   :  { %6304 = vmatprep.subr.bf16.mxu0 %v8425_v23  ;;  %6468 = vmatprep.subr.bf16.mxu1 %v8427_v24  ;;  %v414_v23 = vld [vmem:[#allocation5 + $0x880] sm:$0xff]  ;;  %v455_v44 = vld [vmem:[#allocation5 + $0x9c8] sm:$0xff] }
  0x72   :  { %v422_v24 = vld [vmem:[#allocation5 + $0x8c0] sm:$0xff]  ;;  %v463_v52 = vld [vmem:[#allocation5 + $0xa08] sm:$0xff] }
  0x73   :  { %v8552_v0 = vcombine.low %v414_v23, %v422_v24  ;;  %v454_v42 = vld [vmem:[#allocation5 + $0x9c0] sm:$0xff]  ;;  %v471_v53 = vld [vmem:[#allocation5 + $0xa48] sm:$0xff] }
  0x74   :  { %6305 = vmatpush1.bf16.msra.mxu0 %v8424_v29  ;;  %6469 = vmatpush1.bf16.msra.mxu1 %v8426_v30  ;;  %v8536_v29 = vcombine.low %v398_v15, %v406_v16  ;;  %v8538_v30 = vcombine.low %v399_v18, %v407_v19  ;;  %v462_v50 = vld [vmem:[#allocation5 + $0xa00] sm:$0xff]  ;;  %v479_v62 = vld [vmem:[#allocation5 + $0xa88] sm:$0xff] }
  0x75   :  { %6306 = vmatprep.subr.bf16.mxu0 %v8441_v31  ;;  %6470 = vmatprep.subr.bf16.mxu1 %v8443_v32  ;;  %v8553_v31 = vcombine.high %v414_v23, %v422_v24  ;;  %v8555_v32 = vcombine.high %v415_v27, %v423_v28  ;;  %v470_v51 = vld [vmem:[#allocation5 + $0xa40] sm:$0xff]  ;;  %v487_v63 = vld [vmem:[#allocation5 + $0xac8] sm:$0xff] }
  0x76   :  { %v478_v59 = vld [vmem:[#allocation5 + $0xa80] sm:$0xff]  ;;  %v495_v7 = vld [vmem:[#allocation5 + $0xb08] sm:$0xff] }
  0x77   :  { %v486_v61 = vld [vmem:[#allocation5 + $0xac0] sm:$0xff]  ;;  %v503_v8 = vld [vmem:[#allocation5 + $0xb48] sm:$0xff] }
  0x78   :  { %6307 = vmatpush1.bf16.msra.mxu0 %v8440_v37  ;;  %6471 = vmatpush1.bf16.msra.mxu1 %v8442_v38  ;;  %v439_v37 = vld [vmem:[#allocation5 + $0x948] sm:$0xff]  ;;  %v8554_v38 = vcombine.low %v415_v27, %v423_v28  ;;  %v494_v5 = vld [vmem:[#allocation5 + $0xb00] sm:$0xff]  ;;  %v8616_v9 = vcombine.low %v478_v59, %v486_v61 }
  0x79   :  { %6308 = vmatprep.subr.bf16.mxu0 %v8457_v39  ;;  %6472 = vmatprep.subr.bf16.mxu1 %v8459_v40  ;;  %v8569_v39 = vcombine.high %v430_v33, %v438_v34  ;;  %v8571_v40 = vcombine.high %v431_v36, %v439_v37  ;;  %v502_v6 = vld [vmem:[#allocation5 + $0xb40] sm:$0xff]  ;;  %v511_v16 = vld [vmem:[#allocation5 + $0xb88] sm:$0xff] }
  0x7a   :  { %v518_v15 = vld [vmem:[#allocation5 + $0xbc0] sm:$0xff]  ;;  %v519_v18 = vld [vmem:[#allocation5 + $0xbc8] sm:$0xff]  ;;  %v8632_v19 = vcombine.low %v494_v5, %v502_v6 }
  0x7b   :  { %v534_v23 = vld [vmem:[#allocation5 + $0xc40] sm:$0xff]  ;;  %v527_v24 = vld [vmem:[#allocation5 + $0xc08] sm:$0xff]  ;;  %v8650_v28 = vcombine.low %v511_v16, %v519_v18 }
  0x7c   :  { %6309 = vmatpush1.bf16.msra.mxu0 %v8456_v46  ;;  %6473 = vmatpush1.bf16.msra.mxu1 %v8458_v47  ;;  %v8568_v46 = vcombine.low %v430_v33, %v438_v34  ;;  %v8570_v47 = vcombine.low %v431_v36, %v439_v37  ;;  %v535_v25 = vld [vmem:[#allocation5 + $0xc48] sm:$0xff] }
  0x7d   :  { %6310 = vmatprep.subr.bf16.mxu0 %v8473_v48  ;;  %6474 = vmatprep.subr.bf16.mxu1 %v8475_v49  ;;  %v8585_v48 = vcombine.high %v446_v41, %v454_v42  ;;  %v8587_v49 = vcombine.high %v447_v43, %v455_v44  ;;  %v543_v33 = vld [vmem:[#allocation5 + $0xc88] sm:$0xff]  ;;  %v8666_v37 = vcombine.low %v527_v24, %v535_v25 }
  0x7e   :  { %v551_v34 = vld [vmem:[#allocation5 + $0xcc8] sm:$0xff] }
  0x80   :  { %6311 = vmatpush1.bf16.msra.mxu0 %v8472_v55  ;;  %6475 = vmatpush1.bf16.msra.mxu1 %v8474_v56  ;;  %v8584_v55 = vcombine.low %v446_v41, %v454_v42  ;;  %v8586_v56 = vcombine.low %v447_v43, %v455_v44  ;;  %v559_v41 = vld [vmem:[#allocation5 + $0xd08] sm:$0xff]  ;;  %v8682_v44 = vcombine.low %v543_v33, %v551_v34 }
  0x81   :  { %6312 = vmatprep.subr.bf16.mxu0 %v8489_v57  ;;  %6476 = vmatprep.subr.bf16.mxu1 %v8491_v58  ;;  %v8601_v57 = vcombine.high %v462_v50, %v470_v51  ;;  %v8603_v58 = vcombine.high %v463_v52, %v471_v53  ;;  %v567_v42 = vld [vmem:[#allocation5 + $0xd48] sm:$0xff] }
  0x84   :  { %6313 = vmatpush1.bf16.msra.mxu0 %v8488_v1  ;;  %6477 = vmatpush1.bf16.msra.mxu1 %v8490_v2  ;;  %v8600_v1 = vcombine.low %v462_v50, %v470_v51  ;;  %v8602_v2 = vcombine.low %v463_v52, %v471_v53  ;;  %v575_v50 = vld [vmem:[#allocation5 + $0xd88] sm:$0xff]  ;;  %v8698_v53 = vcombine.low %v559_v41, %v567_v42 }
  0x85   :  { %6314 = vmatprep.subr.bf16.mxu0 %v8505_v3  ;;  %6478 = vmatprep.subr.bf16.mxu1 %v8507_v4  ;;  %v8617_v3 = vcombine.high %v478_v59, %v486_v61  ;;  %v8619_v4 = vcombine.high %v479_v62, %v487_v63  ;;  %v583_v51 = vld [vmem:[#allocation5 + $0xdc8] sm:$0xff] }
  0x86   :  { %v591_v59 = vld [vmem:[#allocation5 + $0xe08] sm:$0xff] }
  0x87   :  { %v599_v61 = vld [vmem:[#allocation5 + $0xe48] sm:$0xff] }
  0x88   :  { %6315 = vmatpush1.bf16.msra.mxu0 %v8504_v11  ;;  %6479 = vmatpush1.bf16.msra.mxu1 %v8506_v12  ;;  %v8618_v11 = vcombine.low %v479_v62, %v487_v63  ;;  %v8633_v12 = vcombine.high %v494_v5, %v502_v6  ;;  %v8714_v63 = vcombine.low %v575_v50, %v583_v51  ;;  %v607_v5 = vld [vmem:[#allocation5 + $0xe88] sm:$0xff] }
  0x89   :  { %6316 = vmatprep.subr.bf16.mxu0 %v8521_v13  ;;  %6480 = vmatprep.subr.bf16.mxu1 %v8523_v14  ;;  %v8635_v13 = vcombine.high %v495_v7, %v503_v8  ;;  %v510_v14 = vld [vmem:[#allocation5 + $0xb80] sm:$0xff]  ;;  %v615_v6 = vld [vmem:[#allocation5 + $0xec8] sm:$0xff] }
  0x8a   :  { %v8648_v27 = vcombine.low %v510_v14, %v518_v15 }
  0x8c   :  { %6317 = vmatpush1.bf16.msra.mxu0 %v8520_v20  ;;  %6481 = vmatpush1.bf16.msra.mxu1 %v8522_v60  ;;  %v8634_v20 = vcombine.low %v495_v7, %v503_v8  ;;  %v8649_v60 = vcombine.high %v510_v14, %v518_v15  ;;  %v8730_v8 = vcombine.low %v591_v59, %v599_v61  ;;  %v623_v14 = vld [vmem:[#allocation5 + $0xf08] sm:$0xff] }
  0x8d   :  { %6327 = vmatprep.subr.bf16.mxu0 %v8537_v21  ;;  %6491 = vmatprep.subr.bf16.mxu1 %v8539_v22  ;;  %v8651_v21 = vcombine.high %v511_v16, %v519_v18  ;;  %v526_v22 = vld [vmem:[#allocation5 + $0xc00] sm:$0xff]  ;;  %v631_v15 = vld [vmem:[#allocation5 + $0xf48] sm:$0xff]  ;;  %v8746_v18 = vcombine.low %v607_v5, %v615_v6 }
  0x8e   :  { %v8664_v36 = vcombine.low %v526_v22, %v534_v23 }
  0x8f   :  { %6319 = vmatmul.mubr.bf16.vlgmr.msra.gmra.mrb[0].mxu0 %v9645_v26  ;;  %6483 = vmatmul.mubr.bf16.vlgmr.msra.gmra.mrb[0].mxu1 %v9645_v26 }
  0x90   :  { %6328 = vmatpush1.bf16.msra.mxu0 %v8536_v29  ;;  %6492 = vmatpush1.bf16.msra.mxu1 %v8538_v30  ;;  %v8665_v29 = vcombine.high %v526_v22, %v534_v23  ;;  %v8667_v30 = vcombine.high %v527_v24, %v535_v25  ;;  %v639_v22 = vld [vmem:[#allocation5 + $0xf88] sm:$0xff] }
  0x91   :  { %6329 = vmatprep.subr.bf16.mxu0 %v8553_v31  ;;  %6493 = vmatprep.subr.bf16.mxu1 %v8555_v32  ;;  %v542_v31 = vld [vmem:[#allocation5 + $0xc80] sm:$0xff]  ;;  %v647_v23 = vld [vmem:[#allocation5 + $0xfc8] sm:$0xff] }
  0x92   :  { %6359 = vmatprep.mubr.bf16.mxu0 %v9647_v35  ;;  %6523 = vmatprep.mubr.bf16.mxu1 %v9647_v35  ;;  %v550_v32 = vld [vmem:[#allocation5 + $0xcc0] sm:$0xff] }
  0x93   :  { %v8680_v43 = vcombine.low %v542_v31, %v550_v32  ;;  %v9656_v24 = vld [vmem:[%s9945_s0 + $0x8] sm:$0xff] }
  0x94   :  { %6330 = vmatpush1.bf16.msra.mxu0 %v8552_v0  ;;  %6494 = vmatpush1.bf16.msra.mxu1 %v8554_v38  ;;  %v8681_v0 = vcombine.high %v542_v31, %v550_v32  ;;  %v8683_v38 = vcombine.high %v543_v33, %v551_v34  ;;  %v662_v31 = vld [vmem:[#allocation5 + $0x1040] sm:$0xff]  ;;  %v9660_v32 = vrot.slane %v9656_v24, %v9619_v54  ;;  %v655_v33 = vld [vmem:[#allocation5 + $0x1008] sm:$0xff] }
  0x95   :  { %6331 = vmatprep.subr.bf16.mxu0 %v8569_v39  ;;  %6495 = vmatprep.subr.bf16.mxu1 %v8571_v40  ;;  %v558_v39 = vld [vmem:[#allocation5 + $0xd00] sm:$0xff]  ;;  %v663_v34 = vld [vmem:[#allocation5 + $0x1048] sm:$0xff] }
  0x96   :  { %v566_v40 = vld [vmem:[#allocation5 + $0xd40] sm:$0xff] }
  0x97   :  { %v8696_v52 = vcombine.low %v558_v39, %v566_v40 }
  0x98   :  { %6332 = vmatpush1.bf16.msra.mxu0 %v8568_v46  ;;  %6496 = vmatpush1.bf16.msra.mxu1 %v8570_v47  ;;  %v8697_v46 = vcombine.high %v558_v39, %v566_v40  ;;  %v8699_v47 = vcombine.high %v559_v41, %v567_v42  ;;  %v670_v39 = vld [vmem:[#allocation5 + $0x1080] sm:$0xff]  ;;  %v124_v41 = vcombine.high %v9660_v32, %v9660_v32 }
  0x99   :  { %6333 = vmatprep.subr.bf16.mxu0 %v8585_v48  ;;  %6497 = vmatprep.subr.bf16.mxu1 %v8587_v49  ;;  %v574_v48 = vld [vmem:[#allocation5 + $0xd80] sm:$0xff]  ;;  %v9666_v42 = vpack.c.bf16 %v9639_v17, %v9639_v17 }
  0x9a   :  { %v582_v49 = vld [vmem:[#allocation5 + $0xdc0] sm:$0xff] }
  0x9b   :  { %v8712_v62 = vcombine.low %v574_v48, %v582_v49  ;;  %v678_v40 = vld [vmem:[#allocation5 + $0x10c0] sm:$0xff] }
  0x9c   :  { %6334 = vmatpush1.bf16.msra.mxu0 %v8584_v55  ;;  %6498 = vmatpush1.bf16.msra.mxu1 %v8586_v56  ;;  %v8713_v55 = vcombine.high %v574_v48, %v582_v49  ;;  %v8715_v56 = vcombine.high %v575_v50, %v583_v51  ;;  %v8809_v48 = vcombine.high %v670_v39, %v678_v40  ;;  %v686_v50 = vld [vmem:[#allocation5 + $0x1100] sm:$0xff] }
  0x9d   :  { %6335 = vmatprep.subr.bf16.mxu0 %v8601_v57  ;;  %6499 = vmatprep.subr.bf16.mxu1 %v8603_v58  ;;  %v590_v57 = vld [vmem:[#allocation5 + $0xe00] sm:$0xff]  ;;  %v8808_v17 = vcombine.low %v670_v39, %v678_v40 }
  0x9e   :  { %v598_v58 = vld [vmem:[#allocation5 + $0xe40] sm:$0xff] }
  0x9f   :  { %v8728_v7 = vcombine.low %v590_v57, %v598_v58  ;;  %v694_v51 = vld [vmem:[#allocation5 + $0x1140] sm:$0xff] }
  0xa0   :  { %6336 = vmatpush1.bf16.msra.mxu0 %v8600_v1  ;;  %6500 = vmatpush1.bf16.msra.mxu1 %v8602_v2  ;;  %v8729_v1 = vcombine.high %v590_v57, %v598_v58  ;;  %v8731_v2 = vcombine.high %v591_v59, %v599_v61  ;;  %v8825_v57 = vcombine.high %v686_v50, %v694_v51  ;;  %v702_v59 = vld [vmem:[#allocation5 + $0x1180] sm:$0xff] }
  0xa1   :  { %6337 = vmatprep.subr.bf16.mxu0 %v8617_v3  ;;  %6501 = vmatprep.subr.bf16.mxu1 %v8619_v4  ;;  %v606_v3 = vld [vmem:[#allocation5 + $0xe80] sm:$0xff] }
  0xa2   :  { %v614_v4 = vld [vmem:[#allocation5 + $0xec0] sm:$0xff] }
  0xa3   :  { %v8744_v16 = vcombine.low %v606_v3, %v614_v4  ;;  %v710_v61 = vld [vmem:[#allocation5 + $0x11c0] sm:$0xff] }
  0xa4   :  { %6338 = vmatpush1.bf16.msra.mxu0 %v8616_v9  ;;  %6502 = vmatpush1.bf16.msra.mxu1 %v8618_v11  ;;  %v8745_v9 = vcombine.high %v606_v3, %v614_v4  ;;  %v8747_v11 = vcombine.high %v607_v5, %v615_v6  ;;  %v8841_v3 = vcombine.high %v702_v59, %v710_v61  ;;  %v718_v5 = vld [vmem:[#allocation5 + $0x1200] sm:$0xff] }
  0xa5   :  { %6339 = vmatprep.subr.bf16.mxu0 %v8633_v12  ;;  %6503 = vmatprep.subr.bf16.mxu1 %v8635_v13  ;;  %v622_v12 = vld [vmem:[#allocation5 + $0xf00] sm:$0xff] }
  0xa6   :  { %v630_v13 = vld [vmem:[#allocation5 + $0xf40] sm:$0xff] }
  0xa7   :  { %v8760_v25 = vcombine.low %v622_v12, %v630_v13  ;;  %v726_v6 = vld [vmem:[#allocation5 + $0x1240] sm:$0xff] }
  0xa8   :  { %6340 = vmatpush1.bf16.msra.mxu0 %v8632_v19  ;;  %6504 = vmatpush1.bf16.msra.mxu1 %v8634_v20  ;;  %v8761_v19 = vcombine.high %v622_v12, %v630_v13  ;;  %v8763_v20 = vcombine.high %v623_v14, %v631_v15  ;;  %v8857_v12 = vcombine.high %v718_v5, %v726_v6 }
  0xa9   :  { %6341 = vmatprep.subr.bf16.mxu0 %v8649_v60  ;;  %6505 = vmatprep.subr.bf16.mxu1 %v8651_v21  ;;  %v638_v60 = vld [vmem:[#allocation5 + $0xf80] sm:$0xff] }
  0xaa   :  { %v646_v21 = vld [vmem:[#allocation5 + $0xfc0] sm:$0xff] }
  0xac   :  { %6342 = vmatpush1.bf16.msra.mxu0 %v8648_v27  ;;  %6506 = vmatpush1.bf16.msra.mxu1 %v8650_v28  ;;  %v8762_v27 = vcombine.low %v623_v14, %v631_v15  ;;  %v8777_v28 = vcombine.high %v638_v60, %v646_v21  ;;  %v734_v14 = vld [vmem:[#allocation5 + $0x1280] sm:$0xff] }
  0xad   :  { %6343 = vmatprep.subr.bf16.mxu0 %v8665_v29  ;;  %6507 = vmatprep.subr.bf16.mxu1 %v8667_v30  ;;  %v8779_v29 = vcombine.high %v639_v22, %v647_v23  ;;  %v654_v30 = vld [vmem:[#allocation5 + $0x1000] sm:$0xff] }
  0xae   :  { %v742_v15 = vld [vmem:[#allocation5 + $0x12c0] sm:$0xff] }
  0xb0   :  { %6344 = vmatpush1.bf16.msra.mxu0 %v8664_v36  ;;  %6508 = vmatpush1.bf16.msra.mxu1 %v8666_v37  ;;  %v8776_v36 = vcombine.low %v638_v60, %v646_v21  ;;  %v8778_v37 = vcombine.low %v639_v22, %v647_v23  ;;  %v8873_v60 = vcombine.high %v734_v14, %v742_v15  ;;  %v750_v22 = vld [vmem:[#allocation5 + $0x1300] sm:$0xff] }
  0xb1   :  { %6345 = vmatprep.subr.bf16.mxu0 %v8681_v0  ;;  %6509 = vmatprep.subr.bf16.mxu1 %v8683_v38  ;;  %v8793_v0 = vcombine.high %v654_v30, %v662_v31  ;;  %v8795_v38 = vcombine.high %v655_v33, %v663_v34  ;;  %v758_v23 = vld [vmem:[#allocation5 + $0x1340] sm:$0xff] }
  0xb4   :  { %6346 = vmatpush1.bf16.msra.mxu0 %v8680_v43  ;;  %6510 = vmatpush1.bf16.msra.mxu1 %v8682_v44  ;;  %v671_v43 = vld [vmem:[#allocation5 + $0x1088] sm:$0xff] }
  0xb5   :  { %6347 = vmatprep.subr.bf16.mxu0 %v8697_v46  ;;  %6511 = vmatprep.subr.bf16.mxu1 %v8699_v47  ;;  %v679_v44 = vld [vmem:[#allocation5 + $0x10c8] sm:$0xff]  ;;  %v8792_v46 = vcombine.low %v654_v30, %v662_v31  ;;  %v8794_v47 = vcombine.low %v655_v33, %v663_v34  ;;  %v8889_v30 = vcombine.high %v750_v22, %v758_v23  ;;  %v766_v33 = vld [vmem:[#allocation5 + $0x1380] sm:$0xff] }
  0xb6   :  { %v8811_v49 = vcombine.high %v671_v43, %v679_v44  ;;  %v774_v34 = vld [vmem:[#allocation5 + $0x13c0] sm:$0xff] }
  0xb7   :  { %v8905_v39 = vcombine.high %v766_v33, %v774_v34 }
  0xb8   :  { %6348 = vmatpush1.bf16.msra.mxu0 %v8696_v52  ;;  %6512 = vmatpush1.bf16.msra.mxu1 %v8698_v53  ;;  %v9668_v52 = vpack.c.bf16 %v124_v41, %v124_v41  ;;  %v687_v53 = vld [vmem:[#allocation5 + $0x1108] sm:$0xff]  ;;  %v782_v41 = vld [vmem:[#allocation5 + $0x1400] sm:$0xff] }
  0xb9   :  { %6349 = vmatprep.subr.bf16.mxu0 %v8713_v55  ;;  %6513 = vmatprep.subr.bf16.mxu1 %v8715_v56  ;;  %v695_v55 = vld [vmem:[#allocation5 + $0x1148] sm:$0xff]  ;;  %v8810_v56 = vcombine.low %v671_v43, %v679_v44  ;;  %v790_v43 = vld [vmem:[#allocation5 + $0x1440] sm:$0xff] }
  0xba   :  { %v8827_v58 = vcombine.high %v687_v53, %v695_v55  ;;  %v783_v44 = vld [vmem:[#allocation5 + $0x1408] sm:$0xff] }
  0xbc   :  { %6350 = vmatpush1.bf16.msra.mxu0 %v8712_v62  ;;  %6514 = vmatpush1.bf16.msra.mxu1 %v8714_v63  ;;  %v703_v62 = vld [vmem:[#allocation5 + $0x1188] sm:$0xff] }
  0xbd   :  { %6351 = vmatprep.subr.bf16.mxu0 %v8729_v1  ;;  %6515 = vmatprep.subr.bf16.mxu1 %v8731_v2  ;;  %v711_v63 = vld [vmem:[#allocation5 + $0x11c8] sm:$0xff]  ;;  %v8824_v1 = vcombine.low %v686_v50, %v694_v51  ;;  %v8826_v2 = vcombine.low %v687_v53, %v695_v55  ;;  %v798_v51 = vld [vmem:[#allocation5 + $0x1480] sm:$0xff] }
  0xbe   :  { %v8843_v4 = vcombine.high %v703_v62, %v711_v63  ;;  %v806_v53 = vld [vmem:[#allocation5 + $0x14c0] sm:$0xff]  ;;  %v799_v55 = vld [vmem:[#allocation5 + $0x1488] sm:$0xff] }
  0xc0   :  { %6352 = vmatpush1.bf16.msra.mxu0 %v8728_v7  ;;  %6516 = vmatpush1.bf16.msra.mxu1 %v8730_v8  ;;  %v719_v7 = vld [vmem:[#allocation5 + $0x1208] sm:$0xff] }
  0xc1   :  { %6353 = vmatprep.subr.bf16.mxu0 %v8745_v9  ;;  %6517 = vmatprep.subr.bf16.mxu1 %v8747_v11  ;;  %v727_v8 = vld [vmem:[#allocation5 + $0x1248] sm:$0xff]  ;;  %v8840_v9 = vcombine.low %v702_v59, %v710_v61  ;;  %v8842_v11 = vcombine.low %v703_v62, %v711_v63  ;;  %v814_v61 = vld [vmem:[#allocation5 + $0x1500] sm:$0xff] }
  0xc2   :  { %v8859_v13 = vcombine.high %v719_v7, %v727_v8  ;;  %v822_v62 = vld [vmem:[#allocation5 + $0x1540] sm:$0xff]  ;;  %v815_v63 = vld [vmem:[#allocation5 + $0x1508] sm:$0xff] }
  0xc4   :  { %6354 = vmatpush1.bf16.msra.mxu0 %v8744_v16  ;;  %6518 = vmatpush1.bf16.msra.mxu1 %v8746_v18  ;;  %v735_v16 = vld [vmem:[#allocation5 + $0x1288] sm:$0xff] }
  0xc5   :  { %6355 = vmatprep.subr.bf16.mxu0 %v8761_v19  ;;  %6519 = vmatprep.subr.bf16.mxu1 %v8763_v20  ;;  %v743_v18 = vld [vmem:[#allocation5 + $0x12c8] sm:$0xff]  ;;  %v8856_v19 = vcombine.low %v718_v5, %v726_v6  ;;  %v8858_v20 = vcombine.low %v719_v7, %v727_v8  ;;  %v830_v6 = vld [vmem:[#allocation5 + $0x1580] sm:$0xff] }
  0xc6   :  { %v8875_v21 = vcombine.high %v735_v16, %v743_v18  ;;  %v838_v7 = vld [vmem:[#allocation5 + $0x15c0] sm:$0xff]  ;;  %v831_v8 = vld [vmem:[#allocation5 + $0x1588] sm:$0xff] }
  0xc8   :  { %6356 = vmatpush1.bf16.msra.mxu0 %v8760_v25  ;;  %6520 = vmatpush1.bf16.msra.mxu1 %v8762_v27  ;;  %v751_v25 = vld [vmem:[#allocation5 + $0x1308] sm:$0xff] }
  0xc9   :  { %6357 = vmatprep.subr.bf16.mxu0 %v8777_v28  ;;  %6521 = vmatprep.subr.bf16.mxu1 %v8779_v29  ;;  %v759_v27 = vld [vmem:[#allocation5 + $0x1348] sm:$0xff]  ;;  %v8872_v28 = vcombine.low %v734_v14, %v742_v15  ;;  %v8874_v29 = vcombine.low %v735_v16, %v743_v18  ;;  %v846_v15 = vld [vmem:[#allocation5 + $0x1600] sm:$0xff] }
  0xca   :  { %v8891_v31 = vcombine.high %v751_v25, %v759_v27  ;;  %v854_v16 = vld [vmem:[#allocation5 + $0x1640] sm:$0xff]  ;;  %v847_v18 = vld [vmem:[#allocation5 + $0x1608] sm:$0xff] }
  0xcc   :  { %6358 = vmatpush1.bf16.msra.mxu0 %v8776_v36  ;;  %6522 = vmatpush1.bf16.msra.mxu1 %v8778_v37  ;;  %v767_v36 = vld [vmem:[#allocation5 + $0x1388] sm:$0xff] }
  0xcd   :  { %6368 = vmatprep.subr.bf16.mxu0 %v8793_v0  ;;  %6532 = vmatprep.subr.bf16.mxu1 %v8795_v38  ;;  %v775_v37 = vld [vmem:[#allocation5 + $0x13c8] sm:$0xff]  ;;  %v8888_v0 = vcombine.low %v750_v22, %v758_v23  ;;  %v8890_v38 = vcombine.low %v751_v25, %v759_v27  ;;  %v862_v23 = vld [vmem:[#allocation5 + $0x1680] sm:$0xff] }
  0xce   :  { %v8907_v40 = vcombine.high %v767_v36, %v775_v37  ;;  %v870_v25 = vld [vmem:[#allocation5 + $0x16c0] sm:$0xff]  ;;  %v863_v27 = vld [vmem:[#allocation5 + $0x1688] sm:$0xff] }
  0xcf   :  { %6360 = vmatmul.mubr.bf16.vlgmr.msra.gmra.mrb[0].mxu0 %v9666_v42  ;;  %6524 = vmatmul.mubr.bf16.vlgmr.msra.gmra.mrb[0].mxu1 %v9666_v42 }
  0xd0   :  { %6369 = vmatpush1.bf16.msra.mxu0 %v8792_v46  ;;  %6533 = vmatpush1.bf16.msra.mxu1 %v8794_v47  ;;  %v791_v46 = vld [vmem:[#allocation5 + $0x1448] sm:$0xff]  ;;  %v8904_v47 = vcombine.low %v766_v33, %v774_v34  ;;  %v878_v34 = vld [vmem:[#allocation5 + $0x1700] sm:$0xff] }
  0xd1   :  { %6370 = vmatprep.subr.bf16.mxu0 %v8809_v48  ;;  %6534 = vmatprep.subr.bf16.mxu1 %v8811_v49  ;;  %v8906_v48 = vcombine.low %v767_v36, %v775_v37  ;;  %v8921_v49 = vcombine.high %v782_v41, %v790_v43  ;;  %v8923_v50 = vcombine.high %v783_v44, %v791_v46  ;;  %v886_v36 = vld [vmem:[#allocation5 + $0x1740] sm:$0xff]  ;;  %v879_v37 = vld [vmem:[#allocation5 + $0x1708] sm:$0xff] }
  0xd2   :  { %6400 = vmatprep.mubr.bf16.mxu0 %v9668_v52  ;;  %6564 = vmatprep.mubr.bf16.mxu1 %v9668_v52 }
  0xd4   :  { %6371 = vmatpush1.bf16.msra.mxu0 %v8808_v17  ;;  %6535 = vmatpush1.bf16.msra.mxu1 %v8810_v56  ;;  %v807_v17 = vld [vmem:[#allocation5 + $0x14c8] sm:$0xff]  ;;  %v8920_v56 = vcombine.low %v782_v41, %v790_v43  ;;  %v894_v43 = vld [vmem:[#allocation5 + $0x1780] sm:$0xff] }
  0xd5   :  { %6372 = vmatprep.subr.bf16.mxu0 %v8825_v57  ;;  %6536 = vmatprep.subr.bf16.mxu1 %v8827_v58  ;;  %v8922_v57 = vcombine.low %v783_v44, %v791_v46  ;;  %v8937_v58 = vcombine.high %v798_v51, %v806_v53  ;;  %v8939_v59 = vcombine.high %v799_v55, %v807_v17  ;;  %v902_v44 = vld [vmem:[#allocation5 + $0x17c0] sm:$0xff] }
  0xd6   :  { %v109_v46 = vcombine.high %v9656_v24, %v9656_v24 }
  0xd8   :  { %6373 = vmatpush1.bf16.msra.mxu0 %v8824_v1  ;;  %6537 = vmatpush1.bf16.msra.mxu1 %v8826_v2  ;;  %v823_v1 = vld [vmem:[#allocation5 + $0x1548] sm:$0xff]  ;;  %v8936_v2 = vcombine.low %v798_v51, %v806_v53  ;;  %v9033_v51 = vcombine.high %v894_v43, %v902_v44 }
  0xd9   :  { %6374 = vmatprep.subr.bf16.mxu0 %v8841_v3  ;;  %6538 = vmatprep.subr.bf16.mxu1 %v8843_v4  ;;  %v8938_v3 = vcombine.low %v799_v55, %v807_v17  ;;  %v8953_v4 = vcombine.high %v814_v61, %v822_v62  ;;  %v8955_v5 = vcombine.high %v815_v63, %v823_v1  ;;  %v910_v55 = vld [vmem:[#allocation5 + $0x1800] sm:$0xff] }
  0xda   :  { %v918_v17 = vld [vmem:[#allocation5 + $0x1840] sm:$0xff] }
  0xdc   :  { %6375 = vmatpush1.bf16.msra.mxu0 %v8840_v9  ;;  %6539 = vmatpush1.bf16.msra.mxu1 %v8842_v11  ;;  %v839_v9 = vld [vmem:[#allocation5 + $0x15c8] sm:$0xff]  ;;  %v8952_v11 = vcombine.low %v814_v61, %v822_v62  ;;  %v9049_v61 = vcombine.high %v910_v55, %v918_v17 }
  0xdd   :  { %6376 = vmatprep.subr.bf16.mxu0 %v8857_v12  ;;  %6540 = vmatprep.subr.bf16.mxu1 %v8859_v13  ;;  %v8954_v12 = vcombine.low %v815_v63, %v823_v1  ;;  %v8969_v13 = vcombine.high %v830_v6, %v838_v7  ;;  %v8971_v14 = vcombine.high %v831_v8, %v839_v9  ;;  %v926_v63 = vld [vmem:[#allocation5 + $0x1880] sm:$0xff] }
  0xde   :  { %v934_v1 = vld [vmem:[#allocation5 + $0x18c0] sm:$0xff] }
  0xe0   :  { %6377 = vmatpush1.bf16.msra.mxu0 %v8856_v19  ;;  %6541 = vmatpush1.bf16.msra.mxu1 %v8858_v20  ;;  %v855_v19 = vld [vmem:[#allocation5 + $0x1648] sm:$0xff]  ;;  %v8968_v20 = vcombine.low %v830_v6, %v838_v7  ;;  %v9048_v6 = vcombine.low %v910_v55, %v918_v17 }
  0xe1   :  { %6378 = vmatprep.subr.bf16.mxu0 %v8873_v60  ;;  %6542 = vmatprep.subr.bf16.mxu1 %v8875_v21  ;;  %v8970_v60 = vcombine.low %v831_v8, %v839_v9  ;;  %v8985_v21 = vcombine.high %v846_v15, %v854_v16  ;;  %v8987_v22 = vcombine.high %v847_v18, %v855_v19 }
  0xe2   :  { %v9065_v8 = vcombine.high %v926_v63, %v934_v1 }
  0xe4   :  { %6379 = vmatpush1.bf16.msra.mxu0 %v8872_v28  ;;  %6543 = vmatpush1.bf16.msra.mxu1 %v8874_v29  ;;  %v871_v28 = vld [vmem:[#allocation5 + $0x16c8] sm:$0xff]  ;;  %v8984_v29 = vcombine.low %v846_v15, %v854_v16 }
  0xe5   :  { %6380 = vmatprep.subr.bf16.mxu0 %v8889_v30  ;;  %6544 = vmatprep.subr.bf16.mxu1 %v8891_v31  ;;  %v8986_v30 = vcombine.low %v847_v18, %v855_v19  ;;  %v9001_v31 = vcombine.high %v862_v23, %v870_v25  ;;  %v9003_v33 = vcombine.high %v863_v27, %v871_v28  ;;  %v951_v15 = vld [vmem:[#allocation5 + $0x1948] sm:$0xff] }
  0xe8   :  { %6381 = vmatpush1.bf16.msra.mxu0 %v8888_v0  ;;  %6545 = vmatpush1.bf16.msra.mxu1 %v8890_v38  ;;  %v887_v0 = vld [vmem:[#allocation5 + $0x1748] sm:$0xff]  ;;  %v9000_v38 = vcombine.low %v862_v23, %v870_v25 }
  0xe9   :  { %6382 = vmatprep.subr.bf16.mxu0 %v8905_v39  ;;  %6546 = vmatprep.subr.bf16.mxu1 %v8907_v40  ;;  %v9002_v39 = vcombine.low %v863_v27, %v871_v28  ;;  %v9017_v40 = vcombine.high %v878_v34, %v886_v36  ;;  %v9019_v41 = vcombine.high %v879_v37, %v887_v0 }
  0xec   :  { %6383 = vmatpush1.bf16.msra.mxu0 %v8904_v47  ;;  %6547 = vmatpush1.bf16.msra.mxu1 %v8906_v48  ;;  %v895_v47 = vld [vmem:[#allocation5 + $0x1788] sm:$0xff] }
  0xed   :  { %6384 = vmatprep.subr.bf16.mxu0 %v8921_v49  ;;  %6548 = vmatprep.subr.bf16.mxu1 %v8923_v50  ;;  %v903_v48 = vld [vmem:[#allocation5 + $0x17c8] sm:$0xff]  ;;  %v9016_v49 = vcombine.low %v878_v34, %v886_v36  ;;  %v9018_v50 = vcombine.low %v879_v37, %v887_v0 }
  0xee   :  { %v9035_v53 = vcombine.high %v895_v47, %v903_v48  ;;  %v9034_v24 = vcombine.low %v895_v47, %v903_v48  ;;  %v1006_v48 = vld [vmem:[#allocation5 + $0x1b00] sm:$0xff] }
  0xf0   :  { %6385 = vmatpush1.bf16.msra.mxu0 %v8920_v56  ;;  %6549 = vmatpush1.bf16.msra.mxu1 %v8922_v57  ;;  %v9677_v56 = vrot.slane %v109_v46, %v9619_v54  ;;  %v911_v57 = vld [vmem:[#allocation5 + $0x1808] sm:$0xff] }
  0xf1   :  { %6386 = vmatprep.subr.bf16.mxu0 %v8937_v58  ;;  %6550 = vmatprep.subr.bf16.mxu1 %v8939_v59  ;;  %v919_v58 = vld [vmem:[#allocation5 + $0x1848] sm:$0xff]  ;;  %v9032_v59 = vcombine.low %v894_v43, %v902_v44 }
  0xf2   :  { %v9051_v62 = vcombine.high %v911_v57, %v919_v58  ;;  %v9050_v7 = vcombine.low %v911_v57, %v919_v58  ;;  %v1022_v58 = vld [vmem:[#allocation5 + $0x1b80] sm:$0xff] }
  0xf4   :  { %6387 = vmatpush1.bf16.msra.mxu0 %v8936_v2  ;;  %6551 = vmatpush1.bf16.msra.mxu1 %v8938_v3  ;;  %v125_v2 = vcombine.high %v9677_v56, %v9677_v56  ;;  %v9683_v3 = vpack.c.bf16 %v9660_v32, %v9660_v32  ;;  %v9064_v32 = vcombine.low %v926_v63, %v934_v1 }
  0xf5   :  { %6388 = vmatprep.subr.bf16.mxu0 %v8953_v4  ;;  %6552 = vmatprep.subr.bf16.mxu1 %v8955_v5  ;;  %v927_v4 = vld [vmem:[#allocation5 + $0x1888] sm:$0xff] }
  0xf6   :  { %v935_v5 = vld [vmem:[#allocation5 + $0x18c8] sm:$0xff] }
  0xf7   :  { %v9067_v9 = vcombine.high %v927_v4, %v935_v5  ;;  %v9066_v16 = vcombine.low %v927_v4, %v935_v5  ;;  %v1038_v4 = vld [vmem:[#allocation5 + $0x1c00] sm:$0xff] }
  0xf8   :  { %6389 = vmatpush1.bf16.msra.mxu0 %v8952_v11  ;;  %6553 = vmatpush1.bf16.msra.mxu1 %v8954_v12  ;;  %v942_v11 = vld [vmem:[#allocation5 + $0x1900] sm:$0xff] }
  0xf9   :  { %6390 = vmatprep.subr.bf16.mxu0 %v8969_v13  ;;  %6554 = vmatprep.subr.bf16.mxu1 %v8971_v14  ;;  %v950_v12 = vld [vmem:[#allocation5 + $0x1940] sm:$0xff]  ;;  %v9685_v13 = vpack.c.bf16 %v125_v2, %v125_v2  ;;  %v943_v14 = vld [vmem:[#allocation5 + $0x1908] sm:$0xff] }
  0xfa   :  { %v9081_v18 = vcombine.high %v942_v11, %v950_v12  ;;  %v9083_v19 = vcombine.high %v943_v14, %v951_v15  ;;  %v9080_v23 = vcombine.low %v942_v11, %v950_v12  ;;  %v9082_v25 = vcombine.low %v943_v14, %v951_v15  ;;  %v1046_v5 = vld [vmem:[#allocation5 + $0x1c40] sm:$0xff] }
  0xfb   :  { %v9177_v11 = vcombine.high %v1038_v4, %v1046_v5  ;;  %v1054_v14 = vld [vmem:[#allocation5 + $0x1c80] sm:$0xff] }
  0xfc   :  { %6391 = vmatpush1.bf16.msra.mxu0 %v8968_v20  ;;  %6555 = vmatpush1.bf16.msra.mxu1 %v8970_v60  ;;  %v958_v20 = vld [vmem:[#allocation5 + $0x1980] sm:$0xff] }
  0xfd   :  { %6392 = vmatprep.subr.bf16.mxu0 %v8985_v21  ;;  %6556 = vmatprep.subr.bf16.mxu1 %v8987_v22  ;;  %v966_v60 = vld [vmem:[#allocation5 + $0x19c0] sm:$0xff]  ;;  %v959_v21 = vld [vmem:[#allocation5 + $0x1988] sm:$0xff] }
  0xfe   :  { %v967_v22 = vld [vmem:[#allocation5 + $0x19c8] sm:$0xff]  ;;  %v9097_v27 = vcombine.high %v958_v20, %v966_v60  ;;  %v9096_v34 = vcombine.low %v958_v20, %v966_v60  ;;  %v1062_v15 = vld [vmem:[#allocation5 + $0x1cc0] sm:$0xff] }
  0xff   :  { %v9099_v28 = vcombine.high %v959_v21, %v967_v22  ;;  %v9098_v36 = vcombine.low %v959_v21, %v967_v22  ;;  %v9193_v20 = vcombine.high %v1054_v14, %v1062_v15  ;;  %v1070_v21 = vld [vmem:[#allocation5 + $0x1d00] sm:$0xff] }
 0x100   :  { %6393 = vmatpush1.bf16.msra.mxu0 %v8984_v29  ;;  %6557 = vmatpush1.bf16.msra.mxu1 %v8986_v30  ;;  %v974_v29 = vld [vmem:[#allocation5 + $0x1a00] sm:$0xff] }
 0x101   :  { %6394 = vmatprep.subr.bf16.mxu0 %v9001_v31  ;;  %6558 = vmatprep.subr.bf16.mxu1 %v9003_v33  ;;  %v982_v30 = vld [vmem:[#allocation5 + $0x1a40] sm:$0xff]  ;;  %v975_v31 = vld [vmem:[#allocation5 + $0x1a08] sm:$0xff] }
 0x102   :  { %v983_v33 = vld [vmem:[#allocation5 + $0x1a48] sm:$0xff]  ;;  %v9113_v37 = vcombine.high %v974_v29, %v982_v30  ;;  %v9112_v43 = vcombine.low %v974_v29, %v982_v30  ;;  %v1078_v22 = vld [vmem:[#allocation5 + $0x1d40] sm:$0xff] }
 0x103   :  { %v9115_v0 = vcombine.high %v975_v31, %v983_v33  ;;  %v9114_v44 = vcombine.low %v975_v31, %v983_v33  ;;  %v9209_v29 = vcombine.high %v1070_v21, %v1078_v22  ;;  %v1086_v31 = vld [vmem:[#allocation5 + $0x1d80] sm:$0xff] }
 0x104   :  { %6395 = vmatpush1.bf16.msra.mxu0 %v9000_v38  ;;  %6559 = vmatpush1.bf16.msra.mxu1 %v9002_v39  ;;  %v990_v38 = vld [vmem:[#allocation5 + $0x1a80] sm:$0xff] }
 0x105   :  { %6396 = vmatprep.subr.bf16.mxu0 %v9017_v40  ;;  %6560 = vmatprep.subr.bf16.mxu1 %v9019_v41  ;;  %v998_v39 = vld [vmem:[#allocation5 + $0x1ac0] sm:$0xff]  ;;  %v991_v40 = vld [vmem:[#allocation5 + $0x1a88] sm:$0xff] }
 0x106   :  { %v999_v41 = vld [vmem:[#allocation5 + $0x1ac8] sm:$0xff]  ;;  %v9129_v46 = vcombine.high %v990_v38, %v998_v39  ;;  %v1094_v33 = vld [vmem:[#allocation5 + $0x1dc0] sm:$0xff] }
 0x107   :  { %v9131_v47 = vcombine.high %v991_v40, %v999_v41  ;;  %v9130_v55 = vcombine.low %v991_v40, %v999_v41  ;;  %v1102_v40 = vld [vmem:[#allocation5 + $0x1e00] sm:$0xff] }
 0x108   :  { %6397 = vmatpush1.bf16.msra.mxu0 %v9016_v49  ;;  %6561 = vmatpush1.bf16.msra.mxu1 %v9018_v50  ;;  %v1014_v49 = vld [vmem:[#allocation5 + $0x1b40] sm:$0xff]  ;;  %v1007_v50 = vld [vmem:[#allocation5 + $0x1b08] sm:$0xff] }
 0x109   :  { %6398 = vmatprep.subr.bf16.mxu0 %v9033_v51  ;;  %6562 = vmatprep.subr.bf16.mxu1 %v9035_v53  ;;  %v1015_v51 = vld [vmem:[#allocation5 + $0x1b48] sm:$0xff]  ;;  %v9128_v53 = vcombine.low %v990_v38, %v998_v39  ;;  %v9145_v17 = vcombine.high %v1006_v48, %v1014_v49  ;;  %v9225_v38 = vcombine.high %v1086_v31, %v1094_v33  ;;  %v1110_v41 = vld [vmem:[#allocation5 + $0x1e40] sm:$0xff] }
 0x10a   :  { %v9147_v57 = vcombine.high %v1007_v50, %v1015_v51  ;;  %v9146_v63 = vcombine.low %v1007_v50, %v1015_v51  ;;  %v1118_v50 = vld [vmem:[#allocation5 + $0x1e80] sm:$0xff] }
 0x10b   :  { %v1126_v51 = vld [vmem:[#allocation5 + $0x1ec0] sm:$0xff] }
 0x10c   :  { %6399 = vmatpush1.bf16.msra.mxu0 %v9032_v59  ;;  %6563 = vmatpush1.bf16.msra.mxu1 %v9034_v24  ;;  %v1030_v59 = vld [vmem:[#allocation5 + $0x1bc0] sm:$0xff]  ;;  %v1023_v24 = vld [vmem:[#allocation5 + $0x1b88] sm:$0xff] }
 0x10d   :  { %6409 = vmatprep.subr.bf16.mxu0 %v9049_v61  ;;  %6573 = vmatprep.subr.bf16.mxu1 %v9051_v62  ;;  %v1031_v61 = vld [vmem:[#allocation5 + $0x1bc8] sm:$0xff]  ;;  %v9144_v62 = vcombine.low %v1006_v48, %v1014_v49  ;;  %v9161_v1 = vcombine.high %v1022_v58, %v1030_v59  ;;  %v9241_v48 = vcombine.high %v1102_v40, %v1110_v41 }
 0x10e   :  { %v9163_v2 = vcombine.high %v1023_v24, %v1031_v61 }
 0x10f   :  { %6401 = vmatmul.mubr.bf16.vlgmr.msra.gmra.mrb[0].mxu0 %v9683_v3  ;;  %6565 = vmatmul.mubr.bf16.vlgmr.msra.gmra.mrb[0].mxu1 %v9683_v3 }
 0x110   :  { %6410 = vmatpush1.bf16.msra.mxu0 %v9048_v6  ;;  %6574 = vmatpush1.bf16.msra.mxu1 %v9050_v7  ;;  %v1039_v6 = vld [vmem:[#allocation5 + $0x1c08] sm:$0xff] }
 0x111   :  { %6411 = vmatprep.subr.bf16.mxu0 %v9065_v8  ;;  %6575 = vmatprep.subr.bf16.mxu1 %v9067_v9  ;;  %v1047_v7 = vld [vmem:[#allocation5 + $0x1c48] sm:$0xff]  ;;  %v9160_v8 = vcombine.low %v1022_v58, %v1030_v59  ;;  %v9162_v9 = vcombine.low %v1023_v24, %v1031_v61  ;;  %v9257_v58 = vcombine.high %v1118_v50, %v1126_v51  ;;  %v1134_v24 = vld [vmem:[#allocation5 + $0x1f00] sm:$0xff] }
 0x112   :  { %6441 = vmatprep.mubr.bf16.mxu0 %v9685_v13  ;;  %6605 = vmatprep.mubr.bf16.mxu1 %v9685_v13  ;;  %v9179_v12 = vcombine.high %v1039_v6, %v1047_v7  ;;  %v1142_v61 = vld [vmem:[#allocation5 + $0x1f40] sm:$0xff] }
 0x114   :  { %6412 = vmatpush1.bf16.msra.mxu0 %v9064_v32  ;;  %6576 = vmatpush1.bf16.msra.mxu1 %v9066_v16  ;;  %v1055_v32 = vld [vmem:[#allocation5 + $0x1c88] sm:$0xff] }
 0x115   :  { %6413 = vmatprep.subr.bf16.mxu0 %v9081_v18  ;;  %6577 = vmatprep.subr.bf16.mxu1 %v9083_v19  ;;  %v1063_v16 = vld [vmem:[#allocation5 + $0x1cc8] sm:$0xff]  ;;  %v9176_v18 = vcombine.low %v1038_v4, %v1046_v5  ;;  %v9178_v19 = vcombine.low %v1039_v6, %v1047_v7  ;;  %v9273_v4 = vcombine.high %v1134_v24, %v1142_v61  ;;  %v1150_v6 = vld [vmem:[#allocation5 + $0x1f80] sm:$0xff] }
 0x116   :  { %v9195_v60 = vcombine.high %v1055_v32, %v1063_v16  ;;  %v1158_v7 = vld [vmem:[#allocation5 + $0x1fc0] sm:$0xff] }
 0x118   :  { %6414 = vmatpush1.bf16.msra.mxu0 %v9080_v23  ;;  %6578 = vmatpush1.bf16.msra.mxu1 %v9082_v25  ;;  %v1071_v23 = vld [vmem:[#allocation5 + $0x1d08] sm:$0xff] }
 0x119   :  { %6415 = vmatprep.subr.bf16.mxu0 %v9097_v27  ;;  %6579 = vmatprep.subr.bf16.mxu1 %v9099_v28  ;;  %v1079_v25 = vld [vmem:[#allocation5 + $0x1d48] sm:$0xff]  ;;  %v9192_v27 = vcombine.low %v1054_v14, %v1062_v15  ;;  %v9194_v28 = vcombine.low %v1055_v32, %v1063_v16  ;;  %v9289_v14 = vcombine.high %v1150_v6, %v1158_v7  ;;  %v144_v32 = vld [vmem:[#allocation5 + $0x10] sm:$0xff] }
 0x11a   :  { %v9211_v30 = vcombine.high %v1071_v23, %v1079_v25  ;;  %v152_v16 = vld [vmem:[#allocation5 + $0x50] sm:$0xff] }
 0x11c   :  { %6416 = vmatpush1.bf16.msra.mxu0 %v9096_v34  ;;  %6580 = vmatpush1.bf16.msra.mxu1 %v9098_v36  ;;  %v1087_v34 = vld [vmem:[#allocation5 + $0x1d88] sm:$0xff] }
 0x11d   :  { %6417 = vmatprep.subr.bf16.mxu0 %v9113_v37  ;;  %6581 = vmatprep.subr.bf16.mxu1 %v9115_v0  ;;  %v1095_v36 = vld [vmem:[#allocation5 + $0x1dc8] sm:$0xff]  ;;  %v9208_v37 = vcombine.low %v1070_v21, %v1078_v22  ;;  %v9210_v0 = vcombine.low %v1071_v23, %v1079_v25  ;;  %v8285_v21 = vcombine.high %v144_v32, %v152_v16  ;;  %v160_v23 = vld [vmem:[#allocation5 + $0x90] sm:$0xff] }
 0x11e   :  { %v9227_v39 = vcombine.high %v1087_v34, %v1095_v36  ;;  %v168_v25 = vld [vmem:[#allocation5 + $0xd0] sm:$0xff] }
 0x120   :  { %6418 = vmatpush1.bf16.msra.mxu0 %v9112_v43  ;;  %6582 = vmatpush1.bf16.msra.mxu1 %v9114_v44  ;;  %v1103_v43 = vld [vmem:[#allocation5 + $0x1e08] sm:$0xff] }
 0x121   :  { %6419 = vmatprep.subr.bf16.mxu0 %v9129_v46  ;;  %6583 = vmatprep.subr.bf16.mxu1 %v9131_v47  ;;  %v1111_v44 = vld [vmem:[#allocation5 + $0x1e48] sm:$0xff]  ;;  %v9224_v46 = vcombine.low %v1086_v31, %v1094_v33  ;;  %v9226_v47 = vcombine.low %v1087_v34, %v1095_v36  ;;  %v8301_v33 = vcombine.high %v160_v23, %v168_v25  ;;  %v176_v36 = vld [vmem:[#allocation5 + $0x110] sm:$0xff] }
 0x122   :  { %v9243_v49 = vcombine.high %v1103_v43, %v1111_v44 }
 0x124   :  { %6420 = vmatpush1.bf16.msra.mxu0 %v9128_v53  ;;  %6584 = vmatpush1.bf16.msra.mxu1 %v9130_v55  ;;  %v1119_v53 = vld [vmem:[#allocation5 + $0x1e88] sm:$0xff] }
 0x125   :  { %6421 = vmatprep.subr.bf16.mxu0 %v9145_v17  ;;  %6585 = vmatprep.subr.bf16.mxu1 %v9147_v57  ;;  %v1127_v55 = vld [vmem:[#allocation5 + $0x1ec8] sm:$0xff]  ;;  %v9240_v17 = vcombine.low %v1102_v40, %v1110_v41  ;;  %v9242_v57 = vcombine.low %v1103_v43, %v1111_v44  ;;  %v192_v43 = vld [vmem:[#allocation5 + $0x190] sm:$0xff] }
 0x126   :  { %v9259_v59 = vcombine.high %v1119_v53, %v1127_v55  ;;  %v200_v44 = vld [vmem:[#allocation5 + $0x1d0] sm:$0xff] }
 0x128   :  { %6422 = vmatpush1.bf16.msra.mxu0 %v9144_v62  ;;  %6586 = vmatpush1.bf16.msra.mxu1 %v9146_v63  ;;  %v1135_v62 = vld [vmem:[#allocation5 + $0x1f08] sm:$0xff] }
 0x129   :  { %6423 = vmatprep.subr.bf16.mxu0 %v9161_v1  ;;  %6587 = vmatprep.subr.bf16.mxu1 %v9163_v2  ;;  %v1143_v63 = vld [vmem:[#allocation5 + $0x1f48] sm:$0xff]  ;;  %v9256_v1 = vcombine.low %v1118_v50, %v1126_v51  ;;  %v9258_v2 = vcombine.low %v1119_v53, %v1127_v55  ;;  %v8333_v50 = vcombine.high %v192_v43, %v200_v44  ;;  %v208_v53 = vld [vmem:[#allocation5 + $0x210] sm:$0xff] }
 0x12a   :  { %v9275_v5 = vcombine.high %v1135_v62, %v1143_v63  ;;  %v216_v55 = vld [vmem:[#allocation5 + $0x250] sm:$0xff] }
 0x12c   :  { %6424 = vmatpush1.bf16.msra.mxu0 %v9160_v8  ;;  %6588 = vmatpush1.bf16.msra.mxu1 %v9162_v9  ;;  %v1151_v8 = vld [vmem:[#allocation5 + $0x1f88] sm:$0xff] }
 0x12d   :  { %6425 = vmatprep.subr.bf16.mxu0 %v9177_v11  ;;  %6589 = vmatprep.subr.bf16.mxu1 %v9179_v12  ;;  %v1159_v9 = vld [vmem:[#allocation5 + $0x1fc8] sm:$0xff]  ;;  %v9272_v11 = vcombine.low %v1134_v24, %v1142_v61  ;;  %v9274_v12 = vcombine.low %v1135_v62, %v1143_v63  ;;  %v8349_v24 = vcombine.high %v208_v53, %v216_v55  ;;  %v224_v62 = vld [vmem:[#allocation5 + $0x290] sm:$0xff] }
 0x12e   :  { %v9291_v15 = vcombine.high %v1151_v8, %v1159_v9  ;;  %v232_v63 = vld [vmem:[#allocation5 + $0x2d0] sm:$0xff] }
 0x130   :  { %6426 = vmatpush1.bf16.msra.mxu0 %v9176_v18  ;;  %6590 = vmatpush1.bf16.msra.mxu1 %v9178_v19  ;;  %v145_v18 = vld [vmem:[#allocation5 + $0x18] sm:$0xff] }
 0x131   :  { %6427 = vmatprep.subr.bf16.mxu0 %v9193_v20  ;;  %6591 = vmatprep.subr.bf16.mxu1 %v9195_v60  ;;  %v153_v19 = vld [vmem:[#allocation5 + $0x58] sm:$0xff]  ;;  %v9288_v20 = vcombine.low %v1150_v6, %v1158_v7  ;;  %v9290_v60 = vcombine.low %v1151_v8, %v1159_v9  ;;  %v8365_v6 = vcombine.high %v224_v62, %v232_v63  ;;  %v240_v8 = vld [vmem:[#allocation5 + $0x310] sm:$0xff] }
 0x132   :  { %v8287_v22 = vcombine.high %v145_v18, %v153_v19  ;;  %v8286_v31 = vcombine.low %v145_v18, %v153_v19  ;;  %v248_v9 = vld [vmem:[#allocation5 + $0x350] sm:$0xff] }
 0x133   :  { %v256_v18 = vld [vmem:[#allocation5 + $0x390] sm:$0xff] }
 0x134   :  { %6428 = vmatpush1.bf16.msra.mxu0 %v9192_v27  ;;  %6592 = vmatpush1.bf16.msra.mxu1 %v9194_v28  ;;  %v9693_v27 = vpack.c.bf16 %v9677_v56, %v9677_v56  ;;  %v161_v28 = vld [vmem:[#allocation5 + $0x98] sm:$0xff]  ;;  %v8300_v56 = vcombine.low %v160_v23, %v168_v25  ;;  %v264_v19 = vld [vmem:[#allocation5 + $0x3d0] sm:$0xff] }
 0x135   :  { %6429 = vmatprep.subr.bf16.mxu0 %v9209_v29  ;;  %6593 = vmatprep.subr.bf16.mxu1 %v9211_v30  ;;  %v169_v29 = vld [vmem:[#allocation5 + $0xd8] sm:$0xff]  ;;  %v8284_v30 = vcombine.low %v144_v32, %v152_v16  ;;  %v8381_v32 = vcombine.high %v240_v8, %v248_v9  ;;  %v8397_v23 = vcombine.high %v256_v18, %v264_v19 }
 0x136   :  { %v8303_v34 = vcombine.high %v161_v28, %v169_v29 }
 0x138   :  { %6430 = vmatpush1.bf16.msra.mxu0 %v9208_v37  ;;  %6594 = vmatpush1.bf16.msra.mxu1 %v9210_v0  ;;  %v184_v37 = vld [vmem:[#allocation5 + $0x150] sm:$0xff]  ;;  %v177_v0 = vld [vmem:[#allocation5 + $0x118] sm:$0xff] }
 0x139   :  { %6431 = vmatprep.subr.bf16.mxu0 %v9225_v38  ;;  %6595 = vmatprep.subr.bf16.mxu1 %v9227_v39  ;;  %v185_v38 = vld [vmem:[#allocation5 + $0x158] sm:$0xff]  ;;  %v8302_v39 = vcombine.low %v161_v28, %v169_v29  ;;  %v8317_v40 = vcombine.high %v176_v36, %v184_v37  ;;  %v272_v28 = vld [vmem:[#allocation5 + $0x410] sm:$0xff] }
 0x13a   :  { %v8319_v41 = vcombine.high %v177_v0, %v185_v38  ;;  %v280_v29 = vld [vmem:[#allocation5 + $0x450] sm:$0xff] }
 0x13c   :  { %6432 = vmatpush1.bf16.msra.mxu0 %v9224_v46  ;;  %6596 = vmatpush1.bf16.msra.mxu1 %v9226_v47  ;;  %v193_v46 = vld [vmem:[#allocation5 + $0x198] sm:$0xff] }
 0x13d   :  { %6433 = vmatprep.subr.bf16.mxu0 %v9241_v48  ;;  %6597 = vmatprep.subr.bf16.mxu1 %v9243_v49  ;;  %v201_v47 = vld [vmem:[#allocation5 + $0x1d8] sm:$0xff]  ;;  %v8316_v48 = vcombine.low %v176_v36, %v184_v37  ;;  %v8318_v49 = vcombine.low %v177_v0, %v185_v38  ;;  %v8413_v36 = vcombine.high %v272_v28, %v280_v29  ;;  %v288_v0 = vld [vmem:[#allocation5 + $0x490] sm:$0xff] }
 0x13e   :  { %v8335_v51 = vcombine.high %v193_v46, %v201_v47  ;;  %v296_v38 = vld [vmem:[#allocation5 + $0x4d0] sm:$0xff] }
 0x140   :  { %6434 = vmatpush1.bf16.msra.mxu0 %v9240_v17  ;;  %6598 = vmatpush1.bf16.msra.mxu1 %v9242_v57  ;;  %v209_v17 = vld [vmem:[#allocation5 + $0x218] sm:$0xff] }
 0x141   :  { %6435 = vmatprep.subr.bf16.mxu0 %v9257_v58  ;;  %6599 = vmatprep.subr.bf16.mxu1 %v9259_v59  ;;  %v217_v57 = vld [vmem:[#allocation5 + $0x258] sm:$0xff]  ;;  %v8332_v58 = vcombine.low %v192_v43, %v200_v44  ;;  %v8334_v59 = vcombine.low %v193_v46, %v201_v47  ;;  %v8429_v43 = vcombine.high %v288_v0, %v296_v38  ;;  %v304_v46 = vld [vmem:[#allocation5 + $0x510] sm:$0xff] }
 0x142   :  { %v8351_v61 = vcombine.high %v209_v17, %v217_v57  ;;  %v312_v47 = vld [vmem:[#allocation5 + $0x550] sm:$0xff] }
 0x144   :  { %6436 = vmatpush1.bf16.msra.mxu0 %v9256_v1  ;;  %6600 = vmatpush1.bf16.msra.mxu1 %v9258_v2  ;;  %v225_v1 = vld [vmem:[#allocation5 + $0x298] sm:$0xff] }
 0x145   :  { %6437 = vmatprep.subr.bf16.mxu0 %v9273_v4  ;;  %6601 = vmatprep.subr.bf16.mxu1 %v9275_v5  ;;  %v233_v2 = vld [vmem:[#allocation5 + $0x2d8] sm:$0xff]  ;;  %v8348_v4 = vcombine.low %v208_v53, %v216_v55  ;;  %v8350_v5 = vcombine.low %v209_v17, %v217_v57  ;;  %v8445_v53 = vcombine.high %v304_v46, %v312_v47  ;;  %v320_v17 = vld [vmem:[#allocation5 + $0x590] sm:$0xff] }
 0x146   :  { %v8367_v7 = vcombine.high %v225_v1, %v233_v2  ;;  %v328_v57 = vld [vmem:[#allocation5 + $0x5d0] sm:$0xff] }
 0x148   :  { %6438 = vmatpush1.bf16.msra.mxu0 %v9272_v11  ;;  %6602 = vmatpush1.bf16.msra.mxu1 %v9274_v12  ;;  %v241_v11 = vld [vmem:[#allocation5 + $0x318] sm:$0xff] }
 0x149   :  { %6439 = vmatprep.subr.bf16.mxu0 %v9289_v14  ;;  %6603 = vmatprep.subr.bf16.mxu1 %v9291_v15  ;;  %v249_v12 = vld [vmem:[#allocation5 + $0x358] sm:$0xff]  ;;  %v8364_v14 = vcombine.low %v224_v62, %v232_v63  ;;  %v8366_v15 = vcombine.low %v225_v1, %v233_v2  ;;  %v8461_v62 = vcombine.high %v320_v17, %v328_v57  ;;  %v336_v1 = vld [vmem:[#allocation5 + $0x610] sm:$0xff] }
 0x14a   :  { %v8383_v16 = vcombine.high %v241_v11, %v249_v12  ;;  %v344_v2 = vld [vmem:[#allocation5 + $0x650] sm:$0xff] }
 0x14c   :  { %6440 = vmatpush1.bf16.msra.mxu0 %v9288_v20  ;;  %6604 = vmatpush1.bf16.msra.mxu1 %v9290_v60  ;;  %v257_v20 = vld [vmem:[#allocation5 + $0x398] sm:$0xff] }
 0x14d   :  { %6614 = vmatprep.subr.bf16.mxu0 %v8285_v21  ;;  %6778 = vmatprep.subr.bf16.mxu1 %v8287_v22  ;;  %v265_v60 = vld [vmem:[#allocation5 + $0x3d8] sm:$0xff]  ;;  %v8380_v21 = vcombine.low %v240_v8, %v248_v9  ;;  %v8382_v22 = vcombine.low %v241_v11, %v249_v12  ;;  %v8477_v8 = vcombine.high %v336_v1, %v344_v2  ;;  %v352_v11 = vld [vmem:[#allocation5 + $0x690] sm:$0xff] }
 0x14e   :  { %v8399_v25 = vcombine.high %v257_v20, %v265_v60  ;;  %v360_v12 = vld [vmem:[#allocation5 + $0x6d0] sm:$0xff] }
 0x14f   :  { %6442 = vmatmul.mubr.bf16.vlgmr.msra.gmra.mrb[0].mxu0 %v9693_v27  ;;  %6606 = vmatmul.mubr.bf16.vlgmr.msra.gmra.mrb[0].mxu1 %v9693_v27 }
 0x150   :  { %6615 = vmatpush1.bf16.msra.mxu0 %v8284_v30  ;;  %6779 = vmatpush1.bf16.msra.mxu1 %v8286_v31  ;;  %v273_v30 = vld [vmem:[#allocation5 + $0x418] sm:$0xff] }
 0x151   :  { %6616 = vmatprep.subr.bf16.mxu0 %v8301_v33  ;;  %6780 = vmatprep.subr.bf16.mxu1 %v8303_v34  ;;  %v281_v31 = vld [vmem:[#allocation5 + $0x458] sm:$0xff]  ;;  %v8396_v33 = vcombine.low %v256_v18, %v264_v19  ;;  %v8398_v34 = vcombine.low %v257_v20, %v265_v60  ;;  %v8493_v18 = vcombine.high %v352_v11, %v360_v12  ;;  %v368_v20 = vld [vmem:[#allocation5 + $0x710] sm:$0xff] }
 0x152   :  { %6646 = vmatprep.mubr.bf16.mxu0 %v9632_v10  ;;  %6810 = vmatprep.mubr.bf16.mxu1 %v9632_v10  ;;  %v8415_v37 = vcombine.high %v273_v30, %v281_v31  ;;  %v376_v60 = vld [vmem:[#allocation5 + $0x750] sm:$0xff] }
 0x154   :  { %6617 = vmatpush1.bf16.msra.mxu0 %v8300_v56  ;;  %6781 = vmatpush1.bf16.msra.mxu1 %v8302_v39  ;;  %v289_v56 = vld [vmem:[#allocation5 + $0x498] sm:$0xff] }
 0x155   :  { %6618 = vmatprep.subr.bf16.mxu0 %v8317_v40  ;;  %6782 = vmatprep.subr.bf16.mxu1 %v8319_v41  ;;  %v297_v39 = vld [vmem:[#allocation5 + $0x4d8] sm:$0xff]  ;;  %v8412_v40 = vcombine.low %v272_v28, %v280_v29  ;;  %v8414_v41 = vcombine.low %v273_v30, %v281_v31  ;;  %v8509_v28 = vcombine.high %v368_v20, %v376_v60  ;;  %v384_v30 = vld [vmem:[#allocation5 + $0x790] sm:$0xff] }
 0x156   :  { %v8431_v44 = vcombine.high %v289_v56, %v297_v39  ;;  %v392_v31 = vld [vmem:[#allocation5 + $0x7d0] sm:$0xff] }
 0x158   :  { %6619 = vmatpush1.bf16.msra.mxu0 %v8316_v48  ;;  %6783 = vmatpush1.bf16.msra.mxu1 %v8318_v49  ;;  %v305_v48 = vld [vmem:[#allocation5 + $0x518] sm:$0xff] }
 0x159   :  { %6620 = vmatprep.subr.bf16.mxu0 %v8333_v50  ;;  %6784 = vmatprep.subr.bf16.mxu1 %v8335_v51  ;;  %v313_v49 = vld [vmem:[#allocation5 + $0x558] sm:$0xff]  ;;  %v8428_v50 = vcombine.low %v288_v0, %v296_v38  ;;  %v8430_v51 = vcombine.low %v289_v56, %v297_v39  ;;  %v8525_v0 = vcombine.high %v384_v30, %v392_v31  ;;  %v400_v56 = vld [vmem:[#allocation5 + $0x810] sm:$0xff] }
 0x15a   :  { %v8447_v55 = vcombine.high %v305_v48, %v313_v49  ;;  %v408_v39 = vld [vmem:[#allocation5 + $0x850] sm:$0xff] }
 0x15c   :  { %6621 = vmatpush1.bf16.msra.mxu0 %v8332_v58  ;;  %6785 = vmatpush1.bf16.msra.mxu1 %v8334_v59  ;;  %v321_v58 = vld [vmem:[#allocation5 + $0x598] sm:$0xff] }
 0x15d   :  { %6622 = vmatprep.subr.bf16.mxu0 %v8349_v24  ;;  %6786 = vmatprep.subr.bf16.mxu1 %v8351_v61  ;;  %v329_v59 = vld [vmem:[#allocation5 + $0x5d8] sm:$0xff]  ;;  %v8444_v24 = vcombine.low %v304_v46, %v312_v47  ;;  %v8446_v61 = vcombine.low %v305_v48, %v313_v49  ;;  %v8541_v46 = vcombine.high %v400_v56, %v408_v39  ;;  %v416_v48 = vld [vmem:[#allocation5 + $0x890] sm:$0xff] }
 0x15e   :  { %v8463_v63 = vcombine.high %v321_v58, %v329_v59  ;;  %v424_v49 = vld [vmem:[#allocation5 + $0x8d0] sm:$0xff] }
 0x160   :  { %6623 = vmatpush1.bf16.msra.mxu0 %v8348_v4  ;;  %6787 = vmatpush1.bf16.msra.mxu1 %v8350_v5  ;;  %v337_v4 = vld [vmem:[#allocation5 + $0x618] sm:$0xff] }
 0x161   :  { %6624 = vmatprep.subr.bf16.mxu0 %v8365_v6  ;;  %6788 = vmatprep.subr.bf16.mxu1 %v8367_v7  ;;  %v345_v5 = vld [vmem:[#allocation5 + $0x658] sm:$0xff]  ;;  %v8460_v6 = vcombine.low %v320_v17, %v328_v57  ;;  %v8462_v7 = vcombine.low %v321_v58, %v329_v59  ;;  %v8557_v17 = vcombine.high %v416_v48, %v424_v49  ;;  %v432_v58 = vld [vmem:[#allocation5 + $0x910] sm:$0xff] }
 0x162   :  { %v8479_v9 = vcombine.high %v337_v4, %v345_v5  ;;  %v440_v59 = vld [vmem:[#allocation5 + $0x950] sm:$0xff] }
 0x164   :  { %6625 = vmatpush1.bf16.msra.mxu0 %v8364_v14  ;;  %6789 = vmatpush1.bf16.msra.mxu1 %v8366_v15  ;;  %v353_v14 = vld [vmem:[#allocation5 + $0x698] sm:$0xff] }
 0x165   :  { %6626 = vmatprep.subr.bf16.mxu0 %v8381_v32  ;;  %6790 = vmatprep.subr.bf16.mxu1 %v8383_v16  ;;  %v361_v15 = vld [vmem:[#allocation5 + $0x6d8] sm:$0xff]  ;;  %v8476_v32 = vcombine.low %v336_v1, %v344_v2  ;;  %v8478_v16 = vcombine.low %v337_v4, %v345_v5  ;;  %v8573_v1 = vcombine.high %v432_v58, %v440_v59  ;;  %v448_v4 = vld [vmem:[#allocation5 + $0x990] sm:$0xff] }
 0x166   :  { %v8495_v19 = vcombine.high %v353_v14, %v361_v15  ;;  %v456_v5 = vld [vmem:[#allocation5 + $0x9d0] sm:$0xff] }
 0x168   :  { %6627 = vmatpush1.bf16.msra.mxu0 %v8380_v21  ;;  %6791 = vmatpush1.bf16.msra.mxu1 %v8382_v22  ;;  %v369_v21 = vld [vmem:[#allocation5 + $0x718] sm:$0xff] }
 0x169   :  { %6628 = vmatprep.subr.bf16.mxu0 %v8397_v23  ;;  %6792 = vmatprep.subr.bf16.mxu1 %v8399_v25  ;;  %v377_v22 = vld [vmem:[#allocation5 + $0x758] sm:$0xff]  ;;  %v8492_v23 = vcombine.low %v352_v11, %v360_v12  ;;  %v8494_v25 = vcombine.low %v353_v14, %v361_v15  ;;  %v8589_v11 = vcombine.high %v448_v4, %v456_v5  ;;  %v464_v14 = vld [vmem:[#allocation5 + $0xa10] sm:$0xff] }
 0x16a   :  { %v8511_v29 = vcombine.high %v369_v21, %v377_v22  ;;  %v472_v15 = vld [vmem:[#allocation5 + $0xa50] sm:$0xff] }
 0x16c   :  { %6629 = vmatpush1.bf16.msra.mxu0 %v8396_v33  ;;  %6793 = vmatpush1.bf16.msra.mxu1 %v8398_v34  ;;  %v385_v33 = vld [vmem:[#allocation5 + $0x798] sm:$0xff] }
 0x16d   :  { %6630 = vmatprep.subr.bf16.mxu0 %v8413_v36  ;;  %6794 = vmatprep.subr.bf16.mxu1 %v8415_v37  ;;  %v393_v34 = vld [vmem:[#allocation5 + $0x7d8] sm:$0xff]  ;;  %v8508_v36 = vcombine.low %v368_v20, %v376_v60  ;;  %v8510_v37 = vcombine.low %v369_v21, %v377_v22  ;;  %v8605_v20 = vcombine.high %v464_v14, %v472_v15  ;;  %v480_v21 = vld [vmem:[#allocation5 + $0xa90] sm:$0xff] }
 0x16e   :  { %v8527_v38 = vcombine.high %v385_v33, %v393_v34  ;;  %v488_v22 = vld [vmem:[#allocation5 + $0xad0] sm:$0xff] }
 0x170   :  { %6631 = vmatpush1.bf16.msra.mxu0 %v8412_v40  ;;  %6795 = vmatpush1.bf16.msra.mxu1 %v8414_v41  ;;  %v401_v40 = vld [vmem:[#allocation5 + $0x818] sm:$0xff] }
 0x171   :  { %6632 = vmatprep.subr.bf16.mxu0 %v8429_v43  ;;  %6796 = vmatprep.subr.bf16.mxu1 %v8431_v44  ;;  %v409_v41 = vld [vmem:[#allocation5 + $0x858] sm:$0xff]  ;;  %v8524_v43 = vcombine.low %v384_v30, %v392_v31  ;;  %v8526_v44 = vcombine.low %v385_v33, %v393_v34  ;;  %v8621_v30 = vcombine.high %v480_v21, %v488_v22  ;;  %v496_v33 = vld [vmem:[#allocation5 + $0xb10] sm:$0xff] }
 0x172   :  { %v8543_v47 = vcombine.high %v401_v40, %v409_v41  ;;  %v504_v34 = vld [vmem:[#allocation5 + $0xb50] sm:$0xff] }
 0x174   :  { %6633 = vmatpush1.bf16.msra.mxu0 %v8428_v50  ;;  %6797 = vmatpush1.bf16.msra.mxu1 %v8430_v51  ;;  %v417_v50 = vld [vmem:[#allocation5 + $0x898] sm:$0xff] }
 0x175   :  { %6634 = vmatprep.subr.bf16.mxu0 %v8445_v53  ;;  %6798 = vmatprep.subr.bf16.mxu1 %v8447_v55  ;;  %v425_v51 = vld [vmem:[#allocation5 + $0x8d8] sm:$0xff]  ;;  %v8540_v53 = vcombine.low %v400_v56, %v408_v39  ;;  %v8542_v55 = vcombine.low %v401_v40, %v409_v41  ;;  %v8637_v56 = vcombine.high %v496_v33, %v504_v34  ;;  %v512_v40 = vld [vmem:[#allocation5 + $0xb90] sm:$0xff] }
 0x176   :  { %v8559_v57 = vcombine.high %v417_v50, %v425_v51  ;;  %v520_v41 = vld [vmem:[#allocation5 + $0xbd0] sm:$0xff] }
 0x178   :  { %6635 = vmatpush1.bf16.msra.mxu0 %v8444_v24  ;;  %6799 = vmatpush1.bf16.msra.mxu1 %v8446_v61  ;;  %v433_v24 = vld [vmem:[#allocation5 + $0x918] sm:$0xff] }
 0x179   :  { %6636 = vmatprep.subr.bf16.mxu0 %v8461_v62  ;;  %6800 = vmatprep.subr.bf16.mxu1 %v8463_v63  ;;  %v441_v61 = vld [vmem:[#allocation5 + $0x958] sm:$0xff]  ;;  %v8556_v62 = vcombine.low %v416_v48, %v424_v49  ;;  %v8558_v63 = vcombine.low %v417_v50, %v425_v51  ;;  %v8653_v48 = vcombine.high %v512_v40, %v520_v41  ;;  %v528_v50 = vld [vmem:[#allocation5 + $0xc10] sm:$0xff] }
 0x17a   :  { %v8575_v2 = vcombine.high %v433_v24, %v441_v61  ;;  %v536_v51 = vld [vmem:[#allocation5 + $0xc50] sm:$0xff] }
 0x17c   :  { %6637 = vmatpush1.bf16.msra.mxu0 %v8460_v6  ;;  %6801 = vmatpush1.bf16.msra.mxu1 %v8462_v7  ;;  %v449_v6 = vld [vmem:[#allocation5 + $0x998] sm:$0xff] }
 0x17d   :  { %6638 = vmatprep.subr.bf16.mxu0 %v8477_v8  ;;  %6802 = vmatprep.subr.bf16.mxu1 %v8479_v9  ;;  %v457_v7 = vld [vmem:[#allocation5 + $0x9d8] sm:$0xff]  ;;  %v8572_v8 = vcombine.low %v432_v58, %v440_v59  ;;  %v8574_v9 = vcombine.low %v433_v24, %v441_v61  ;;  %v8669_v58 = vcombine.high %v528_v50, %v536_v51  ;;  %v544_v24 = vld [vmem:[#allocation5 + $0xc90] sm:$0xff] }
 0x17e   :  { %v8591_v12 = vcombine.high %v449_v6, %v457_v7  ;;  %v552_v61 = vld [vmem:[#allocation5 + $0xcd0] sm:$0xff] }
 0x180   :  { %6639 = vmatpush1.bf16.msra.mxu0 %v8476_v32  ;;  %6803 = vmatpush1.bf16.msra.mxu1 %v8478_v16  ;;  %v465_v32 = vld [vmem:[#allocation5 + $0xa18] sm:$0xff] }
 0x181   :  { %6640 = vmatprep.subr.bf16.mxu0 %v8493_v18  ;;  %6804 = vmatprep.subr.bf16.mxu1 %v8495_v19  ;;  %v473_v16 = vld [vmem:[#allocation5 + $0xa58] sm:$0xff]  ;;  %v8588_v18 = vcombine.low %v448_v4, %v456_v5  ;;  %v8590_v19 = vcombine.low %v449_v6, %v457_v7  ;;  %v8685_v4 = vcombine.high %v544_v24, %v552_v61  ;;  %v560_v6 = vld [vmem:[#allocation5 + $0xd10] sm:$0xff] }
 0x182   :  { %v8607_v60 = vcombine.high %v465_v32, %v473_v16  ;;  %v568_v7 = vld [vmem:[#allocation5 + $0xd50] sm:$0xff] }
 0x184   :  { %6641 = vmatpush1.bf16.msra.mxu0 %v8492_v23  ;;  %6805 = vmatpush1.bf16.msra.mxu1 %v8494_v25  ;;  %v481_v23 = vld [vmem:[#allocation5 + $0xa98] sm:$0xff] }
 0x185   :  { %6642 = vmatprep.subr.bf16.mxu0 %v8509_v28  ;;  %6806 = vmatprep.subr.bf16.mxu1 %v8511_v29  ;;  %v489_v25 = vld [vmem:[#allocation5 + $0xad8] sm:$0xff]  ;;  %v8604_v28 = vcombine.low %v464_v14, %v472_v15  ;;  %v8606_v29 = vcombine.low %v465_v32, %v473_v16  ;;  %v8701_v14 = vcombine.high %v560_v6, %v568_v7  ;;  %v576_v32 = vld [vmem:[#allocation5 + $0xd90] sm:$0xff] }
 0x186   :  { %v8623_v31 = vcombine.high %v481_v23, %v489_v25  ;;  %v584_v16 = vld [vmem:[#allocation5 + $0xdd0] sm:$0xff] }
 0x188   :  { %6643 = vmatpush1.bf16.msra.mxu0 %v8508_v36  ;;  %6807 = vmatpush1.bf16.msra.mxu1 %v8510_v37  ;;  %v497_v36 = vld [vmem:[#allocation5 + $0xb18] sm:$0xff] }
 0x189   :  { %6644 = vmatprep.subr.bf16.mxu0 %v8525_v0  ;;  %6808 = vmatprep.subr.bf16.mxu1 %v8527_v38  ;;  %v505_v37 = vld [vmem:[#allocation5 + $0xb58] sm:$0xff]  ;;  %v8620_v0 = vcombine.low %v480_v21, %v488_v22  ;;  %v8622_v38 = vcombine.low %v481_v23, %v489_v25  ;;  %v8717_v21 = vcombine.high %v576_v32, %v584_v16  ;;  %v592_v23 = vld [vmem:[#allocation5 + $0xe10] sm:$0xff] }
 0x18a   :  { %v8639_v39 = vcombine.high %v497_v36, %v505_v37  ;;  %v600_v25 = vld [vmem:[#allocation5 + $0xe50] sm:$0xff] }
 0x18c   :  { %6645 = vmatpush1.bf16.msra.mxu0 %v8524_v43  ;;  %6809 = vmatpush1.bf16.msra.mxu1 %v8526_v44  ;;  %v513_v43 = vld [vmem:[#allocation5 + $0xb98] sm:$0xff] }
 0x18d   :  { %6655 = vmatprep.subr.bf16.mxu0 %v8541_v46  ;;  %6819 = vmatprep.subr.bf16.mxu1 %v8543_v47  ;;  %v521_v44 = vld [vmem:[#allocation5 + $0xbd8] sm:$0xff]  ;;  %v8636_v46 = vcombine.low %v496_v33, %v504_v34  ;;  %v8638_v47 = vcombine.low %v497_v36, %v505_v37  ;;  %v8733_v33 = vcombine.high %v592_v23, %v600_v25  ;;  %v608_v36 = vld [vmem:[#allocation5 + $0xe90] sm:$0xff] }
 0x18e   :  { %v8655_v49 = vcombine.high %v513_v43, %v521_v44  ;;  %v616_v37 = vld [vmem:[#allocation5 + $0xed0] sm:$0xff] }
 0x18f   :  { %6647 = vmatmul.mubr.bf16.vlgmr.msra.gmra.mrb[4].mxu0 %v9645_v26  ;;  %6811 = vmatmul.mubr.bf16.vlgmr.msra.gmra.mrb[4].mxu1 %v9645_v26 }
 0x190   :  { %6656 = vmatpush1.bf16.msra.mxu0 %v8540_v53  ;;  %6820 = vmatpush1.bf16.msra.mxu1 %v8542_v55  ;;  %v529_v53 = vld [vmem:[#allocation5 + $0xc18] sm:$0xff] }
 0x191   :  { %6657 = vmatprep.subr.bf16.mxu0 %v8557_v17  ;;  %6821 = vmatprep.subr.bf16.mxu1 %v8559_v57  ;;  %v537_v55 = vld [vmem:[#allocation5 + $0xc58] sm:$0xff]  ;;  %v8652_v17 = vcombine.low %v512_v40, %v520_v41  ;;  %v8654_v57 = vcombine.low %v513_v43, %v521_v44  ;;  %v8749_v40 = vcombine.high %v608_v36, %v616_v37  ;;  %v624_v43 = vld [vmem:[#allocation5 + $0xf10] sm:$0xff] }
 0x192   :  { %6687 = vmatprep.mubr.bf16.mxu0 %v9647_v35  ;;  %6851 = vmatprep.mubr.bf16.mxu1 %v9647_v35  ;;  %v8671_v59 = vcombine.high %v529_v53, %v537_v55  ;;  %v632_v44 = vld [vmem:[#allocation5 + $0xf50] sm:$0xff] }
 0x194   :  { %6658 = vmatpush1.bf16.msra.mxu0 %v8556_v62  ;;  %6822 = vmatpush1.bf16.msra.mxu1 %v8558_v63  ;;  %v545_v62 = vld [vmem:[#allocation5 + $0xc98] sm:$0xff] }
 0x195   :  { %6659 = vmatprep.subr.bf16.mxu0 %v8573_v1  ;;  %6823 = vmatprep.subr.bf16.mxu1 %v8575_v2  ;;  %v553_v63 = vld [vmem:[#allocation5 + $0xcd8] sm:$0xff]  ;;  %v8668_v1 = vcombine.low %v528_v50, %v536_v51  ;;  %v8670_v2 = vcombine.low %v529_v53, %v537_v55  ;;  %v8765_v50 = vcombine.high %v624_v43, %v632_v44  ;;  %v640_v53 = vld [vmem:[#allocation5 + $0xf90] sm:$0xff] }
 0x196   :  { %v8687_v5 = vcombine.high %v545_v62, %v553_v63  ;;  %v648_v55 = vld [vmem:[#allocation5 + $0xfd0] sm:$0xff] }
 0x198   :  { %6660 = vmatpush1.bf16.msra.mxu0 %v8572_v8  ;;  %6824 = vmatpush1.bf16.msra.mxu1 %v8574_v9  ;;  %v561_v8 = vld [vmem:[#allocation5 + $0xd18] sm:$0xff] }
 0x199   :  { %6661 = vmatprep.subr.bf16.mxu0 %v8589_v11  ;;  %6825 = vmatprep.subr.bf16.mxu1 %v8591_v12  ;;  %v569_v9 = vld [vmem:[#allocation5 + $0xd58] sm:$0xff]  ;;  %v8684_v11 = vcombine.low %v544_v24, %v552_v61  ;;  %v8686_v12 = vcombine.low %v545_v62, %v553_v63  ;;  %v8781_v24 = vcombine.high %v640_v53, %v648_v55  ;;  %v656_v62 = vld [vmem:[#allocation5 + $0x1010] sm:$0xff] }
 0x19a   :  { %v8703_v15 = vcombine.high %v561_v8, %v569_v9  ;;  %v664_v63 = vld [vmem:[#allocation5 + $0x1050] sm:$0xff] }
 0x19c   :  { %6662 = vmatpush1.bf16.msra.mxu0 %v8588_v18  ;;  %6826 = vmatpush1.bf16.msra.mxu1 %v8590_v19  ;;  %v577_v18 = vld [vmem:[#allocation5 + $0xd98] sm:$0xff] }
 0x19d   :  { %6663 = vmatprep.subr.bf16.mxu0 %v8605_v20  ;;  %6827 = vmatprep.subr.bf16.mxu1 %v8607_v60  ;;  %v585_v19 = vld [vmem:[#allocation5 + $0xdd8] sm:$0xff]  ;;  %v8700_v20 = vcombine.low %v560_v6, %v568_v7  ;;  %v8702_v60 = vcombine.low %v561_v8, %v569_v9  ;;  %v8797_v6 = vcombine.high %v656_v62, %v664_v63  ;;  %v672_v8 = vld [vmem:[#allocation5 + $0x1090] sm:$0xff] }
 0x19e   :  { %v8719_v22 = vcombine.high %v577_v18, %v585_v19  ;;  %v680_v9 = vld [vmem:[#allocation5 + $0x10d0] sm:$0xff] }
 0x1a0   :  { %6664 = vmatpush1.bf16.msra.mxu0 %v8604_v28  ;;  %6828 = vmatpush1.bf16.msra.mxu1 %v8606_v29  ;;  %v593_v28 = vld [vmem:[#allocation5 + $0xe18] sm:$0xff] }
 0x1a1   :  { %6665 = vmatprep.subr.bf16.mxu0 %v8621_v30  ;;  %6829 = vmatprep.subr.bf16.mxu1 %v8623_v31  ;;  %v601_v29 = vld [vmem:[#allocation5 + $0xe58] sm:$0xff]  ;;  %v8716_v30 = vcombine.low %v576_v32, %v584_v16  ;;  %v8718_v31 = vcombine.low %v577_v18, %v585_v19  ;;  %v8813_v32 = vcombine.high %v672_v8, %v680_v9  ;;  %v688_v18 = vld [vmem:[#allocation5 + $0x1110] sm:$0xff] }
 0x1a2   :  { %v8735_v34 = vcombine.high %v593_v28, %v601_v29  ;;  %v696_v19 = vld [vmem:[#allocation5 + $0x1150] sm:$0xff] }
 0x1a4   :  { %6666 = vmatpush1.bf16.msra.mxu0 %v8620_v0  ;;  %6830 = vmatpush1.bf16.msra.mxu1 %v8622_v38  ;;  %v609_v0 = vld [vmem:[#allocation5 + $0xe98] sm:$0xff] }
 0x1a5   :  { %6667 = vmatprep.subr.bf16.mxu0 %v8637_v56  ;;  %6831 = vmatprep.subr.bf16.mxu1 %v8639_v39  ;;  %v617_v38 = vld [vmem:[#allocation5 + $0xed8] sm:$0xff]  ;;  %v8732_v56 = vcombine.low %v592_v23, %v600_v25  ;;  %v8734_v39 = vcombine.low %v593_v28, %v601_v29  ;;  %v8829_v23 = vcombine.high %v688_v18, %v696_v19  ;;  %v704_v28 = vld [vmem:[#allocation5 + $0x1190] sm:$0xff] }
 0x1a6   :  { %v8751_v41 = vcombine.high %v609_v0, %v617_v38  ;;  %v712_v29 = vld [vmem:[#allocation5 + $0x11d0] sm:$0xff] }
 0x1a8   :  { %6668 = vmatpush1.bf16.msra.mxu0 %v8636_v46  ;;  %6832 = vmatpush1.bf16.msra.mxu1 %v8638_v47  ;;  %v625_v46 = vld [vmem:[#allocation5 + $0xf18] sm:$0xff] }
 0x1a9   :  { %6669 = vmatprep.subr.bf16.mxu0 %v8653_v48  ;;  %6833 = vmatprep.subr.bf16.mxu1 %v8655_v49  ;;  %v633_v47 = vld [vmem:[#allocation5 + $0xf58] sm:$0xff]  ;;  %v8748_v48 = vcombine.low %v608_v36, %v616_v37  ;;  %v8750_v49 = vcombine.low %v609_v0, %v617_v38  ;;  %v8845_v36 = vcombine.high %v704_v28, %v712_v29  ;;  %v720_v0 = vld [vmem:[#allocation5 + $0x1210] sm:$0xff] }
 0x1aa   :  { %v8767_v51 = vcombine.high %v625_v46, %v633_v47  ;;  %v728_v38 = vld [vmem:[#allocation5 + $0x1250] sm:$0xff] }
 0x1ac   :  { %6670 = vmatpush1.bf16.msra.mxu0 %v8652_v17  ;;  %6834 = vmatpush1.bf16.msra.mxu1 %v8654_v57  ;;  %v641_v17 = vld [vmem:[#allocation5 + $0xf98] sm:$0xff] }
 0x1ad   :  { %6671 = vmatprep.subr.bf16.mxu0 %v8669_v58  ;;  %6835 = vmatprep.subr.bf16.mxu1 %v8671_v59  ;;  %v649_v57 = vld [vmem:[#allocation5 + $0xfd8] sm:$0xff]  ;;  %v8764_v58 = vcombine.low %v624_v43, %v632_v44  ;;  %v8766_v59 = vcombine.low %v625_v46, %v633_v47  ;;  %v8861_v43 = vcombine.high %v720_v0, %v728_v38  ;;  %v736_v46 = vld [vmem:[#allocation5 + $0x1290] sm:$0xff] }
 0x1ae   :  { %v8783_v61 = vcombine.high %v641_v17, %v649_v57  ;;  %v744_v47 = vld [vmem:[#allocation5 + $0x12d0] sm:$0xff] }
 0x1b0   :  { %6672 = vmatpush1.bf16.msra.mxu0 %v8668_v1  ;;  %6836 = vmatpush1.bf16.msra.mxu1 %v8670_v2  ;;  %v657_v1 = vld [vmem:[#allocation5 + $0x1018] sm:$0xff] }
 0x1b1   :  { %6673 = vmatprep.subr.bf16.mxu0 %v8685_v4  ;;  %6837 = vmatprep.subr.bf16.mxu1 %v8687_v5  ;;  %v665_v2 = vld [vmem:[#allocation5 + $0x1058] sm:$0xff]  ;;  %v8780_v4 = vcombine.low %v640_v53, %v648_v55  ;;  %v8782_v5 = vcombine.low %v641_v17, %v649_v57  ;;  %v8877_v53 = vcombine.high %v736_v46, %v744_v47  ;;  %v752_v17 = vld [vmem:[#allocation5 + $0x1310] sm:$0xff] }
 0x1b2   :  { %v8799_v7 = vcombine.high %v657_v1, %v665_v2  ;;  %v760_v57 = vld [vmem:[#allocation5 + $0x1350] sm:$0xff] }
 0x1b4   :  { %6674 = vmatpush1.bf16.msra.mxu0 %v8684_v11  ;;  %6838 = vmatpush1.bf16.msra.mxu1 %v8686_v12  ;;  %v673_v11 = vld [vmem:[#allocation5 + $0x1098] sm:$0xff] }
 0x1b5   :  { %6675 = vmatprep.subr.bf16.mxu0 %v8701_v14  ;;  %6839 = vmatprep.subr.bf16.mxu1 %v8703_v15  ;;  %v681_v12 = vld [vmem:[#allocation5 + $0x10d8] sm:$0xff]  ;;  %v8796_v14 = vcombine.low %v656_v62, %v664_v63  ;;  %v8798_v15 = vcombine.low %v657_v1, %v665_v2  ;;  %v8893_v62 = vcombine.high %v752_v17, %v760_v57  ;;  %v768_v1 = vld [vmem:[#allocation5 + $0x1390] sm:$0xff] }
 0x1b6   :  { %v8815_v16 = vcombine.high %v673_v11, %v681_v12  ;;  %v776_v2 = vld [vmem:[#allocation5 + $0x13d0] sm:$0xff] }
 0x1b8   :  { %6676 = vmatpush1.bf16.msra.mxu0 %v8700_v20  ;;  %6840 = vmatpush1.bf16.msra.mxu1 %v8702_v60  ;;  %v689_v20 = vld [vmem:[#allocation5 + $0x1118] sm:$0xff] }
 0x1b9   :  { %6677 = vmatprep.subr.bf16.mxu0 %v8717_v21  ;;  %6841 = vmatprep.subr.bf16.mxu1 %v8719_v22  ;;  %v697_v60 = vld [vmem:[#allocation5 + $0x1158] sm:$0xff]  ;;  %v8812_v21 = vcombine.low %v672_v8, %v680_v9  ;;  %v8814_v22 = vcombine.low %v673_v11, %v681_v12  ;;  %v8909_v8 = vcombine.high %v768_v1, %v776_v2  ;;  %v784_v11 = vld [vmem:[#allocation5 + $0x1410] sm:$0xff] }
 0x1ba   :  { %v8831_v25 = vcombine.high %v689_v20, %v697_v60  ;;  %v792_v12 = vld [vmem:[#allocation5 + $0x1450] sm:$0xff] }
 0x1bc   :  { %6678 = vmatpush1.bf16.msra.mxu0 %v8716_v30  ;;  %6842 = vmatpush1.bf16.msra.mxu1 %v8718_v31  ;;  %v705_v30 = vld [vmem:[#allocation5 + $0x1198] sm:$0xff] }
 0x1bd   :  { %6679 = vmatprep.subr.bf16.mxu0 %v8733_v33  ;;  %6843 = vmatprep.subr.bf16.mxu1 %v8735_v34  ;;  %v713_v31 = vld [vmem:[#allocation5 + $0x11d8] sm:$0xff]  ;;  %v8828_v33 = vcombine.low %v688_v18, %v696_v19  ;;  %v8830_v34 = vcombine.low %v689_v20, %v697_v60  ;;  %v8925_v18 = vcombine.high %v784_v11, %v792_v12  ;;  %v800_v20 = vld [vmem:[#allocation5 + $0x1490] sm:$0xff] }
 0x1be   :  { %v8847_v37 = vcombine.high %v705_v30, %v713_v31  ;;  %v808_v60 = vld [vmem:[#allocation5 + $0x14d0] sm:$0xff] }
 0x1c0   :  { %6680 = vmatpush1.bf16.msra.mxu0 %v8732_v56  ;;  %6844 = vmatpush1.bf16.msra.mxu1 %v8734_v39  ;;  %v721_v56 = vld [vmem:[#allocation5 + $0x1218] sm:$0xff] }
 0x1c1   :  { %6681 = vmatprep.subr.bf16.mxu0 %v8749_v40  ;;  %6845 = vmatprep.subr.bf16.mxu1 %v8751_v41  ;;  %v729_v39 = vld [vmem:[#allocation5 + $0x1258] sm:$0xff]  ;;  %v8844_v40 = vcombine.low %v704_v28, %v712_v29  ;;  %v8846_v41 = vcombine.low %v705_v30, %v713_v31  ;;  %v8941_v28 = vcombine.high %v800_v20, %v808_v60  ;;  %v816_v30 = vld [vmem:[#allocation5 + $0x1510] sm:$0xff] }
 0x1c2   :  { %v8863_v44 = vcombine.high %v721_v56, %v729_v39  ;;  %v824_v31 = vld [vmem:[#allocation5 + $0x1550] sm:$0xff] }
 0x1c4   :  { %6682 = vmatpush1.bf16.msra.mxu0 %v8748_v48  ;;  %6846 = vmatpush1.bf16.msra.mxu1 %v8750_v49  ;;  %v737_v48 = vld [vmem:[#allocation5 + $0x1298] sm:$0xff] }
 0x1c5   :  { %6683 = vmatprep.subr.bf16.mxu0 %v8765_v50  ;;  %6847 = vmatprep.subr.bf16.mxu1 %v8767_v51  ;;  %v745_v49 = vld [vmem:[#allocation5 + $0x12d8] sm:$0xff]  ;;  %v8860_v50 = vcombine.low %v720_v0, %v728_v38  ;;  %v8862_v51 = vcombine.low %v721_v56, %v729_v39  ;;  %v8957_v0 = vcombine.high %v816_v30, %v824_v31  ;;  %v832_v56 = vld [vmem:[#allocation5 + $0x1590] sm:$0xff] }
 0x1c6   :  { %v8879_v55 = vcombine.high %v737_v48, %v745_v49  ;;  %v840_v39 = vld [vmem:[#allocation5 + $0x15d0] sm:$0xff] }
 0x1c8   :  { %6684 = vmatpush1.bf16.msra.mxu0 %v8764_v58  ;;  %6848 = vmatpush1.bf16.msra.mxu1 %v8766_v59  ;;  %v753_v58 = vld [vmem:[#allocation5 + $0x1318] sm:$0xff] }
 0x1c9   :  { %6685 = vmatprep.subr.bf16.mxu0 %v8781_v24  ;;  %6849 = vmatprep.subr.bf16.mxu1 %v8783_v61  ;;  %v761_v59 = vld [vmem:[#allocation5 + $0x1358] sm:$0xff]  ;;  %v8876_v24 = vcombine.low %v736_v46, %v744_v47  ;;  %v8878_v61 = vcombine.low %v737_v48, %v745_v49  ;;  %v8973_v46 = vcombine.high %v832_v56, %v840_v39  ;;  %v848_v48 = vld [vmem:[#allocation5 + $0x1610] sm:$0xff] }
 0x1ca   :  { %v8895_v63 = vcombine.high %v753_v58, %v761_v59  ;;  %v856_v49 = vld [vmem:[#allocation5 + $0x1650] sm:$0xff] }
 0x1cc   :  { %6686 = vmatpush1.bf16.msra.mxu0 %v8780_v4  ;;  %6850 = vmatpush1.bf16.msra.mxu1 %v8782_v5  ;;  %v769_v4 = vld [vmem:[#allocation5 + $0x1398] sm:$0xff] }
 0x1cd   :  { %6696 = vmatprep.subr.bf16.mxu0 %v8797_v6  ;;  %6860 = vmatprep.subr.bf16.mxu1 %v8799_v7  ;;  %v777_v5 = vld [vmem:[#allocation5 + $0x13d8] sm:$0xff]  ;;  %v8892_v6 = vcombine.low %v752_v17, %v760_v57  ;;  %v8894_v7 = vcombine.low %v753_v58, %v761_v59  ;;  %v8989_v17 = vcombine.high %v848_v48, %v856_v49  ;;  %v864_v58 = vld [vmem:[#allocation5 + $0x1690] sm:$0xff] }
 0x1ce   :  { %v8911_v9 = vcombine.high %v769_v4, %v777_v5  ;;  %v872_v59 = vld [vmem:[#allocation5 + $0x16d0] sm:$0xff] }
 0x1cf   :  { %6688 = vmatmul.mubr.bf16.vlgmr.msra.gmra.mrb[4].mxu0 %v9666_v42  ;;  %6852 = vmatmul.mubr.bf16.vlgmr.msra.gmra.mrb[4].mxu1 %v9666_v42 }
 0x1d0   :  { %6697 = vmatpush1.bf16.msra.mxu0 %v8796_v14  ;;  %6861 = vmatpush1.bf16.msra.mxu1 %v8798_v15  ;;  %v785_v14 = vld [vmem:[#allocation5 + $0x1418] sm:$0xff] }
 0x1d1   :  { %6698 = vmatprep.subr.bf16.mxu0 %v8813_v32  ;;  %6862 = vmatprep.subr.bf16.mxu1 %v8815_v16  ;;  %v793_v15 = vld [vmem:[#allocation5 + $0x1458] sm:$0xff]  ;;  %v8908_v32 = vcombine.low %v768_v1, %v776_v2  ;;  %v8910_v16 = vcombine.low %v769_v4, %v777_v5  ;;  %v9005_v1 = vcombine.high %v864_v58, %v872_v59  ;;  %v880_v4 = vld [vmem:[#allocation5 + $0x1710] sm:$0xff] }
 0x1d2   :  { %6728 = vmatprep.mubr.bf16.mxu0 %v9668_v52  ;;  %6892 = vmatprep.mubr.bf16.mxu1 %v9668_v52  ;;  %v8927_v19 = vcombine.high %v785_v14, %v793_v15  ;;  %v888_v5 = vld [vmem:[#allocation5 + $0x1750] sm:$0xff] }
 0x1d4   :  { %6699 = vmatpush1.bf16.msra.mxu0 %v8812_v21  ;;  %6863 = vmatpush1.bf16.msra.mxu1 %v8814_v22  ;;  %v801_v21 = vld [vmem:[#allocation5 + $0x1498] sm:$0xff] }
 0x1d5   :  { %6700 = vmatprep.subr.bf16.mxu0 %v8829_v23  ;;  %6864 = vmatprep.subr.bf16.mxu1 %v8831_v25  ;;  %v809_v22 = vld [vmem:[#allocation5 + $0x14d8] sm:$0xff]  ;;  %v8924_v23 = vcombine.low %v784_v11, %v792_v12  ;;  %v8926_v25 = vcombine.low %v785_v14, %v793_v15  ;;  %v9021_v11 = vcombine.high %v880_v4, %v888_v5  ;;  %v896_v14 = vld [vmem:[#allocation5 + $0x1790] sm:$0xff] }
 0x1d6   :  { %v8943_v29 = vcombine.high %v801_v21, %v809_v22  ;;  %v904_v15 = vld [vmem:[#allocation5 + $0x17d0] sm:$0xff] }
 0x1d8   :  { %6701 = vmatpush1.bf16.msra.mxu0 %v8828_v33  ;;  %6865 = vmatpush1.bf16.msra.mxu1 %v8830_v34  ;;  %v817_v33 = vld [vmem:[#allocation5 + $0x1518] sm:$0xff] }
 0x1d9   :  { %6702 = vmatprep.subr.bf16.mxu0 %v8845_v36  ;;  %6866 = vmatprep.subr.bf16.mxu1 %v8847_v37  ;;  %v825_v34 = vld [vmem:[#allocation5 + $0x1558] sm:$0xff]  ;;  %v8940_v36 = vcombine.low %v800_v20, %v808_v60  ;;  %v8942_v37 = vcombine.low %v801_v21, %v809_v22  ;;  %v9037_v20 = vcombine.high %v896_v14, %v904_v15  ;;  %v912_v21 = vld [vmem:[#allocation5 + $0x1810] sm:$0xff] }
 0x1da   :  { %v8959_v38 = vcombine.high %v817_v33, %v825_v34  ;;  %v920_v22 = vld [vmem:[#allocation5 + $0x1850] sm:$0xff] }
 0x1dc   :  { %6703 = vmatpush1.bf16.msra.mxu0 %v8844_v40  ;;  %6867 = vmatpush1.bf16.msra.mxu1 %v8846_v41  ;;  %v833_v40 = vld [vmem:[#allocation5 + $0x1598] sm:$0xff] }
 0x1dd   :  { %6704 = vmatprep.subr.bf16.mxu0 %v8861_v43  ;;  %6868 = vmatprep.subr.bf16.mxu1 %v8863_v44  ;;  %v841_v41 = vld [vmem:[#allocation5 + $0x15d8] sm:$0xff]  ;;  %v8956_v43 = vcombine.low %v816_v30, %v824_v31  ;;  %v8958_v44 = vcombine.low %v817_v33, %v825_v34  ;;  %v9053_v30 = vcombine.high %v912_v21, %v920_v22  ;;  %v928_v33 = vld [vmem:[#allocation5 + $0x1890] sm:$0xff] }
 0x1de   :  { %v8975_v47 = vcombine.high %v833_v40, %v841_v41  ;;  %v936_v34 = vld [vmem:[#allocation5 + $0x18d0] sm:$0xff] }
 0x1e0   :  { %6705 = vmatpush1.bf16.msra.mxu0 %v8860_v50  ;;  %6869 = vmatpush1.bf16.msra.mxu1 %v8862_v51  ;;  %v849_v50 = vld [vmem:[#allocation5 + $0x1618] sm:$0xff] }
 0x1e1   :  { %6706 = vmatprep.subr.bf16.mxu0 %v8877_v53  ;;  %6870 = vmatprep.subr.bf16.mxu1 %v8879_v55  ;;  %v857_v51 = vld [vmem:[#allocation5 + $0x1658] sm:$0xff]  ;;  %v8972_v53 = vcombine.low %v832_v56, %v840_v39  ;;  %v8974_v55 = vcombine.low %v833_v40, %v841_v41  ;;  %v9069_v56 = vcombine.high %v928_v33, %v936_v34  ;;  %v944_v40 = vld [vmem:[#allocation5 + $0x1910] sm:$0xff] }
 0x1e2   :  { %v8991_v57 = vcombine.high %v849_v50, %v857_v51  ;;  %v952_v41 = vld [vmem:[#allocation5 + $0x1950] sm:$0xff] }
 0x1e4   :  { %6707 = vmatpush1.bf16.msra.mxu0 %v8876_v24  ;;  %6871 = vmatpush1.bf16.msra.mxu1 %v8878_v61  ;;  %v865_v24 = vld [vmem:[#allocation5 + $0x1698] sm:$0xff] }
 0x1e5   :  { %6708 = vmatprep.subr.bf16.mxu0 %v8893_v62  ;;  %6872 = vmatprep.subr.bf16.mxu1 %v8895_v63  ;;  %v873_v61 = vld [vmem:[#allocation5 + $0x16d8] sm:$0xff]  ;;  %v8988_v62 = vcombine.low %v848_v48, %v856_v49  ;;  %v8990_v63 = vcombine.low %v849_v50, %v857_v51  ;;  %v9085_v48 = vcombine.high %v944_v40, %v952_v41  ;;  %v960_v50 = vld [vmem:[#allocation5 + $0x1990] sm:$0xff] }
 0x1e6   :  { %v9007_v2 = vcombine.high %v865_v24, %v873_v61  ;;  %v968_v51 = vld [vmem:[#allocation5 + $0x19d0] sm:$0xff] }
 0x1e8   :  { %6709 = vmatpush1.bf16.msra.mxu0 %v8892_v6  ;;  %6873 = vmatpush1.bf16.msra.mxu1 %v8894_v7  ;;  %v881_v6 = vld [vmem:[#allocation5 + $0x1718] sm:$0xff] }
 0x1e9   :  { %6710 = vmatprep.subr.bf16.mxu0 %v8909_v8  ;;  %6874 = vmatprep.subr.bf16.mxu1 %v8911_v9  ;;  %v889_v7 = vld [vmem:[#allocation5 + $0x1758] sm:$0xff]  ;;  %v9004_v8 = vcombine.low %v864_v58, %v872_v59  ;;  %v9006_v9 = vcombine.low %v865_v24, %v873_v61  ;;  %v9101_v58 = vcombine.high %v960_v50, %v968_v51  ;;  %v976_v24 = vld [vmem:[#allocation5 + $0x1a10] sm:$0xff] }
 0x1ea   :  { %v9023_v12 = vcombine.high %v881_v6, %v889_v7  ;;  %v984_v61 = vld [vmem:[#allocation5 + $0x1a50] sm:$0xff] }
 0x1ec   :  { %6711 = vmatpush1.bf16.msra.mxu0 %v8908_v32  ;;  %6875 = vmatpush1.bf16.msra.mxu1 %v8910_v16  ;;  %v897_v32 = vld [vmem:[#allocation5 + $0x1798] sm:$0xff] }
 0x1ed   :  { %6712 = vmatprep.subr.bf16.mxu0 %v8925_v18  ;;  %6876 = vmatprep.subr.bf16.mxu1 %v8927_v19  ;;  %v905_v16 = vld [vmem:[#allocation5 + $0x17d8] sm:$0xff]  ;;  %v9020_v18 = vcombine.low %v880_v4, %v888_v5  ;;  %v9022_v19 = vcombine.low %v881_v6, %v889_v7  ;;  %v9117_v4 = vcombine.high %v976_v24, %v984_v61  ;;  %v992_v6 = vld [vmem:[#allocation5 + $0x1a90] sm:$0xff] }
 0x1ee   :  { %v9039_v60 = vcombine.high %v897_v32, %v905_v16  ;;  %v1000_v7 = vld [vmem:[#allocation5 + $0x1ad0] sm:$0xff] }
 0x1f0   :  { %6713 = vmatpush1.bf16.msra.mxu0 %v8924_v23  ;;  %6877 = vmatpush1.bf16.msra.mxu1 %v8926_v25  ;;  %v913_v23 = vld [vmem:[#allocation5 + $0x1818] sm:$0xff] }
 0x1f1   :  { %6714 = vmatprep.subr.bf16.mxu0 %v8941_v28  ;;  %6878 = vmatprep.subr.bf16.mxu1 %v8943_v29  ;;  %v921_v25 = vld [vmem:[#allocation5 + $0x1858] sm:$0xff]  ;;  %v9036_v28 = vcombine.low %v896_v14, %v904_v15  ;;  %v9038_v29 = vcombine.low %v897_v32, %v905_v16  ;;  %v9133_v14 = vcombine.high %v992_v6, %v1000_v7  ;;  %v1008_v32 = vld [vmem:[#allocation5 + $0x1b10] sm:$0xff] }
 0x1f2   :  { %v9055_v31 = vcombine.high %v913_v23, %v921_v25  ;;  %v1016_v16 = vld [vmem:[#allocation5 + $0x1b50] sm:$0xff] }
 0x1f4   :  { %6715 = vmatpush1.bf16.msra.mxu0 %v8940_v36  ;;  %6879 = vmatpush1.bf16.msra.mxu1 %v8942_v37  ;;  %v929_v36 = vld [vmem:[#allocation5 + $0x1898] sm:$0xff] }
 0x1f5   :  { %6716 = vmatprep.subr.bf16.mxu0 %v8957_v0  ;;  %6880 = vmatprep.subr.bf16.mxu1 %v8959_v38  ;;  %v937_v37 = vld [vmem:[#allocation5 + $0x18d8] sm:$0xff]  ;;  %v9052_v0 = vcombine.low %v912_v21, %v920_v22  ;;  %v9054_v38 = vcombine.low %v913_v23, %v921_v25  ;;  %v9149_v21 = vcombine.high %v1008_v32, %v1016_v16  ;;  %v1024_v25 = vld [vmem:[#allocation5 + $0x1b90] sm:$0xff] }
 0x1f6   :  { %v9071_v39 = vcombine.high %v929_v36, %v937_v37 }
 0x1f8   :  { %6717 = vmatpush1.bf16.msra.mxu0 %v8956_v43  ;;  %6881 = vmatpush1.bf16.msra.mxu1 %v8958_v44  ;;  %v945_v43 = vld [vmem:[#allocation5 + $0x1918] sm:$0xff] }
 0x1f9   :  { %6718 = vmatprep.subr.bf16.mxu0 %v8973_v46  ;;  %6882 = vmatprep.subr.bf16.mxu1 %v8975_v47  ;;  %v953_v44 = vld [vmem:[#allocation5 + $0x1958] sm:$0xff]  ;;  %v9068_v46 = vcombine.low %v928_v33, %v936_v34  ;;  %v9070_v47 = vcombine.low %v929_v36, %v937_v37 }
 0x1fa   :  { %v9087_v49 = vcombine.high %v945_v43, %v953_v44  ;;  %v1033_v33 = vld [vmem:[#allocation5 + $0x1bd8] sm:$0xff] }
 0x1fc   :  { %6719 = vmatpush1.bf16.msra.mxu0 %v8972_v53  ;;  %6883 = vmatpush1.bf16.msra.mxu1 %v8974_v55  ;;  %v961_v53 = vld [vmem:[#allocation5 + $0x1998] sm:$0xff] }
 0x1fd   :  { %6720 = vmatprep.subr.bf16.mxu0 %v8989_v17  ;;  %6884 = vmatprep.subr.bf16.mxu1 %v8991_v57  ;;  %v969_v55 = vld [vmem:[#allocation5 + $0x19d8] sm:$0xff]  ;;  %v9084_v17 = vcombine.low %v944_v40, %v952_v41  ;;  %v9086_v57 = vcombine.low %v945_v43, %v953_v44 }
 0x1fe   :  { %v9103_v59 = vcombine.high %v961_v53, %v969_v55 }
 0x200   :  { %6721 = vmatpush1.bf16.msra.mxu0 %v8988_v62  ;;  %6885 = vmatpush1.bf16.msra.mxu1 %v8990_v63  ;;  %v977_v62 = vld [vmem:[#allocation5 + $0x1a18] sm:$0xff] }
 0x201   :  { %6722 = vmatprep.subr.bf16.mxu0 %v9005_v1  ;;  %6886 = vmatprep.subr.bf16.mxu1 %v9007_v2  ;;  %v985_v63 = vld [vmem:[#allocation5 + $0x1a58] sm:$0xff]  ;;  %v9100_v1 = vcombine.low %v960_v50, %v968_v51  ;;  %v9102_v2 = vcombine.low %v961_v53, %v969_v55 }
 0x202   :  { %v9119_v5 = vcombine.high %v977_v62, %v985_v63  ;;  %v1041_v50 = vld [vmem:[#allocation5 + $0x1c18] sm:$0xff] }
 0x203   :  { %v1049_v51 = vld [vmem:[#allocation5 + $0x1c58] sm:$0xff] }
 0x204   :  { %6723 = vmatpush1.bf16.msra.mxu0 %v9004_v8  ;;  %6887 = vmatpush1.bf16.msra.mxu1 %v9006_v9  ;;  %v993_v8 = vld [vmem:[#allocation5 + $0x1a98] sm:$0xff] }
 0x205   :  { %6724 = vmatprep.subr.bf16.mxu0 %v9021_v11  ;;  %6888 = vmatprep.subr.bf16.mxu1 %v9023_v12  ;;  %v1001_v9 = vld [vmem:[#allocation5 + $0x1ad8] sm:$0xff]  ;;  %v9116_v11 = vcombine.low %v976_v24, %v984_v61  ;;  %v9118_v12 = vcombine.low %v977_v62, %v985_v63  ;;  %v1064_v24 = vld [vmem:[#allocation5 + $0x1cd0] sm:$0xff] }
 0x206   :  { %v9135_v15 = vcombine.high %v993_v8, %v1001_v9  ;;  %v1057_v61 = vld [vmem:[#allocation5 + $0x1c98] sm:$0xff] }
 0x207   :  { %v1065_v62 = vld [vmem:[#allocation5 + $0x1cd8] sm:$0xff] }
 0x208   :  { %6725 = vmatpush1.bf16.msra.mxu0 %v9020_v18  ;;  %6889 = vmatpush1.bf16.msra.mxu1 %v9022_v19  ;;  %v1009_v18 = vld [vmem:[#allocation5 + $0x1b18] sm:$0xff] }
 0x209   :  { %6726 = vmatprep.subr.bf16.mxu0 %v9037_v20  ;;  %6890 = vmatprep.subr.bf16.mxu1 %v9039_v60  ;;  %v1017_v19 = vld [vmem:[#allocation5 + $0x1b58] sm:$0xff]  ;;  %v9132_v20 = vcombine.low %v992_v6, %v1000_v7  ;;  %v9134_v60 = vcombine.low %v993_v8, %v1001_v9  ;;  %v1080_v6 = vld [vmem:[#allocation5 + $0x1d50] sm:$0xff] }
 0x20a   :  { %v9151_v23 = vcombine.high %v1009_v18, %v1017_v19  ;;  %v9150_v40 = vcombine.low %v1009_v18, %v1017_v19  ;;  %v1073_v7 = vld [vmem:[#allocation5 + $0x1d18] sm:$0xff] }
 0x20b   :  { %v1081_v8 = vld [vmem:[#allocation5 + $0x1d58] sm:$0xff] }
 0x20c   :  { %6727 = vmatpush1.bf16.msra.mxu0 %v9036_v28  ;;  %6891 = vmatpush1.bf16.msra.mxu1 %v9038_v29  ;;  %v1032_v28 = vld [vmem:[#allocation5 + $0x1bd0] sm:$0xff]  ;;  %v1097_v18 = vld [vmem:[#allocation5 + $0x1dd8] sm:$0xff] }
 0x20d   :  { %6737 = vmatprep.subr.bf16.mxu0 %v9053_v30  ;;  %6901 = vmatprep.subr.bf16.mxu1 %v9055_v31  ;;  %v1025_v31 = vld [vmem:[#allocation5 + $0x1b98] sm:$0xff]  ;;  %v9165_v41 = vcombine.high %v1024_v25, %v1032_v28  ;;  %v9164_v53 = vcombine.low %v1024_v25, %v1032_v28 }
 0x20e   :  { %v1105_v25 = vld [vmem:[#allocation5 + $0x1e18] sm:$0xff] }
 0x20f   :  { %6729 = vmatmul.mubr.bf16.vlgmr.msra.gmra.mrb[4].mxu0 %v9683_v3  ;;  %6893 = vmatmul.mubr.bf16.vlgmr.msra.gmra.mrb[4].mxu1 %v9683_v3  ;;  %v1113_v28 = vld [vmem:[#allocation5 + $0x1e58] sm:$0xff] }
 0x210   :  { %6738 = vmatpush1.bf16.msra.mxu0 %v9052_v0  ;;  %6902 = vmatpush1.bf16.msra.mxu1 %v9054_v38  ;;  %v9148_v0 = vcombine.low %v1008_v32, %v1016_v16  ;;  %v1096_v32 = vld [vmem:[#allocation5 + $0x1dd0] sm:$0xff]  ;;  %v1089_v16 = vld [vmem:[#allocation5 + $0x1d98] sm:$0xff] }
 0x211   :  { %6739 = vmatprep.subr.bf16.mxu0 %v9069_v56  ;;  %6903 = vmatprep.subr.bf16.mxu1 %v9071_v39 }
 0x212   :  { %6769 = vmatprep.mubr.bf16.mxu0 %v9685_v13  ;;  %6933 = vmatprep.mubr.bf16.mxu1 %v9685_v13 }
 0x214   :  { %6740 = vmatpush1.bf16.msra.mxu0 %v9068_v46  ;;  %6904 = vmatpush1.bf16.msra.mxu1 %v9070_v47  ;;  %v9167_v46 = vcombine.high %v1025_v31, %v1033_v33  ;;  %v1040_v47 = vld [vmem:[#allocation5 + $0x1c10] sm:$0xff] }
 0x215   :  { %6741 = vmatprep.subr.bf16.mxu0 %v9085_v48  ;;  %6905 = vmatprep.subr.bf16.mxu1 %v9087_v49  ;;  %v1048_v48 = vld [vmem:[#allocation5 + $0x1c50] sm:$0xff] }
 0x216   :  { %v9180_v63 = vcombine.low %v1040_v47, %v1048_v48 }
 0x218   :  { %6742 = vmatpush1.bf16.msra.mxu0 %v9084_v17  ;;  %6906 = vmatpush1.bf16.msra.mxu1 %v9086_v57  ;;  %v9166_v17 = vcombine.low %v1025_v31, %v1033_v33  ;;  %v9181_v57 = vcombine.high %v1040_v47, %v1048_v48  ;;  %v9247_v33 = vcombine.high %v1105_v25, %v1113_v28  ;;  %v1145_v47 = vld [vmem:[#allocation5 + $0x1f58] sm:$0xff] }
 0x219   :  { %6743 = vmatprep.subr.bf16.mxu0 %v9101_v58  ;;  %6907 = vmatprep.subr.bf16.mxu1 %v9103_v59  ;;  %v9183_v58 = vcombine.high %v1041_v50, %v1049_v51  ;;  %v1056_v59 = vld [vmem:[#allocation5 + $0x1c90] sm:$0xff] }
 0x21a   :  { %v9196_v9 = vcombine.low %v1056_v59, %v1064_v24 }
 0x21c   :  { %6744 = vmatpush1.bf16.msra.mxu0 %v9100_v1  ;;  %6908 = vmatpush1.bf16.msra.mxu1 %v9102_v2  ;;  %v9182_v1 = vcombine.low %v1041_v50, %v1049_v51  ;;  %v9197_v2 = vcombine.high %v1056_v59, %v1064_v24  ;;  %v1161_v59 = vld [vmem:[#allocation5 + $0x1fd8] sm:$0xff] }
 0x21d   :  { %6745 = vmatprep.subr.bf16.mxu0 %v9117_v4  ;;  %6909 = vmatprep.subr.bf16.mxu1 %v9119_v5  ;;  %v9199_v4 = vcombine.high %v1057_v61, %v1065_v62  ;;  %v1072_v5 = vld [vmem:[#allocation5 + $0x1d10] sm:$0xff] }
 0x21e   :  { %v9212_v19 = vcombine.low %v1072_v5, %v1080_v6 }
 0x220   :  { %6746 = vmatpush1.bf16.msra.mxu0 %v9116_v11  ;;  %6910 = vmatpush1.bf16.msra.mxu1 %v9118_v12  ;;  %v9198_v11 = vcombine.low %v1057_v61, %v1065_v62  ;;  %v9213_v12 = vcombine.high %v1072_v5, %v1080_v6  ;;  %v155_v5 = vld [vmem:[#allocation5 + $0x68] sm:$0xff] }
 0x221   :  { %6747 = vmatprep.subr.bf16.mxu0 %v9133_v14  ;;  %6911 = vmatprep.subr.bf16.mxu1 %v9135_v15  ;;  %v9215_v14 = vcombine.high %v1073_v7, %v1081_v8  ;;  %v1088_v15 = vld [vmem:[#allocation5 + $0x1d90] sm:$0xff] }
 0x222   :  { %v6443_v22 = vpop.f32.mrb[0].mxu0  ;;  %v6607_v29 = vpop.f32.mrb[0].mxu1 }
 0x223   :  { %v6445_v30 = vpop.f32.mrb[1].mxu0  ;;  %v6609_v36 = vpop.f32.mrb[1].mxu1 }
 0x224   :  { %v7614_v34 = vcombine.low %v6443_v22, %v6445_v30  ;;  %v6447_v37 = vpop.f32.mrb[2].mxu0  ;;  %6748 = vmatpush1.bf16.msra.mxu0 %v9132_v20  ;;  %v7615_v38 = vcombine.low %v6607_v29, %v6609_v36  ;;  %v6611_v56 = vpop.f32.mrb[2].mxu1  ;;  %6912 = vmatpush1.bf16.msra.mxu1 %v9134_v60  ;;  %v9214_v20 = vcombine.low %v1073_v7, %v1081_v8  ;;  %v1104_v22 = vld [vmem:[#allocation5 + $0x1e10] sm:$0xff] }
 0x225   :  { %v6448_v39 = vpop.f32.mrb[3].mxu0  ;;  %6749 = vmatprep.subr.bf16.mxu0 %v9149_v21  ;;  %v6612_v44 = vpop.f32.mrb[3].mxu1  ;;  %6913 = vmatprep.subr.bf16.mxu1 %v9151_v23  ;;  %v9229_v60 = vcombine.high %v1088_v15, %v1096_v32  ;;  %v9231_v21 = vcombine.high %v1089_v16, %v1097_v18  ;;  %v1112_v23 = vld [vmem:[#allocation5 + $0x1e50] sm:$0xff]  ;;  %v9228_v29 = vcombine.low %v1088_v15, %v1096_v32  ;;  %v1121_v37 = vld [vmem:[#allocation5 + $0x1e98] sm:$0xff]  ;;  %v171_v15 = vld [vmem:[#allocation5 + $0xe8] sm:$0xff] }
 0x226   :  { %v9712_v43 = vrot.slane %v7614_v34, %v9619_v54  ;;  %v9715_v49 = vrot.slane %v7615_v38, %v9619_v54  ;;  %v9230_v30 = vcombine.low %v1089_v16, %v1097_v18  ;;  %v9245_v31 = vcombine.high %v1104_v22, %v1112_v23  ;;  %v1120_v34 = vld [vmem:[#allocation5 + $0x1e90] sm:$0xff] }
 0x227   :  { %v1128_v36 = vld [vmem:[#allocation5 + $0x1ed0] sm:$0xff]  ;;  %v9244_v38 = vcombine.low %v1104_v22, %v1112_v23  ;;  %v9246_v56 = vcombine.low %v1105_v25, %v1113_v28  ;;  %v187_v22 = vld [vmem:[#allocation5 + $0x168] sm:$0xff] }
 0x228   :  { %6750 = vmatpush1.bf16.msra.mxu0 %v9148_v0  ;;  %v7630_v55 = vcombine.low %v9712_v43, %v9715_v49  ;;  %6914 = vmatpush1.bf16.msra.mxu1 %v9150_v40  ;;  %v1129_v0 = vld [vmem:[#allocation5 + $0x1ed8] sm:$0xff]  ;;  %v9261_v39 = vcombine.high %v1120_v34, %v1128_v36  ;;  %v1144_v44 = vld [vmem:[#allocation5 + $0x1f50] sm:$0xff]  ;;  %v9260_v48 = vcombine.low %v1120_v34, %v1128_v36  ;;  %v203_v34 = vld [vmem:[#allocation5 + $0x1e8] sm:$0xff] }
 0x229   :  { %6751 = vmatprep.subr.bf16.mxu0 %v9165_v41  ;;  %6915 = vmatprep.subr.bf16.mxu1 %v9167_v46  ;;  %v9263_v40 = vcombine.high %v1121_v37, %v1129_v0  ;;  %v1136_v41 = vld [vmem:[#allocation5 + $0x1f10] sm:$0xff]  ;;  %v1137_v46 = vld [vmem:[#allocation5 + $0x1f18] sm:$0xff]  ;;  %v9262_v50 = vcombine.low %v1121_v37, %v1129_v0 }
 0x22a   :  { %v9277_v51 = vcombine.high %v1136_v41, %v1144_v44  ;;  %v9276_v24 = vcombine.low %v1136_v41, %v1144_v44  ;;  %v9278_v61 = vcombine.low %v1137_v46, %v1145_v47  ;;  %v219_v41 = vld [vmem:[#allocation5 + $0x268] sm:$0xff] }
 0x22c   :  { %6752 = vmatpush1.bf16.msra.mxu0 %v9164_v53  ;;  %6916 = vmatpush1.bf16.msra.mxu1 %v9166_v17  ;;  %v9279_v53 = vcombine.high %v1137_v46, %v1145_v47  ;;  %v1152_v17 = vld [vmem:[#allocation5 + $0x1f90] sm:$0xff] }
 0x22d   :  { %6753 = vmatprep.subr.bf16.mxu0 %v9181_v57  ;;  %6917 = vmatprep.subr.bf16.mxu1 %v9183_v58  ;;  %v1160_v57 = vld [vmem:[#allocation5 + $0x1fd0] sm:$0xff]  ;;  %v1153_v58 = vld [vmem:[#allocation5 + $0x1f98] sm:$0xff] }
 0x22e   :  { %v9293_v62 = vcombine.high %v1152_v17, %v1160_v57  ;;  %v9292_v6 = vcombine.low %v1152_v17, %v1160_v57  ;;  %v9294_v7 = vcombine.low %v1153_v58, %v1161_v59  ;;  %v235_v17 = vld [vmem:[#allocation5 + $0x2e8] sm:$0xff] }
 0x230   :  { %6754 = vmatpush1.bf16.msra.mxu0 %v9180_v63  ;;  %6918 = vmatpush1.bf16.msra.mxu1 %v9182_v1  ;;  %v9295_v63 = vcombine.high %v1153_v58, %v1161_v59  ;;  %v146_v1 = vld [vmem:[#allocation5 + $0x20] sm:$0xff] }
 0x231   :  { %6755 = vmatprep.subr.bf16.mxu0 %v9197_v2  ;;  %6919 = vmatprep.subr.bf16.mxu1 %v9199_v4  ;;  %v154_v2 = vld [vmem:[#allocation5 + $0x60] sm:$0xff]  ;;  %v147_v4 = vld [vmem:[#allocation5 + $0x28] sm:$0xff] }
 0x232   :  { %v8289_v8 = vcombine.high %v146_v1, %v154_v2  ;;  %v8288_v32 = vcombine.low %v146_v1, %v154_v2  ;;  %v8290_v16 = vcombine.low %v147_v4, %v155_v5  ;;  %v251_v1 = vld [vmem:[#allocation5 + $0x368] sm:$0xff] }
 0x234   :  { %6756 = vmatpush1.bf16.msra.mxu0 %v9196_v9  ;;  %6920 = vmatpush1.bf16.msra.mxu1 %v9198_v11  ;;  %v8291_v9 = vcombine.high %v147_v4, %v155_v5  ;;  %v162_v11 = vld [vmem:[#allocation5 + $0xa0] sm:$0xff] }
 0x235   :  { %6757 = vmatprep.subr.bf16.mxu0 %v9213_v12  ;;  %6921 = vmatprep.subr.bf16.mxu1 %v9215_v14  ;;  %v170_v12 = vld [vmem:[#allocation5 + $0xe0] sm:$0xff]  ;;  %v163_v14 = vld [vmem:[#allocation5 + $0xa8] sm:$0xff] }
 0x236   :  { %v8305_v18 = vcombine.high %v162_v11, %v170_v12  ;;  %v8304_v23 = vcombine.low %v162_v11, %v170_v12  ;;  %v8306_v25 = vcombine.low %v163_v14, %v171_v15  ;;  %v267_v11 = vld [vmem:[#allocation5 + $0x3e8] sm:$0xff] }
 0x238   :  { %6758 = vmatpush1.bf16.msra.mxu0 %v9212_v19  ;;  %6922 = vmatpush1.bf16.msra.mxu1 %v9214_v20  ;;  %v8307_v19 = vcombine.high %v163_v14, %v171_v15  ;;  %v178_v20 = vld [vmem:[#allocation5 + $0x120] sm:$0xff] }
 0x239   :  { %6759 = vmatprep.subr.bf16.mxu0 %v9229_v60  ;;  %6923 = vmatprep.subr.bf16.mxu1 %v9231_v21  ;;  %v186_v60 = vld [vmem:[#allocation5 + $0x160] sm:$0xff]  ;;  %v179_v21 = vld [vmem:[#allocation5 + $0x128] sm:$0xff] }
 0x23a   :  { %v8321_v28 = vcombine.high %v178_v20, %v186_v60  ;;  %v8320_v36 = vcombine.low %v178_v20, %v186_v60  ;;  %v8322_v37 = vcombine.low %v179_v21, %v187_v22  ;;  %v283_v20 = vld [vmem:[#allocation5 + $0x468] sm:$0xff] }
 0x23c   :  { %6760 = vmatpush1.bf16.msra.mxu0 %v9228_v29  ;;  %6924 = vmatpush1.bf16.msra.mxu1 %v9230_v30  ;;  %v8323_v29 = vcombine.high %v179_v21, %v187_v22  ;;  %v194_v30 = vld [vmem:[#allocation5 + $0x1a0] sm:$0xff] }
 0x23d   :  { %6761 = vmatprep.subr.bf16.mxu0 %v9245_v31  ;;  %6925 = vmatprep.subr.bf16.mxu1 %v9247_v33  ;;  %v202_v31 = vld [vmem:[#allocation5 + $0x1e0] sm:$0xff]  ;;  %v195_v33 = vld [vmem:[#allocation5 + $0x1a8] sm:$0xff] }
 0x23e   :  { %v8337_v0 = vcombine.high %v194_v30, %v202_v31  ;;  %v8336_v44 = vcombine.low %v194_v30, %v202_v31  ;;  %v8338_v46 = vcombine.low %v195_v33, %v203_v34  ;;  %v299_v30 = vld [vmem:[#allocation5 + $0x4e8] sm:$0xff] }
 0x240   :  { %6762 = vmatpush1.bf16.msra.mxu0 %v9244_v38  ;;  %6926 = vmatpush1.bf16.msra.mxu1 %v9246_v56  ;;  %v8339_v38 = vcombine.high %v195_v33, %v203_v34  ;;  %v210_v56 = vld [vmem:[#allocation5 + $0x220] sm:$0xff] }
 0x241   :  { %6763 = vmatprep.subr.bf16.mxu0 %v9261_v39  ;;  %6927 = vmatprep.subr.bf16.mxu1 %v9263_v40  ;;  %v218_v39 = vld [vmem:[#allocation5 + $0x260] sm:$0xff]  ;;  %v211_v40 = vld [vmem:[#allocation5 + $0x228] sm:$0xff] }
 0x242   :  { %v8353_v47 = vcombine.high %v210_v56, %v218_v39  ;;  %v8352_v57 = vcombine.low %v210_v56, %v218_v39  ;;  %v8354_v58 = vcombine.low %v211_v40, %v219_v41  ;;  %v315_v56 = vld [vmem:[#allocation5 + $0x568] sm:$0xff] }
 0x244   :  { %6764 = vmatpush1.bf16.msra.mxu0 %v9260_v48  ;;  %6928 = vmatpush1.bf16.msra.mxu1 %v9262_v50  ;;  %v8355_v48 = vcombine.high %v211_v40, %v219_v41  ;;  %v226_v50 = vld [vmem:[#allocation5 + $0x2a0] sm:$0xff] }
 0x245   :  { %6765 = vmatprep.subr.bf16.mxu0 %v9277_v51  ;;  %6929 = vmatprep.subr.bf16.mxu1 %v9279_v53  ;;  %v234_v51 = vld [vmem:[#allocation5 + $0x2e0] sm:$0xff]  ;;  %v227_v53 = vld [vmem:[#allocation5 + $0x2a8] sm:$0xff] }
 0x246   :  { %v8369_v59 = vcombine.high %v226_v50, %v234_v51  ;;  %v8368_v2 = vcombine.low %v226_v50, %v234_v51  ;;  %v8370_v4 = vcombine.low %v227_v53, %v235_v17  ;;  %v331_v50 = vld [vmem:[#allocation5 + $0x5e8] sm:$0xff] }
 0x248   :  { %6766 = vmatpush1.bf16.msra.mxu0 %v9276_v24  ;;  %6930 = vmatpush1.bf16.msra.mxu1 %v9278_v61  ;;  %v8371_v24 = vcombine.high %v227_v53, %v235_v17  ;;  %v242_v61 = vld [vmem:[#allocation5 + $0x320] sm:$0xff] }
 0x249   :  { %6767 = vmatprep.subr.bf16.mxu0 %v9293_v62  ;;  %6931 = vmatprep.subr.bf16.mxu1 %v9295_v63  ;;  %v250_v62 = vld [vmem:[#allocation5 + $0x360] sm:$0xff]  ;;  %v243_v63 = vld [vmem:[#allocation5 + $0x328] sm:$0xff] }
 0x24a   :  { %v8385_v5 = vcombine.high %v242_v61, %v250_v62  ;;  %v8384_v12 = vcombine.low %v242_v61, %v250_v62  ;;  %v8386_v14 = vcombine.low %v243_v63, %v251_v1  ;;  %v347_v61 = vld [vmem:[#allocation5 + $0x668] sm:$0xff] }
 0x24c   :  { %6768 = vmatpush1.bf16.msra.mxu0 %v9292_v6  ;;  %6932 = vmatpush1.bf16.msra.mxu1 %v9294_v7  ;;  %v8387_v6 = vcombine.high %v243_v63, %v251_v1  ;;  %v258_v7 = vld [vmem:[#allocation5 + $0x3a0] sm:$0xff] }
 0x24d   :  { %6942 = vmatprep.subr.bf16.mxu0 %v8289_v8  ;;  %7106 = vmatprep.subr.bf16.mxu1 %v8291_v9  ;;  %v266_v8 = vld [vmem:[#allocation5 + $0x3e0] sm:$0xff]  ;;  %v259_v9 = vld [vmem:[#allocation5 + $0x3a8] sm:$0xff] }
 0x24e   :  { %v8401_v15 = vcombine.high %v258_v7, %v266_v8  ;;  %v8400_v60 = vcombine.low %v258_v7, %v266_v8  ;;  %v8402_v21 = vcombine.low %v259_v9, %v267_v11  ;;  %v363_v7 = vld [vmem:[#allocation5 + $0x6e8] sm:$0xff] }
 0x24f   :  { %6770 = vmatmul.mubr.bf16.vlgmr.msra.gmra.mrb[4].mxu0 %v9693_v27  ;;  %6934 = vmatmul.mubr.bf16.vlgmr.msra.gmra.mrb[4].mxu1 %v9693_v27 }
 0x250   :  { %6943 = vmatpush1.bf16.msra.mxu0 %v8288_v32  ;;  %7107 = vmatpush1.bf16.msra.mxu1 %v8290_v16  ;;  %v8403_v32 = vcombine.high %v259_v9, %v267_v11  ;;  %v274_v16 = vld [vmem:[#allocation5 + $0x420] sm:$0xff] }
 0x251   :  { %6944 = vmatprep.subr.bf16.mxu0 %v8305_v18  ;;  %7108 = vmatprep.subr.bf16.mxu1 %v8307_v19  ;;  %v282_v18 = vld [vmem:[#allocation5 + $0x460] sm:$0xff]  ;;  %v275_v19 = vld [vmem:[#allocation5 + $0x428] sm:$0xff] }
 0x252   :  { %6974 = vmatprep.mubr.bf16.mxu0 %v9632_v10  ;;  %7138 = vmatprep.mubr.bf16.mxu1 %v9632_v10  ;;  %v8417_v22 = vcombine.high %v274_v16, %v282_v18  ;;  %v8416_v31 = vcombine.low %v274_v16, %v282_v18  ;;  %v8418_v33 = vcombine.low %v275_v19, %v283_v20  ;;  %v379_v16 = vld [vmem:[#allocation5 + $0x768] sm:$0xff] }
 0x254   :  { %6945 = vmatpush1.bf16.msra.mxu0 %v8304_v23  ;;  %7109 = vmatpush1.bf16.msra.mxu1 %v8306_v25  ;;  %v8419_v23 = vcombine.high %v275_v19, %v283_v20  ;;  %v290_v25 = vld [vmem:[#allocation5 + $0x4a0] sm:$0xff] }
 0x255   :  { %6946 = vmatprep.subr.bf16.mxu0 %v8321_v28  ;;  %7110 = vmatprep.subr.bf16.mxu1 %v8323_v29  ;;  %v298_v28 = vld [vmem:[#allocation5 + $0x4e0] sm:$0xff]  ;;  %v291_v29 = vld [vmem:[#allocation5 + $0x4a8] sm:$0xff] }
 0x256   :  { %v8433_v34 = vcombine.high %v290_v25, %v298_v28  ;;  %v8432_v39 = vcombine.low %v290_v25, %v298_v28  ;;  %v8434_v40 = vcombine.low %v291_v29, %v299_v30  ;;  %v395_v25 = vld [vmem:[#allocation5 + $0x7e8] sm:$0xff] }
 0x258   :  { %6947 = vmatpush1.bf16.msra.mxu0 %v8320_v36  ;;  %7111 = vmatpush1.bf16.msra.mxu1 %v8322_v37  ;;  %v8435_v36 = vcombine.high %v291_v29, %v299_v30  ;;  %v306_v37 = vld [vmem:[#allocation5 + $0x520] sm:$0xff] }
 0x259   :  { %6948 = vmatprep.subr.bf16.mxu0 %v8337_v0  ;;  %7112 = vmatprep.subr.bf16.mxu1 %v8339_v38  ;;  %v314_v0 = vld [vmem:[#allocation5 + $0x560] sm:$0xff]  ;;  %v307_v38 = vld [vmem:[#allocation5 + $0x528] sm:$0xff] }
 0x25a   :  { %v8449_v41 = vcombine.high %v306_v37, %v314_v0  ;;  %v8448_v51 = vcombine.low %v306_v37, %v314_v0  ;;  %v8450_v53 = vcombine.low %v307_v38, %v315_v56  ;;  %v411_v37 = vld [vmem:[#allocation5 + $0x868] sm:$0xff] }
 0x25c   :  { %6949 = vmatpush1.bf16.msra.mxu0 %v8336_v44  ;;  %7113 = vmatpush1.bf16.msra.mxu1 %v8338_v46  ;;  %v8451_v44 = vcombine.high %v307_v38, %v315_v56  ;;  %v322_v46 = vld [vmem:[#allocation5 + $0x5a0] sm:$0xff] }
 0x25d   :  { %6950 = vmatprep.subr.bf16.mxu0 %v8353_v47  ;;  %7114 = vmatprep.subr.bf16.mxu1 %v8355_v48  ;;  %v330_v47 = vld [vmem:[#allocation5 + $0x5e0] sm:$0xff]  ;;  %v323_v48 = vld [vmem:[#allocation5 + $0x5a8] sm:$0xff] }
 0x25e   :  { %v8465_v17 = vcombine.high %v322_v46, %v330_v47  ;;  %v8464_v62 = vcombine.low %v322_v46, %v330_v47  ;;  %v8466_v63 = vcombine.low %v323_v48, %v331_v50  ;;  %v427_v46 = vld [vmem:[#allocation5 + $0x8e8] sm:$0xff] }
 0x260   :  { %6951 = vmatpush1.bf16.msra.mxu0 %v8352_v57  ;;  %7115 = vmatpush1.bf16.msra.mxu1 %v8354_v58  ;;  %v8467_v57 = vcombine.high %v323_v48, %v331_v50  ;;  %v338_v58 = vld [vmem:[#allocation5 + $0x620] sm:$0xff] }
 0x261   :  { %6952 = vmatprep.subr.bf16.mxu0 %v8369_v59  ;;  %7116 = vmatprep.subr.bf16.mxu1 %v8371_v24  ;;  %v346_v59 = vld [vmem:[#allocation5 + $0x660] sm:$0xff]  ;;  %v339_v24 = vld [vmem:[#allocation5 + $0x628] sm:$0xff] }
 0x262   :  { %v8481_v1 = vcombine.high %v338_v58, %v346_v59  ;;  %v8480_v8 = vcombine.low %v338_v58, %v346_v59  ;;  %v8482_v9 = vcombine.low %v339_v24, %v347_v61  ;;  %v443_v58 = vld [vmem:[#allocation5 + $0x968] sm:$0xff] }
 0x264   :  { %6953 = vmatpush1.bf16.msra.mxu0 %v8368_v2  ;;  %7117 = vmatpush1.bf16.msra.mxu1 %v8370_v4  ;;  %v8483_v2 = vcombine.high %v339_v24, %v347_v61  ;;  %v354_v4 = vld [vmem:[#allocation5 + $0x6a0] sm:$0xff] }
 0x265   :  { %6954 = vmatprep.subr.bf16.mxu0 %v8385_v5  ;;  %7118 = vmatprep.subr.bf16.mxu1 %v8387_v6  ;;  %v362_v5 = vld [vmem:[#allocation5 + $0x6e0] sm:$0xff]  ;;  %v355_v6 = vld [vmem:[#allocation5 + $0x6a8] sm:$0xff] }
 0x266   :  { %v8497_v11 = vcombine.high %v354_v4, %v362_v5  ;;  %v8496_v18 = vcombine.low %v354_v4, %v362_v5  ;;  %v8498_v19 = vcombine.low %v355_v6, %v363_v7  ;;  %v459_v4 = vld [vmem:[#allocation5 + $0x9e8] sm:$0xff] }
 0x268   :  { %6955 = vmatpush1.bf16.msra.mxu0 %v8384_v12  ;;  %7119 = vmatpush1.bf16.msra.mxu1 %v8386_v14  ;;  %v8499_v12 = vcombine.high %v355_v6, %v363_v7  ;;  %v370_v14 = vld [vmem:[#allocation5 + $0x720] sm:$0xff] }
 0x269   :  { %6956 = vmatprep.subr.bf16.mxu0 %v8401_v15  ;;  %7120 = vmatprep.subr.bf16.mxu1 %v8403_v32  ;;  %v378_v15 = vld [vmem:[#allocation5 + $0x760] sm:$0xff]  ;;  %v371_v32 = vld [vmem:[#allocation5 + $0x728] sm:$0xff] }
 0x26a   :  { %v8513_v20 = vcombine.high %v370_v14, %v378_v15  ;;  %v8512_v28 = vcombine.low %v370_v14, %v378_v15  ;;  %v8514_v29 = vcombine.low %v371_v32, %v379_v16  ;;  %v475_v14 = vld [vmem:[#allocation5 + $0xa68] sm:$0xff] }
 0x26c   :  { %6957 = vmatpush1.bf16.msra.mxu0 %v8400_v60  ;;  %7121 = vmatpush1.bf16.msra.mxu1 %v8402_v21  ;;  %v8515_v60 = vcombine.high %v371_v32, %v379_v16  ;;  %v386_v21 = vld [vmem:[#allocation5 + $0x7a0] sm:$0xff] }
 0x26d   :  { %6958 = vmatprep.subr.bf16.mxu0 %v8417_v22  ;;  %7122 = vmatprep.subr.bf16.mxu1 %v8419_v23  ;;  %v394_v22 = vld [vmem:[#allocation5 + $0x7e0] sm:$0xff]  ;;  %v387_v23 = vld [vmem:[#allocation5 + $0x7a8] sm:$0xff] }
 0x26e   :  { %v8529_v30 = vcombine.high %v386_v21, %v394_v22  ;;  %v8528_v0 = vcombine.low %v386_v21, %v394_v22  ;;  %v8530_v38 = vcombine.low %v387_v23, %v395_v25  ;;  %v491_v21 = vld [vmem:[#allocation5 + $0xae8] sm:$0xff] }
 0x270   :  { %6959 = vmatpush1.bf16.msra.mxu0 %v8416_v31  ;;  %7123 = vmatpush1.bf16.msra.mxu1 %v8418_v33  ;;  %v8531_v31 = vcombine.high %v387_v23, %v395_v25  ;;  %v402_v33 = vld [vmem:[#allocation5 + $0x820] sm:$0xff] }
 0x271   :  { %6960 = vmatprep.subr.bf16.mxu0 %v8433_v34  ;;  %7124 = vmatprep.subr.bf16.mxu1 %v8435_v36  ;;  %v410_v34 = vld [vmem:[#allocation5 + $0x860] sm:$0xff]  ;;  %v403_v36 = vld [vmem:[#allocation5 + $0x828] sm:$0xff] }
 0x272   :  { %v8545_v56 = vcombine.high %v402_v33, %v410_v34  ;;  %v8544_v47 = vcombine.low %v402_v33, %v410_v34  ;;  %v8546_v48 = vcombine.low %v403_v36, %v411_v37  ;;  %v507_v33 = vld [vmem:[#allocation5 + $0xb68] sm:$0xff] }
 0x274   :  { %6961 = vmatpush1.bf16.msra.mxu0 %v8432_v39  ;;  %7125 = vmatpush1.bf16.msra.mxu1 %v8434_v40  ;;  %v8547_v39 = vcombine.high %v403_v36, %v411_v37  ;;  %v418_v40 = vld [vmem:[#allocation5 + $0x8a0] sm:$0xff] }
 0x275   :  { %6962 = vmatprep.subr.bf16.mxu0 %v8449_v41  ;;  %7126 = vmatprep.subr.bf16.mxu1 %v8451_v44  ;;  %v426_v41 = vld [vmem:[#allocation5 + $0x8e0] sm:$0xff]  ;;  %v419_v44 = vld [vmem:[#allocation5 + $0x8a8] sm:$0xff] }
 0x276   :  { %v8561_v50 = vcombine.high %v418_v40, %v426_v41  ;;  %v8560_v59 = vcombine.low %v418_v40, %v426_v41  ;;  %v8562_v24 = vcombine.low %v419_v44, %v427_v46  ;;  %v523_v40 = vld [vmem:[#allocation5 + $0xbe8] sm:$0xff] }
 0x278   :  { %6963 = vmatpush1.bf16.msra.mxu0 %v8448_v51  ;;  %7127 = vmatpush1.bf16.msra.mxu1 %v8450_v53  ;;  %v8563_v51 = vcombine.high %v419_v44, %v427_v46  ;;  %v434_v53 = vld [vmem:[#allocation5 + $0x920] sm:$0xff] }
 0x279   :  { %6964 = vmatprep.subr.bf16.mxu0 %v8465_v17  ;;  %7128 = vmatprep.subr.bf16.mxu1 %v8467_v57  ;;  %v442_v17 = vld [vmem:[#allocation5 + $0x960] sm:$0xff]  ;;  %v435_v57 = vld [vmem:[#allocation5 + $0x928] sm:$0xff] }
 0x27a   :  { %v8577_v61 = vcombine.high %v434_v53, %v442_v17  ;;  %v8576_v5 = vcombine.low %v434_v53, %v442_v17  ;;  %v8578_v6 = vcombine.low %v435_v57, %v443_v58  ;;  %v539_v53 = vld [vmem:[#allocation5 + $0xc68] sm:$0xff] }
 0x27c   :  { %6965 = vmatpush1.bf16.msra.mxu0 %v8464_v62  ;;  %7129 = vmatpush1.bf16.msra.mxu1 %v8466_v63  ;;  %v8579_v62 = vcombine.high %v435_v57, %v443_v58  ;;  %v450_v63 = vld [vmem:[#allocation5 + $0x9a0] sm:$0xff] }
 0x27d   :  { %6966 = vmatprep.subr.bf16.mxu0 %v8481_v1  ;;  %7130 = vmatprep.subr.bf16.mxu1 %v8483_v2  ;;  %v458_v1 = vld [vmem:[#allocation5 + $0x9e0] sm:$0xff]  ;;  %v451_v2 = vld [vmem:[#allocation5 + $0x9a8] sm:$0xff] }
 0x27e   :  { %v8593_v7 = vcombine.high %v450_v63, %v458_v1  ;;  %v8592_v15 = vcombine.low %v450_v63, %v458_v1  ;;  %v8594_v32 = vcombine.low %v451_v2, %v459_v4  ;;  %v555_v63 = vld [vmem:[#allocation5 + $0xce8] sm:$0xff] }
 0x280   :  { %6967 = vmatpush1.bf16.msra.mxu0 %v8480_v8  ;;  %7131 = vmatpush1.bf16.msra.mxu1 %v8482_v9  ;;  %v8595_v8 = vcombine.high %v451_v2, %v459_v4  ;;  %v466_v9 = vld [vmem:[#allocation5 + $0xa20] sm:$0xff] }
 0x281   :  { %6968 = vmatprep.subr.bf16.mxu0 %v8497_v11  ;;  %7132 = vmatprep.subr.bf16.mxu1 %v8499_v12  ;;  %v474_v11 = vld [vmem:[#allocation5 + $0xa60] sm:$0xff]  ;;  %v467_v12 = vld [vmem:[#allocation5 + $0xa28] sm:$0xff] }
 0x282   :  { %v8609_v16 = vcombine.high %v466_v9, %v474_v11  ;;  %v8608_v22 = vcombine.low %v466_v9, %v474_v11  ;;  %v8610_v23 = vcombine.low %v467_v12, %v475_v14  ;;  %v571_v9 = vld [vmem:[#allocation5 + $0xd68] sm:$0xff] }
 0x284   :  { %6969 = vmatpush1.bf16.msra.mxu0 %v8496_v18  ;;  %7133 = vmatpush1.bf16.msra.mxu1 %v8498_v19  ;;  %v8611_v18 = vcombine.high %v467_v12, %v475_v14  ;;  %v482_v19 = vld [vmem:[#allocation5 + $0xaa0] sm:$0xff] }
 0x285   :  { %6970 = vmatprep.subr.bf16.mxu0 %v8513_v20  ;;  %7134 = vmatprep.subr.bf16.mxu1 %v8515_v60  ;;  %v490_v20 = vld [vmem:[#allocation5 + $0xae0] sm:$0xff]  ;;  %v483_v60 = vld [vmem:[#allocation5 + $0xaa8] sm:$0xff] }
 0x286   :  { %v8625_v25 = vcombine.high %v482_v19, %v490_v20  ;;  %v8624_v34 = vcombine.low %v482_v19, %v490_v20  ;;  %v8626_v36 = vcombine.low %v483_v60, %v491_v21  ;;  %v587_v19 = vld [vmem:[#allocation5 + $0xde8] sm:$0xff] }
 0x288   :  { %6971 = vmatpush1.bf16.msra.mxu0 %v8512_v28  ;;  %7135 = vmatpush1.bf16.msra.mxu1 %v8514_v29  ;;  %v8627_v28 = vcombine.high %v483_v60, %v491_v21  ;;  %v498_v29 = vld [vmem:[#allocation5 + $0xb20] sm:$0xff] }
 0x289   :  { %6972 = vmatprep.subr.bf16.mxu0 %v8529_v30  ;;  %7136 = vmatprep.subr.bf16.mxu1 %v8531_v31  ;;  %v506_v30 = vld [vmem:[#allocation5 + $0xb60] sm:$0xff]  ;;  %v499_v31 = vld [vmem:[#allocation5 + $0xb28] sm:$0xff] }
 0x28a   :  { %v8641_v37 = vcombine.high %v498_v29, %v506_v30  ;;  %v8640_v41 = vcombine.low %v498_v29, %v506_v30  ;;  %v8642_v44 = vcombine.low %v499_v31, %v507_v33  ;;  %v603_v29 = vld [vmem:[#allocation5 + $0xe68] sm:$0xff] }
 0x28c   :  { %6973 = vmatpush1.bf16.msra.mxu0 %v8528_v0  ;;  %7137 = vmatpush1.bf16.msra.mxu1 %v8530_v38  ;;  %v8643_v0 = vcombine.high %v499_v31, %v507_v33  ;;  %v514_v38 = vld [vmem:[#allocation5 + $0xba0] sm:$0xff] }
 0x28d   :  { %6983 = vmatprep.subr.bf16.mxu0 %v8545_v56  ;;  %7147 = vmatprep.subr.bf16.mxu1 %v8547_v39  ;;  %v522_v56 = vld [vmem:[#allocation5 + $0xbe0] sm:$0xff]  ;;  %v515_v39 = vld [vmem:[#allocation5 + $0xba8] sm:$0xff] }
 0x28e   :  { %v8657_v46 = vcombine.high %v514_v38, %v522_v56  ;;  %v8656_v17 = vcombine.low %v514_v38, %v522_v56  ;;  %v8658_v57 = vcombine.low %v515_v39, %v523_v40  ;;  %v619_v38 = vld [vmem:[#allocation5 + $0xee8] sm:$0xff] }
 0x28f   :  { %6975 = vmatmul.mubr.bf16.vlgmr.msra.gmra.mrb[8].mxu0 %v9645_v26  ;;  %7139 = vmatmul.mubr.bf16.vlgmr.msra.gmra.mrb[8].mxu1 %v9645_v26 }
 0x290   :  { %6984 = vmatpush1.bf16.msra.mxu0 %v8544_v47  ;;  %7148 = vmatpush1.bf16.msra.mxu1 %v8546_v48  ;;  %v8659_v47 = vcombine.high %v515_v39, %v523_v40  ;;  %v530_v48 = vld [vmem:[#allocation5 + $0xc20] sm:$0xff] }
 0x291   :  { %6985 = vmatprep.subr.bf16.mxu0 %v8561_v50  ;;  %7149 = vmatprep.subr.bf16.mxu1 %v8563_v51  ;;  %v538_v50 = vld [vmem:[#allocation5 + $0xc60] sm:$0xff]  ;;  %v531_v51 = vld [vmem:[#allocation5 + $0xc28] sm:$0xff] }
 0x292   :  { %7015 = vmatprep.mubr.bf16.mxu0 %v9647_v35  ;;  %7179 = vmatprep.mubr.bf16.mxu1 %v9647_v35  ;;  %v8673_v58 = vcombine.high %v530_v48, %v538_v50  ;;  %v8672_v1 = vcombine.low %v530_v48, %v538_v50  ;;  %v8674_v2 = vcombine.low %v531_v51, %v539_v53  ;;  %v635_v48 = vld [vmem:[#allocation5 + $0xf68] sm:$0xff] }
 0x294   :  { %6986 = vmatpush1.bf16.msra.mxu0 %v8560_v59  ;;  %7150 = vmatpush1.bf16.msra.mxu1 %v8562_v24  ;;  %v8675_v59 = vcombine.high %v531_v51, %v539_v53  ;;  %v546_v24 = vld [vmem:[#allocation5 + $0xca0] sm:$0xff] }
 0x295   :  { %6987 = vmatprep.subr.bf16.mxu0 %v8577_v61  ;;  %7151 = vmatprep.subr.bf16.mxu1 %v8579_v62  ;;  %v554_v61 = vld [vmem:[#allocation5 + $0xce0] sm:$0xff]  ;;  %v547_v62 = vld [vmem:[#allocation5 + $0xca8] sm:$0xff] }
 0x296   :  { %v8689_v4 = vcombine.high %v546_v24, %v554_v61  ;;  %v8688_v11 = vcombine.low %v546_v24, %v554_v61  ;;  %v8690_v12 = vcombine.low %v547_v62, %v555_v63  ;;  %v651_v24 = vld [vmem:[#allocation5 + $0xfe8] sm:$0xff] }
 0x298   :  { %6988 = vmatpush1.bf16.msra.mxu0 %v8576_v5  ;;  %7152 = vmatpush1.bf16.msra.mxu1 %v8578_v6  ;;  %v8691_v5 = vcombine.high %v547_v62, %v555_v63  ;;  %v562_v6 = vld [vmem:[#allocation5 + $0xd20] sm:$0xff] }
 0x299   :  { %6989 = vmatprep.subr.bf16.mxu0 %v8593_v7  ;;  %7153 = vmatprep.subr.bf16.mxu1 %v8595_v8  ;;  %v570_v7 = vld [vmem:[#allocation5 + $0xd60] sm:$0xff]  ;;  %v563_v8 = vld [vmem:[#allocation5 + $0xd28] sm:$0xff] }
 0x29a   :  { %v8705_v14 = vcombine.high %v562_v6, %v570_v7  ;;  %v8704_v20 = vcombine.low %v562_v6, %v570_v7  ;;  %v8706_v60 = vcombine.low %v563_v8, %v571_v9  ;;  %v667_v6 = vld [vmem:[#allocation5 + $0x1068] sm:$0xff] }
 0x29c   :  { %6990 = vmatpush1.bf16.msra.mxu0 %v8592_v15  ;;  %7154 = vmatpush1.bf16.msra.mxu1 %v8594_v32  ;;  %v8707_v15 = vcombine.high %v563_v8, %v571_v9  ;;  %v578_v32 = vld [vmem:[#allocation5 + $0xda0] sm:$0xff] }
 0x29d   :  { %6991 = vmatprep.subr.bf16.mxu0 %v8609_v16  ;;  %7155 = vmatprep.subr.bf16.mxu1 %v8611_v18  ;;  %v586_v16 = vld [vmem:[#allocation5 + $0xde0] sm:$0xff]  ;;  %v579_v18 = vld [vmem:[#allocation5 + $0xda8] sm:$0xff] }
 0x29e   :  { %v8721_v21 = vcombine.high %v578_v32, %v586_v16  ;;  %v8720_v30 = vcombine.low %v578_v32, %v586_v16  ;;  %v8722_v31 = vcombine.low %v579_v18, %v587_v19  ;;  %v683_v32 = vld [vmem:[#allocation5 + $0x10e8] sm:$0xff] }
 0x2a0   :  { %6992 = vmatpush1.bf16.msra.mxu0 %v8608_v22  ;;  %7156 = vmatpush1.bf16.msra.mxu1 %v8610_v23  ;;  %v8723_v22 = vcombine.high %v579_v18, %v587_v19  ;;  %v594_v23 = vld [vmem:[#allocation5 + $0xe20] sm:$0xff] }
 0x2a1   :  { %6993 = vmatprep.subr.bf16.mxu0 %v8625_v25  ;;  %7157 = vmatprep.subr.bf16.mxu1 %v8627_v28  ;;  %v602_v25 = vld [vmem:[#allocation5 + $0xe60] sm:$0xff]  ;;  %v595_v28 = vld [vmem:[#allocation5 + $0xe28] sm:$0xff] }
 0x2a2   :  { %v8737_v33 = vcombine.high %v594_v23, %v602_v25  ;;  %v8736_v56 = vcombine.low %v594_v23, %v602_v25  ;;  %v8738_v39 = vcombine.low %v595_v28, %v603_v29  ;;  %v699_v23 = vld [vmem:[#allocation5 + $0x1168] sm:$0xff] }
 0x2a4   :  { %6994 = vmatpush1.bf16.msra.mxu0 %v8624_v34  ;;  %7158 = vmatpush1.bf16.msra.mxu1 %v8626_v36  ;;  %v8739_v34 = vcombine.high %v595_v28, %v603_v29  ;;  %v610_v36 = vld [vmem:[#allocation5 + $0xea0] sm:$0xff] }
 0x2a5   :  { %6995 = vmatprep.subr.bf16.mxu0 %v8641_v37  ;;  %7159 = vmatprep.subr.bf16.mxu1 %v8643_v0  ;;  %v618_v37 = vld [vmem:[#allocation5 + $0xee0] sm:$0xff]  ;;  %v611_v0 = vld [vmem:[#allocation5 + $0xea8] sm:$0xff] }
 0x2a6   :  { %v8753_v40 = vcombine.high %v610_v36, %v618_v37  ;;  %v8752_v50 = vcombine.low %v610_v36, %v618_v37  ;;  %v8754_v51 = vcombine.low %v611_v0, %v619_v38  ;;  %v715_v36 = vld [vmem:[#allocation5 + $0x11e8] sm:$0xff] }
 0x2a8   :  { %6996 = vmatpush1.bf16.msra.mxu0 %v8640_v41  ;;  %7160 = vmatpush1.bf16.msra.mxu1 %v8642_v44  ;;  %v8755_v41 = vcombine.high %v611_v0, %v619_v38  ;;  %v626_v44 = vld [vmem:[#allocation5 + $0xf20] sm:$0xff] }
 0x2a9   :  { %6997 = vmatprep.subr.bf16.mxu0 %v8657_v46  ;;  %7161 = vmatprep.subr.bf16.mxu1 %v8659_v47  ;;  %v634_v46 = vld [vmem:[#allocation5 + $0xf60] sm:$0xff]  ;;  %v627_v47 = vld [vmem:[#allocation5 + $0xf28] sm:$0xff] }
 0x2aa   :  { %v8769_v53 = vcombine.high %v626_v44, %v634_v46  ;;  %v8768_v61 = vcombine.low %v626_v44, %v634_v46  ;;  %v8770_v62 = vcombine.low %v627_v47, %v635_v48  ;;  %v731_v44 = vld [vmem:[#allocation5 + $0x1268] sm:$0xff] }
 0x2ac   :  { %6998 = vmatpush1.bf16.msra.mxu0 %v8656_v17  ;;  %7162 = vmatpush1.bf16.msra.mxu1 %v8658_v57  ;;  %v8771_v17 = vcombine.high %v627_v47, %v635_v48  ;;  %v642_v57 = vld [vmem:[#allocation5 + $0xfa0] sm:$0xff] }
 0x2ad   :  { %6999 = vmatprep.subr.bf16.mxu0 %v8673_v58  ;;  %7163 = vmatprep.subr.bf16.mxu1 %v8675_v59  ;;  %v650_v58 = vld [vmem:[#allocation5 + $0xfe0] sm:$0xff]  ;;  %v643_v59 = vld [vmem:[#allocation5 + $0xfa8] sm:$0xff] }
 0x2ae   :  { %v8785_v63 = vcombine.high %v642_v57, %v650_v58  ;;  %v8784_v7 = vcombine.low %v642_v57, %v650_v58  ;;  %v8786_v8 = vcombine.low %v643_v59, %v651_v24  ;;  %v747_v57 = vld [vmem:[#allocation5 + $0x12e8] sm:$0xff] }
 0x2b0   :  { %7000 = vmatpush1.bf16.msra.mxu0 %v8672_v1  ;;  %7164 = vmatpush1.bf16.msra.mxu1 %v8674_v2  ;;  %v8787_v1 = vcombine.high %v643_v59, %v651_v24  ;;  %v658_v2 = vld [vmem:[#allocation5 + $0x1020] sm:$0xff] }
 0x2b1   :  { %7001 = vmatprep.subr.bf16.mxu0 %v8689_v4  ;;  %7165 = vmatprep.subr.bf16.mxu1 %v8691_v5  ;;  %v666_v4 = vld [vmem:[#allocation5 + $0x1060] sm:$0xff]  ;;  %v659_v5 = vld [vmem:[#allocation5 + $0x1028] sm:$0xff] }
 0x2b2   :  { %v8801_v9 = vcombine.high %v658_v2, %v666_v4  ;;  %v8800_v16 = vcombine.low %v658_v2, %v666_v4  ;;  %v8802_v18 = vcombine.low %v659_v5, %v667_v6  ;;  %v763_v2 = vld [vmem:[#allocation5 + $0x1368] sm:$0xff] }
 0x2b4   :  { %7002 = vmatpush1.bf16.msra.mxu0 %v8688_v11  ;;  %7166 = vmatpush1.bf16.msra.mxu1 %v8690_v12  ;;  %v8803_v11 = vcombine.high %v659_v5, %v667_v6  ;;  %v674_v12 = vld [vmem:[#allocation5 + $0x10a0] sm:$0xff] }
 0x2b5   :  { %7003 = vmatprep.subr.bf16.mxu0 %v8705_v14  ;;  %7167 = vmatprep.subr.bf16.mxu1 %v8707_v15  ;;  %v682_v14 = vld [vmem:[#allocation5 + $0x10e0] sm:$0xff]  ;;  %v675_v15 = vld [vmem:[#allocation5 + $0x10a8] sm:$0xff] }
 0x2b6   :  { %v8817_v19 = vcombine.high %v674_v12, %v682_v14  ;;  %v8816_v25 = vcombine.low %v674_v12, %v682_v14  ;;  %v8818_v28 = vcombine.low %v675_v15, %v683_v32  ;;  %v779_v12 = vld [vmem:[#allocation5 + $0x13e8] sm:$0xff] }
 0x2b8   :  { %7004 = vmatpush1.bf16.msra.mxu0 %v8704_v20  ;;  %7168 = vmatpush1.bf16.msra.mxu1 %v8706_v60  ;;  %v8819_v20 = vcombine.high %v675_v15, %v683_v32  ;;  %v690_v60 = vld [vmem:[#allocation5 + $0x1120] sm:$0xff] }
 0x2b9   :  { %7005 = vmatprep.subr.bf16.mxu0 %v8721_v21  ;;  %7169 = vmatprep.subr.bf16.mxu1 %v8723_v22  ;;  %v698_v21 = vld [vmem:[#allocation5 + $0x1160] sm:$0xff]  ;;  %v691_v22 = vld [vmem:[#allocation5 + $0x1128] sm:$0xff] }
 0x2ba   :  { %v8833_v29 = vcombine.high %v690_v60, %v698_v21  ;;  %v8832_v37 = vcombine.low %v690_v60, %v698_v21  ;;  %v8834_v0 = vcombine.low %v691_v22, %v699_v23  ;;  %v795_v60 = vld [vmem:[#allocation5 + $0x1468] sm:$0xff] }
 0x2bc   :  { %7006 = vmatpush1.bf16.msra.mxu0 %v8720_v30  ;;  %7170 = vmatpush1.bf16.msra.mxu1 %v8722_v31  ;;  %v8835_v30 = vcombine.high %v691_v22, %v699_v23  ;;  %v706_v31 = vld [vmem:[#allocation5 + $0x11a0] sm:$0xff] }
 0x2bd   :  { %7007 = vmatprep.subr.bf16.mxu0 %v8737_v33  ;;  %7171 = vmatprep.subr.bf16.mxu1 %v8739_v34  ;;  %v714_v33 = vld [vmem:[#allocation5 + $0x11e0] sm:$0xff]  ;;  %v707_v34 = vld [vmem:[#allocation5 + $0x11a8] sm:$0xff] }
 0x2be   :  { %v8849_v38 = vcombine.high %v706_v31, %v714_v33  ;;  %v8848_v46 = vcombine.low %v706_v31, %v714_v33  ;;  %v8850_v47 = vcombine.low %v707_v34, %v715_v36  ;;  %v811_v31 = vld [vmem:[#allocation5 + $0x14e8] sm:$0xff] }
 0x2c0   :  { %7008 = vmatpush1.bf16.msra.mxu0 %v8736_v56  ;;  %7172 = vmatpush1.bf16.msra.mxu1 %v8738_v39  ;;  %v8851_v56 = vcombine.high %v707_v34, %v715_v36  ;;  %v722_v39 = vld [vmem:[#allocation5 + $0x1220] sm:$0xff] }
 0x2c1   :  { %7009 = vmatprep.subr.bf16.mxu0 %v8753_v40  ;;  %7173 = vmatprep.subr.bf16.mxu1 %v8755_v41  ;;  %v730_v40 = vld [vmem:[#allocation5 + $0x1260] sm:$0xff]  ;;  %v723_v41 = vld [vmem:[#allocation5 + $0x1228] sm:$0xff] }
 0x2c2   :  { %v8865_v48 = vcombine.high %v722_v39, %v730_v40  ;;  %v8864_v58 = vcombine.low %v722_v39, %v730_v40  ;;  %v8866_v59 = vcombine.low %v723_v41, %v731_v44  ;;  %v827_v39 = vld [vmem:[#allocation5 + $0x1568] sm:$0xff] }
 0x2c4   :  { %7010 = vmatpush1.bf16.msra.mxu0 %v8752_v50  ;;  %7174 = vmatpush1.bf16.msra.mxu1 %v8754_v51  ;;  %v8867_v50 = vcombine.high %v723_v41, %v731_v44  ;;  %v738_v51 = vld [vmem:[#allocation5 + $0x12a0] sm:$0xff] }
 0x2c5   :  { %7011 = vmatprep.subr.bf16.mxu0 %v8769_v53  ;;  %7175 = vmatprep.subr.bf16.mxu1 %v8771_v17  ;;  %v746_v53 = vld [vmem:[#allocation5 + $0x12e0] sm:$0xff]  ;;  %v739_v17 = vld [vmem:[#allocation5 + $0x12a8] sm:$0xff] }
 0x2c6   :  { %v8881_v24 = vcombine.high %v738_v51, %v746_v53  ;;  %v8880_v4 = vcombine.low %v738_v51, %v746_v53  ;;  %v8882_v5 = vcombine.low %v739_v17, %v747_v57  ;;  %v843_v51 = vld [vmem:[#allocation5 + $0x15e8] sm:$0xff] }
 0x2c8   :  { %7012 = vmatpush1.bf16.msra.mxu0 %v8768_v61  ;;  %7176 = vmatpush1.bf16.msra.mxu1 %v8770_v62  ;;  %v8883_v61 = vcombine.high %v739_v17, %v747_v57  ;;  %v754_v62 = vld [vmem:[#allocation5 + $0x1320] sm:$0xff] }
 0x2c9   :  { %7013 = vmatprep.subr.bf16.mxu0 %v8785_v63  ;;  %7177 = vmatprep.subr.bf16.mxu1 %v8787_v1  ;;  %v762_v63 = vld [vmem:[#allocation5 + $0x1360] sm:$0xff]  ;;  %v755_v1 = vld [vmem:[#allocation5 + $0x1328] sm:$0xff] }
 0x2ca   :  { %v8897_v6 = vcombine.high %v754_v62, %v762_v63  ;;  %v8896_v14 = vcombine.low %v754_v62, %v762_v63  ;;  %v8898_v15 = vcombine.low %v755_v1, %v763_v2  ;;  %v859_v62 = vld [vmem:[#allocation5 + $0x1668] sm:$0xff] }
 0x2cc   :  { %7014 = vmatpush1.bf16.msra.mxu0 %v8784_v7  ;;  %7178 = vmatpush1.bf16.msra.mxu1 %v8786_v8  ;;  %v8899_v7 = vcombine.high %v755_v1, %v763_v2  ;;  %v770_v8 = vld [vmem:[#allocation5 + $0x13a0] sm:$0xff] }
 0x2cd   :  { %7024 = vmatprep.subr.bf16.mxu0 %v8801_v9  ;;  %7188 = vmatprep.subr.bf16.mxu1 %v8803_v11  ;;  %v778_v9 = vld [vmem:[#allocation5 + $0x13e0] sm:$0xff]  ;;  %v771_v11 = vld [vmem:[#allocation5 + $0x13a8] sm:$0xff] }
 0x2ce   :  { %v8913_v32 = vcombine.high %v770_v8, %v778_v9  ;;  %v8912_v21 = vcombine.low %v770_v8, %v778_v9  ;;  %v8914_v22 = vcombine.low %v771_v11, %v779_v12  ;;  %v875_v8 = vld [vmem:[#allocation5 + $0x16e8] sm:$0xff] }
 0x2cf   :  { %7016 = vmatmul.mubr.bf16.vlgmr.msra.gmra.mrb[8].mxu0 %v9666_v42  ;;  %7180 = vmatmul.mubr.bf16.vlgmr.msra.gmra.mrb[8].mxu1 %v9666_v42 }
 0x2d0   :  { %7025 = vmatpush1.bf16.msra.mxu0 %v8800_v16  ;;  %7189 = vmatpush1.bf16.msra.mxu1 %v8802_v18  ;;  %v8915_v16 = vcombine.high %v771_v11, %v779_v12  ;;  %v786_v18 = vld [vmem:[#allocation5 + $0x1420] sm:$0xff]  ;;  %v9732_v11 = vsub.s32 0, %v9616_v45 }
 0x2d1   :  { %7026 = vmatprep.subr.bf16.mxu0 %v8817_v19  ;;  %7190 = vmatprep.subr.bf16.mxu1 %v8819_v20  ;;  %v794_v19 = vld [vmem:[#allocation5 + $0x1460] sm:$0xff]  ;;  %v787_v20 = vld [vmem:[#allocation5 + $0x1428] sm:$0xff] }
 0x2d2   :  { %7056 = vmatprep.mubr.bf16.mxu0 %v9668_v52  ;;  %7220 = vmatprep.mubr.bf16.mxu1 %v9668_v52  ;;  %v8929_v23 = vcombine.high %v786_v18, %v794_v19  ;;  %v8928_v33 = vcombine.low %v786_v18, %v794_v19  ;;  %v8930_v34 = vcombine.low %v787_v20, %v795_v60  ;;  %v9743_v18 = vld [vmem:[#allocation9] sm:$0xff] }
 0x2d4   :  { %7027 = vmatpush1.bf16.msra.mxu0 %v8816_v25  ;;  %7191 = vmatpush1.bf16.msra.mxu1 %v8818_v28  ;;  %v8931_v25 = vcombine.high %v787_v20, %v795_v60  ;;  %v802_v28 = vld [vmem:[#allocation5 + $0x14a0] sm:$0xff] }
 0x2d5   :  { %7028 = vmatprep.subr.bf16.mxu0 %v8833_v29  ;;  %7192 = vmatprep.subr.bf16.mxu1 %v8835_v30  ;;  %v810_v29 = vld [vmem:[#allocation5 + $0x14e0] sm:$0xff]  ;;  %v803_v30 = vld [vmem:[#allocation5 + $0x14a8] sm:$0xff] }
 0x2d6   :  { %v8945_v36 = vcombine.high %v802_v28, %v810_v29  ;;  %v8944_v40 = vcombine.low %v802_v28, %v810_v29  ;;  %v8946_v41 = vcombine.low %v803_v30, %v811_v31  ;;  %v882_v20 = vld [vmem:[#allocation5 + $0x1720] sm:$0xff] }
 0x2d7   :  { %v890_v60 = vld [vmem:[#allocation5 + $0x1760] sm:$0xff] }
 0x2d8   :  { %7029 = vmatpush1.bf16.msra.mxu0 %v8832_v37  ;;  %7193 = vmatpush1.bf16.msra.mxu1 %v8834_v0  ;;  %v8947_v37 = vcombine.high %v803_v30, %v811_v31  ;;  %v818_v0 = vld [vmem:[#allocation5 + $0x1520] sm:$0xff]  ;;  %v9025_v29 = vcombine.high %v882_v20, %v890_v60 }
 0x2d9   :  { %7030 = vmatprep.subr.bf16.mxu0 %v8849_v38  ;;  %7194 = vmatprep.subr.bf16.mxu1 %v8851_v56  ;;  %v826_v38 = vld [vmem:[#allocation5 + $0x1560] sm:$0xff]  ;;  %v819_v56 = vld [vmem:[#allocation5 + $0x1528] sm:$0xff] }
 0x2da   :  { %v8961_v44 = vcombine.high %v818_v0, %v826_v38  ;;  %v8960_v53 = vcombine.low %v818_v0, %v826_v38  ;;  %v8962_v17 = vcombine.low %v819_v56, %v827_v39  ;;  %v899_v0 = vld [vmem:[#allocation5 + $0x17a8] sm:$0xff] }
 0x2db   :  { %v907_v38 = vld [vmem:[#allocation5 + $0x17e8] sm:$0xff] }
 0x2dc   :  { %7031 = vmatpush1.bf16.msra.mxu0 %v8848_v46  ;;  %7195 = vmatpush1.bf16.msra.mxu1 %v8850_v47  ;;  %v8963_v46 = vcombine.high %v819_v56, %v827_v39  ;;  %v834_v47 = vld [vmem:[#allocation5 + $0x15a0] sm:$0xff]  ;;  %v9024_v56 = vcombine.low %v882_v20, %v890_v60 }
 0x2dd   :  { %7032 = vmatprep.subr.bf16.mxu0 %v8865_v48  ;;  %7196 = vmatprep.subr.bf16.mxu1 %v8867_v50  ;;  %v842_v48 = vld [vmem:[#allocation5 + $0x15e0] sm:$0xff]  ;;  %v835_v50 = vld [vmem:[#allocation5 + $0x15a8] sm:$0xff] }
 0x2de   :  { %v8977_v57 = vcombine.high %v834_v47, %v842_v48  ;;  %v8976_v63 = vcombine.low %v834_v47, %v842_v48  ;;  %v8978_v1 = vcombine.low %v835_v50, %v843_v51  ;;  %v914_v47 = vld [vmem:[#allocation5 + $0x1820] sm:$0xff] }
 0x2df   :  { %v922_v48 = vld [vmem:[#allocation5 + $0x1860] sm:$0xff] }
 0x2e0   :  { %7033 = vmatpush1.bf16.msra.mxu0 %v8864_v58  ;;  %7197 = vmatpush1.bf16.msra.mxu1 %v8866_v59  ;;  %v8979_v58 = vcombine.high %v835_v50, %v843_v51  ;;  %v850_v59 = vld [vmem:[#allocation5 + $0x1620] sm:$0xff]  ;;  %v915_v50 = vld [vmem:[#allocation5 + $0x1828] sm:$0xff] }
 0x2e1   :  { %7034 = vmatprep.subr.bf16.mxu0 %v8881_v24  ;;  %7198 = vmatprep.subr.bf16.mxu1 %v8883_v61  ;;  %v858_v24 = vld [vmem:[#allocation5 + $0x1660] sm:$0xff]  ;;  %v851_v61 = vld [vmem:[#allocation5 + $0x1628] sm:$0xff] }
 0x2e2   :  { %v8993_v2 = vcombine.high %v850_v59, %v858_v24  ;;  %v8992_v9 = vcombine.low %v850_v59, %v858_v24  ;;  %v8994_v12 = vcombine.low %v851_v61, %v859_v62  ;;  %v923_v51 = vld [vmem:[#allocation5 + $0x1868] sm:$0xff] }
 0x2e3   :  { %v9059_v24 = vcombine.high %v915_v50, %v923_v51 }
 0x2e4   :  { %7035 = vmatpush1.bf16.msra.mxu0 %v8880_v4  ;;  %7199 = vmatpush1.bf16.msra.mxu1 %v8882_v5  ;;  %v8995_v4 = vcombine.high %v851_v61, %v859_v62  ;;  %v866_v5 = vld [vmem:[#allocation5 + $0x16a0] sm:$0xff] }
 0x2e5   :  { %7036 = vmatprep.subr.bf16.mxu0 %v8897_v6  ;;  %7200 = vmatprep.subr.bf16.mxu1 %v8899_v7  ;;  %v874_v6 = vld [vmem:[#allocation5 + $0x16e0] sm:$0xff]  ;;  %v867_v7 = vld [vmem:[#allocation5 + $0x16a8] sm:$0xff] }
 0x2e6   :  { %v9011_v19 = vcombine.high %v867_v7, %v875_v8  ;;  %v9010_v28 = vcombine.low %v867_v7, %v875_v8  ;;  %v930_v61 = vld [vmem:[#allocation5 + $0x18a0] sm:$0xff] }
 0x2e7   :  { %v938_v62 = vld [vmem:[#allocation5 + $0x18e0] sm:$0xff] }
 0x2e8   :  { %7037 = vmatpush1.bf16.msra.mxu0 %v8896_v14  ;;  %7201 = vmatpush1.bf16.msra.mxu1 %v8898_v15  ;;  %v9009_v14 = vcombine.high %v866_v5, %v874_v6  ;;  %v9735_v15 = vsub.s32 1, %v9616_v45 }
 0x2e9   :  { %7038 = vmatprep.subr.bf16.mxu0 %v8913_v32  ;;  %7202 = vmatprep.subr.bf16.mxu1 %v8915_v16  ;;  %v9738_v32 = vsub.s32 2, %v9616_v45  ;;  %v9741_v16 = vsub.s32 3, %v9616_v45 }
 0x2ea   :  { %v7854_v30 = vrot.slane %v9743_v18, %v9735_v15 }
 0x2eb   :  { %v7858_v31 = vrot.slane %v9743_v18, %v9738_v32 }
 0x2ec   :  { %7039 = vmatpush1.bf16.msra.mxu0 %v8912_v21  ;;  %7203 = vmatpush1.bf16.msra.mxu1 %v8914_v22  ;;  %v883_v21 = vld [vmem:[#allocation5 + $0x1728] sm:$0xff] }
 0x2ed   :  { %7040 = vmatprep.subr.bf16.mxu0 %v8929_v23  ;;  %7204 = vmatprep.subr.bf16.mxu1 %v8931_v25  ;;  %v891_v22 = vld [vmem:[#allocation5 + $0x1768] sm:$0xff]  ;;  %v9008_v23 = vcombine.low %v866_v5, %v874_v6  ;;  %v7850_v25 = vrot.slane %v9743_v18, %v9732_v11  ;;  %v9058_v5 = vcombine.low %v915_v50, %v923_v51 }
 0x2ee   :  { %v9026_v39 = vcombine.low %v883_v21, %v891_v22  ;;  %v9073_v6 = vcombine.high %v930_v61, %v938_v62 }
 0x2f0   :  { %7041 = vmatpush1.bf16.msra.mxu0 %v8928_v33  ;;  %7205 = vmatpush1.bf16.msra.mxu1 %v8930_v34  ;;  %v7862_v33 = vrot.slane %v9743_v18, %v9741_v16  ;;  %v9027_v34 = vcombine.high %v883_v21, %v891_v22  ;;  %v9072_v21 = vcombine.low %v930_v61, %v938_v62 }
 0x2f1   :  { %7042 = vmatprep.subr.bf16.mxu0 %v8945_v36  ;;  %7206 = vmatprep.subr.bf16.mxu1 %v8947_v37  ;;  %v898_v36 = vld [vmem:[#allocation5 + $0x17a0] sm:$0xff] }
 0x2f2   :  { %v906_v37 = vld [vmem:[#allocation5 + $0x17e0] sm:$0xff] }
 0x2f4   :  { %7043 = vmatpush1.bf16.msra.mxu0 %v8944_v40  ;;  %7207 = vmatpush1.bf16.msra.mxu1 %v8946_v41  ;;  %v9041_v40 = vcombine.high %v898_v36, %v906_v37  ;;  %v7911_v41 = vcombine.low %v7850_v25, %v7854_v30 }
 0x2f5   :  { %7044 = vmatprep.subr.bf16.mxu0 %v8961_v44  ;;  %7208 = vmatprep.subr.bf16.mxu1 %v8963_v46  ;;  %v7912_v44 = vcombine.low %v7858_v31, %v7862_v33  ;;  %v9043_v46 = vcombine.high %v899_v0, %v907_v38  ;;  %v962_v31 = vld [vmem:[#allocation5 + $0x19a0] sm:$0xff] }
 0x2f6   :  { %v970_v33 = vld [vmem:[#allocation5 + $0x19e0] sm:$0xff] }
 0x2f7   :  { %v7926_v59 = vrot.slane %v7912_v44, %v9619_v54  ;;  %v9105_v43 = vcombine.high %v962_v31, %v970_v33  ;;  %v9773_v44 = vsub.s32 4, %v9616_v45  ;;  %v9104_v50 = vcombine.low %v962_v31, %v970_v33  ;;  %v1034_v31 = vld [vmem:[#allocation5 + $0x1be0] sm:$0xff] }
 0x2f8   :  { %7045 = vmatpush1.bf16.msra.mxu0 %v8960_v53  ;;  %7209 = vmatpush1.bf16.msra.mxu1 %v8962_v17  ;;  %v9040_v53 = vcombine.low %v898_v36, %v906_v37  ;;  %v9042_v17 = vcombine.low %v899_v0, %v907_v38  ;;  %v971_v36 = vld [vmem:[#allocation5 + $0x19e8] sm:$0xff] }
 0x2f9   :  { %7046 = vmatprep.subr.bf16.mxu0 %v8977_v57  ;;  %7210 = vmatprep.subr.bf16.mxu1 %v8979_v58  ;;  %v9057_v57 = vcombine.high %v914_v47, %v922_v48  ;;  %v7919_v58 = vrot.slane %v7911_v41, %v9619_v54  ;;  %v987_v41 = vld [vmem:[#allocation5 + $0x1a68] sm:$0xff]  ;;  %v7866_v61 = vrot.slane %v9743_v18, %v9773_v44 }
 0x2fb   :  { %v7927_v7 = vcombine.low %v7919_v58, %v7926_v59  ;;  %v994_v59 = vld [vmem:[#allocation5 + $0x1aa0] sm:$0xff] }
 0x2fc   :  { %7047 = vmatpush1.bf16.msra.mxu0 %v8976_v63  ;;  %7211 = vmatpush1.bf16.msra.mxu1 %v8978_v1  ;;  %v931_v63 = vld [vmem:[#allocation5 + $0x18a8] sm:$0xff] }
 0x2fd   :  { %7048 = vmatprep.subr.bf16.mxu0 %v8993_v2  ;;  %7212 = vmatprep.subr.bf16.mxu1 %v8995_v4  ;;  %v939_v1 = vld [vmem:[#allocation5 + $0x18e8] sm:$0xff]  ;;  %v9056_v2 = vcombine.low %v914_v47, %v922_v48  ;;  %v9755_v4 = vld [vmem:[#allocation10] sm:$0xff]  ;;  %v9779_v47 = vsub.s32 6, %v9616_v45  ;;  %v9782_v48 = vsub.s32 7, %v9616_v45 }
 0x2fe   :  { %v9075_v8 = vcombine.high %v931_v63, %v939_v1  ;;  %v7998_v20 = vrot.slane %v9755_v4, %v9732_v11  ;;  %v8002_v60 = vrot.slane %v9755_v4, %v9735_v15  ;;  %v8006_v22 = vrot.slane %v9755_v4, %v9738_v32 }
 0x2ff   :  { %v7874_v62 = vrot.slane %v9743_v18, %v9779_v47 }
 0x300   :  { %7049 = vmatpush1.bf16.msra.mxu0 %v8992_v9  ;;  %7213 = vmatpush1.bf16.msra.mxu1 %v8994_v12  ;;  %v946_v9 = vld [vmem:[#allocation5 + $0x1920] sm:$0xff]  ;;  %v8059_v49 = vcombine.low %v7998_v20, %v8002_v60  ;;  %v1011_v60 = vld [vmem:[#allocation5 + $0x1b28] sm:$0xff] }
 0x301   :  { %7050 = vmatprep.subr.bf16.mxu0 %v9009_v14  ;;  %7214 = vmatprep.subr.bf16.mxu1 %v9011_v19  ;;  %v954_v12 = vld [vmem:[#allocation5 + $0x1960] sm:$0xff]  ;;  %v947_v14 = vld [vmem:[#allocation5 + $0x1928] sm:$0xff] }
 0x302   :  { %v955_v19 = vld [vmem:[#allocation5 + $0x1968] sm:$0xff]  ;;  %v9089_v25 = vcombine.high %v946_v9, %v954_v12  ;;  %v9088_v37 = vcombine.low %v946_v9, %v954_v12  ;;  %v1010_v9 = vld [vmem:[#allocation5 + $0x1b20] sm:$0xff] }
 0x303   :  { %v9091_v30 = vcombine.high %v947_v14, %v955_v19  ;;  %v9090_v0 = vcombine.low %v947_v14, %v955_v19  ;;  %v1018_v12 = vld [vmem:[#allocation5 + $0x1b60] sm:$0xff] }
 0x304   :  { %7051 = vmatpush1.bf16.msra.mxu0 %v9008_v23  ;;  %7215 = vmatpush1.bf16.msra.mxu1 %v9010_v28  ;;  %v9074_v23 = vcombine.low %v931_v63, %v939_v1  ;;  %v7983_v28 = vadd.f32 %v7927_v7, %v7630_v55  ;;  %v7878_v63 = vrot.slane %v9743_v18, %v9782_v48  ;;  %v995_v1 = vld [vmem:[#allocation5 + $0x1aa8] sm:$0xff] }
 0x305   :  { %7052 = vmatprep.subr.bf16.mxu0 %v9025_v29  ;;  %7216 = vmatprep.subr.bf16.mxu1 %v9027_v34  ;;  %v8010_v29 = vrot.slane %v9755_v4, %v9741_v16  ;;  %v963_v34 = vld [vmem:[#allocation5 + $0x19a8] sm:$0xff] }
 0x306   :  { %9411 = vtanh.f32 %v7983_v28  ;;  %v9107_v38 = vcombine.high %v963_v34, %v971_v36  ;;  %v9106_v51 = vcombine.low %v963_v34, %v971_v36  ;;  %v7929_v20 = vcombine.low %v7874_v62, %v7878_v63 }
 0x307   :  { %v8060_v55 = vcombine.low %v8006_v22, %v8010_v29 }
 0x308   :  { %7053 = vmatpush1.bf16.msra.mxu0 %v9024_v56  ;;  %7217 = vmatpush1.bf16.msra.mxu1 %v9026_v39  ;;  %v978_v56 = vld [vmem:[#allocation5 + $0x1a20] sm:$0xff] }
 0x309   :  { %7054 = vmatprep.subr.bf16.mxu0 %v9041_v40  ;;  %7218 = vmatprep.subr.bf16.mxu1 %v9043_v46  ;;  %v986_v39 = vld [vmem:[#allocation5 + $0x1a60] sm:$0xff]  ;;  %v979_v40 = vld [vmem:[#allocation5 + $0x1a28] sm:$0xff]  ;;  %v9776_v46 = vsub.s32 5, %v9616_v45 }
 0x30a   :  { %v9123_v58 = vcombine.high %v979_v40, %v987_v41 }
 0x30b   :  { %v7870_v45 = vrot.slane %v9743_v18, %v9776_v46 }
 0x30c   :  { %7055 = vmatpush1.bf16.msra.mxu0 %v9040_v53  ;;  %7219 = vmatpush1.bf16.msra.mxu1 %v9042_v17  ;;  %v9121_v53 = vcombine.high %v978_v56, %v986_v39  ;;  %v8067_v17 = vrot.slane %v8059_v49, %v9619_v54  ;;  %v1035_v49 = vld [vmem:[#allocation5 + $0x1be8] sm:$0xff] }
 0x30d   :  { %7065 = vmatprep.subr.bf16.mxu0 %v9057_v57  ;;  %7229 = vmatprep.subr.bf16.mxu1 %v9059_v24  ;;  %v8074_v57 = vrot.slane %v8060_v55, %v9619_v54  ;;  %v1002_v24 = vld [vmem:[#allocation5 + $0x1ae0] sm:$0xff]  ;;  %v7928_v19 = vcombine.low %v7866_v61, %v7870_v45 }
 0x30e   :  { %v9137_v7 = vcombine.high %v994_v59, %v1002_v24  ;;  %v9136_v18 = vcombine.low %v994_v59, %v1002_v24  ;;  %v1042_v59 = vld [vmem:[#allocation5 + $0x1c20] sm:$0xff] }
 0x30f   :  { %7057 = vmatmul.mubr.bf16.vlgmr.msra.gmra.mrb[8].mxu0 %v9683_v3  ;;  %7221 = vmatmul.mubr.bf16.vlgmr.msra.gmra.mrb[8].mxu1 %v9683_v3  ;;  %v8075_v14 = vcombine.low %v8067_v17, %v8074_v57  ;;  %v1050_v24 = vld [vmem:[#allocation5 + $0x1c60] sm:$0xff] }
 0x310   :  { %7066 = vmatpush1.bf16.msra.mxu0 %v9056_v2  ;;  %7230 = vmatpush1.bf16.msra.mxu1 %v9058_v5  ;;  %v1003_v2 = vld [vmem:[#allocation5 + $0x1ae8] sm:$0xff]  ;;  %v9120_v5 = vcombine.low %v978_v56, %v986_v39  ;;  %v9412_v22 = vpop.eup %9411  ;;  %v9152_v39 = vcombine.low %v1010_v9, %v1018_v12 }
 0x311   :  { %7067 = vmatprep.subr.bf16.mxu0 %v9073_v6  ;;  %7231 = vmatprep.subr.bf16.mxu1 %v9075_v8  ;;  %v9122_v6 = vcombine.low %v979_v40, %v987_v41  ;;  %v9139_v8 = vcombine.high %v995_v1, %v1003_v2  ;;  %v9794_v33 = vmul.f32 %v9412_v22, %v8075_v14  ;;  %v1059_v22 = vld [vmem:[#allocation5 + $0x1ca8] sm:$0xff] }
 0x312   :  { %7097 = vmatprep.mubr.bf16.mxu0 %v9685_v13  ;;  %7261 = vmatprep.mubr.bf16.mxu1 %v9685_v13  ;;  %v9185_v14 = vcombine.high %v1042_v59, %v1050_v24 }
 0x313   :  { %v8146_v61 = vrot.slane %v9794_v33, %v9619_v54 }
 0x314   :  { %7068 = vmatpush1.bf16.msra.mxu0 %v9072_v21  ;;  %7232 = vmatpush1.bf16.msra.mxu1 %v9074_v23  ;;  %v1019_v21 = vld [vmem:[#allocation5 + $0x1b68] sm:$0xff]  ;;  %v9138_v23 = vcombine.low %v995_v1, %v1003_v2 }
 0x315   :  { %7069 = vmatprep.subr.bf16.mxu0 %v9089_v25  ;;  %7233 = vmatprep.subr.bf16.mxu1 %v9091_v30  ;;  %v9153_v25 = vcombine.high %v1010_v9, %v1018_v12  ;;  %v9155_v29 = vcombine.high %v1011_v60, %v1019_v21  ;;  %v1026_v30 = vld [vmem:[#allocation5 + $0x1ba0] sm:$0xff]  ;;  %v1043_v1 = vld [vmem:[#allocation5 + $0x1c28] sm:$0xff] }
 0x316   :  { %v9168_v63 = vcombine.low %v1026_v30, %v1034_v31  ;;  %v1051_v2 = vld [vmem:[#allocation5 + $0x1c68] sm:$0xff] }
 0x318   :  { %7070 = vmatpush1.bf16.msra.mxu0 %v9088_v37  ;;  %7234 = vmatpush1.bf16.msra.mxu1 %v9090_v0  ;;  %v7936_v37 = vrot.slane %v7928_v19, %v9619_v54  ;;  %v7943_v0 = vrot.slane %v7929_v20, %v9619_v54  ;;  %v9187_v19 = vcombine.high %v1043_v1, %v1051_v2  ;;  %v1058_v20 = vld [vmem:[#allocation5 + $0x1ca0] sm:$0xff] }
 0x319   :  { %7071 = vmatprep.subr.bf16.mxu0 %v9105_v43  ;;  %7235 = vmatprep.subr.bf16.mxu1 %v9107_v38  ;;  %v1027_v43 = vld [vmem:[#allocation5 + $0x1ba8] sm:$0xff] }
 0x31a   :  { %v7944_v62 = vcombine.low %v7936_v37, %v7943_v0  ;;  %v9170_v12 = vcombine.low %v1027_v43, %v1035_v49  ;;  %v1082_v37 = vld [vmem:[#allocation5 + $0x1d60] sm:$0xff]  ;;  %v1075_v0 = vld [vmem:[#allocation5 + $0x1d28] sm:$0xff] }
 0x31c   :  { %7072 = vmatpush1.bf16.msra.mxu0 %v9104_v50  ;;  %7236 = vmatpush1.bf16.msra.mxu1 %v9106_v51  ;;  %v9154_v51 = vcombine.low %v1011_v60, %v1019_v21  ;;  %v1066_v60 = vld [vmem:[#allocation5 + $0x1ce0] sm:$0xff] }
 0x31d   :  { %7073 = vmatprep.subr.bf16.mxu0 %v9121_v53  ;;  %7237 = vmatprep.subr.bf16.mxu1 %v9123_v58  ;;  %v9169_v53 = vcombine.high %v1026_v30, %v1034_v31  ;;  %v9171_v58 = vcombine.high %v1027_v43, %v1035_v49  ;;  %v9201_v30 = vcombine.high %v1058_v20, %v1066_v60  ;;  %v1083_v43 = vld [vmem:[#allocation5 + $0x1d68] sm:$0xff] }
 0x31e   :  { %v8139_v31 = vcombine.high %v9794_v33, %v9794_v33 }
 0x320   :  { %7074 = vmatpush1.bf16.msra.mxu0 %v9120_v5  ;;  %7238 = vmatpush1.bf16.msra.mxu1 %v9122_v6  ;;  %v8014_v5 = vrot.slane %v9755_v4, %v9773_v44  ;;  %v8018_v6 = vrot.slane %v9755_v4, %v9776_v46  ;;  %v8153_v33 = vrot.slane %v8139_v31, %v9619_v54 }
 0x321   :  { %7075 = vmatprep.subr.bf16.mxu0 %v9137_v7  ;;  %7239 = vmatprep.subr.bf16.mxu1 %v9139_v8  ;;  %v8022_v7 = vrot.slane %v9755_v4, %v9779_v47  ;;  %v8026_v8 = vrot.slane %v9755_v4, %v9782_v48  ;;  %v9186_v4 = vcombine.low %v1043_v1, %v1051_v2 }
 0x322   :  { %v6771_v28 = vpop.f32.mrb[4].mxu0  ;;  %v6935_v34 = vpop.f32.mrb[4].mxu1  ;;  %v8227_v1 = vsel %vm7815_vm0, %v8153_v33, 0.0 }
 0x323   :  { %v6773_v36 = vpop.f32.mrb[5].mxu0  ;;  %v6937_v38 = vpop.f32.mrb[5].mxu1 }
 0x324   :  { %v7631_v55 = vcombine.low %v6771_v28, %v6773_v36  ;;  %v6775_v56 = vpop.f32.mrb[6].mxu0  ;;  %7076 = vmatpush1.bf16.msra.mxu0 %v9136_v18  ;;  %v7632_v40 = vcombine.low %v6935_v34, %v6937_v38  ;;  %v6939_v41 = vpop.f32.mrb[6].mxu1  ;;  %7240 = vmatpush1.bf16.msra.mxu1 %v9138_v23  ;;  %v1067_v18 = vld [vmem:[#allocation5 + $0x1ce8] sm:$0xff]  ;;  %v8154_v23 = vcombine.high %v8146_v61, %v8146_v61  ;;  %v1074_v36 = vld [vmem:[#allocation5 + $0x1d20] sm:$0xff] }
 0x325   :  { %v6776_v50 = vpop.f32.mrb[7].mxu0  ;;  %7077 = vmatprep.subr.bf16.mxu0 %v9153_v25  ;;  %v6940_v57 = vpop.f32.mrb[7].mxu1  ;;  %7241 = vmatprep.subr.bf16.mxu1 %v9155_v29  ;;  %v8076_v25 = vcombine.low %v8014_v5, %v8018_v6  ;;  %v8077_v28 = vcombine.low %v8022_v7, %v8026_v8  ;;  %v9184_v29 = vcombine.low %v1042_v59, %v1050_v24  ;;  %v8224_v41 = vsel %vm7815_vm0, %v8146_v61, 0.0  ;;  %v1106_v61 = vld [vmem:[#allocation5 + $0x1e20] sm:$0xff]  ;;  %v1107_v8 = vld [vmem:[#allocation5 + $0x1e28] sm:$0xff] }
 0x326   :  { %v7639_v17 = vrot.slane %v7631_v55, %v9619_v54  ;;  %v7646_v45 = vrot.slane %v7632_v40, %v9619_v54  ;;  %v9203_v34 = vcombine.high %v1059_v22, %v1067_v18  ;;  %v8225_v49 = vsel %vm7815_vm0, %v8154_v23, 0.0  ;;  %v1091_v57 = vld [vmem:[#allocation5 + $0x1da8] sm:$0xff]  ;;  %v1114_v5 = vld [vmem:[#allocation5 + $0x1e60] sm:$0xff] }
 0x327   :  { %v8084_v55 = vrot.slane %v8076_v25, %v9619_v54  ;;  %v8091_v38 = vrot.slane %v8077_v28, %v9619_v54  ;;  %v9200_v56 = vcombine.low %v1058_v20, %v1066_v60  ;;  %v9217_v40 = vcombine.high %v1074_v36, %v1082_v37  ;;  %v1122_v23 = vld [vmem:[#allocation5 + $0x1ea0] sm:$0xff] }
 0x328   :  { %7078 = vmatpush1.bf16.msra.mxu0 %v9152_v39  ;;  %v7647_v9 = vcombine.low %v7639_v17, %v7646_v45  ;;  %7242 = vmatpush1.bf16.msra.mxu1 %v9154_v51  ;;  %v9202_v39 = vcombine.low %v1059_v22, %v1067_v18  ;;  %v9219_v50 = vcombine.high %v1075_v0, %v1083_v43  ;;  %v1090_v51 = vld [vmem:[#allocation5 + $0x1da0] sm:$0xff] }
 0x329   :  { %7079 = vmatprep.subr.bf16.mxu0 %v9169_v53  ;;  %7243 = vmatprep.subr.bf16.mxu1 %v9171_v58  ;;  %v1098_v53 = vld [vmem:[#allocation5 + $0x1de0] sm:$0xff]  ;;  %v8226_v17 = vadd.f32 %v8225_v49, %v8224_v41  ;;  %v1099_v58 = vld [vmem:[#allocation5 + $0x1de8] sm:$0xff]  ;;  %v8092_v59 = vcombine.low %v8084_v55, %v8091_v38  ;;  %v9216_v24 = vcombine.low %v1074_v36, %v1082_v37 }
 0x32a   :  { %v7984_v21 = vadd.f32 %v7944_v62, %v7647_v9  ;;  %v9218_v45 = vcombine.low %v1075_v0, %v1083_v43  ;;  %v9233_v62 = vcombine.high %v1090_v51, %v1098_v53  ;;  %v9235_v2 = vcombine.high %v1091_v57, %v1099_v58  ;;  %v1115_v9 = vld [vmem:[#allocation5 + $0x1e68] sm:$0xff]  ;;  %v1130_v25 = vld [vmem:[#allocation5 + $0x1ee0] sm:$0xff] }
 0x32b   :  { %v8228_v7 = vadd.f32 %v8227_v1, %v8226_v17  ;;  %v9249_v20 = vcombine.high %v1106_v61, %v1114_v5  ;;  %v9251_v18 = vcombine.high %v1107_v8, %v1115_v9  ;;  %v9248_v36 = vcombine.low %v1106_v61, %v1114_v5  ;;  %v1138_v55 = vld [vmem:[#allocation5 + $0x1f20] sm:$0xff] }
 0x32c   :  { %7080 = vmatpush1.bf16.msra.mxu0 %v9168_v63  ;;  %9413 = vtanh.f32 %v7984_v21  ;;  %7244 = vmatpush1.bf16.msra.mxu1 %v9170_v12  ;;  %v8155_v63 = vcombine.high %v8153_v33, %v8153_v33  ;;  %v9250_v0 = vcombine.low %v1107_v8, %v1115_v9  ;;  %v9265_v43 = vcombine.high %v1122_v23, %v1130_v25  ;;  %v1146_v38 = vld [vmem:[#allocation5 + $0x1f60] sm:$0xff]  ;;  %v1147_v33 = vld [vmem:[#allocation5 + $0x1f68] sm:$0xff]  ;;  %v156_v8 = vld [vmem:[#allocation5 + $0x70] sm:$0xff] }
 0x32d   :  { %7081 = vmatprep.subr.bf16.mxu0 %v9185_v14  ;;  %7245 = vmatprep.subr.bf16.mxu1 %v9187_v19  ;;  %v9232_v14 = vcombine.low %v1090_v51, %v1098_v53  ;;  %v9234_v19 = vcombine.low %v1091_v57, %v1099_v58  ;;  %v9281_v17 = vcombine.high %v1138_v55, %v1146_v38  ;;  %v149_v9 = vld [vmem:[#allocation5 + $0x38] sm:$0xff] }
 0x32e   :  { %v8229_v22 = vsel %vm7815_vm0, %v8155_v63, 0.0  ;;  %v1163_v63 = vld [vmem:[#allocation5 + $0x1fe8] sm:$0xff] }
 0x32f   :  { %v8230_v28 = vadd.f32 %v8229_v22, %v8228_v7  ;;  %v148_v7 = vld [vmem:[#allocation5 + $0x30] sm:$0xff] }
 0x330   :  { %7082 = vmatpush1.bf16.msra.mxu0 %v9184_v29  ;;  %7246 = vmatpush1.bf16.msra.mxu1 %v9186_v4  ;;  %v1123_v29 = vld [vmem:[#allocation5 + $0x1ea8] sm:$0xff]  ;;  %v172_v22 = vld [vmem:[#allocation5 + $0xf0] sm:$0xff] }
 0x331   :  { %7083 = vmatprep.subr.bf16.mxu0 %v9201_v30  ;;  %7247 = vmatprep.subr.bf16.mxu1 %v9203_v34  ;;  %v1131_v4 = vld [vmem:[#allocation5 + $0x1ee8] sm:$0xff] }
 0x332   :  { %v9267_v49 = vcombine.high %v1123_v29, %v1131_v4  ;;  %v9266_v53 = vcombine.low %v1123_v29, %v1131_v4 }
 0x334   :  { %7084 = vmatpush1.bf16.msra.mxu0 %v9200_v56  ;;  %7248 = vmatpush1.bf16.msra.mxu1 %v9202_v39 }
 0x335   :  { %7085 = vmatprep.subr.bf16.mxu0 %v9217_v40  ;;  %7249 = vmatprep.subr.bf16.mxu1 %v9219_v50  ;;  %v1139_v40 = vld [vmem:[#allocation5 + $0x1f28] sm:$0xff]  ;;  %v9264_v50 = vcombine.low %v1122_v23, %v1130_v25  ;;  %v173_v23 = vld [vmem:[#allocation5 + $0xf8] sm:$0xff]  ;;  %v8292_v25 = vcombine.low %v148_v7, %v156_v8 }
 0x336   :  { %v9414_v6 = vpop.eup %9413  ;;  %v9283_v58 = vcombine.high %v1139_v40, %v1147_v33  ;;  %v9282_v61 = vcombine.low %v1139_v40, %v1147_v33 }
 0x337   :  { %v8132_v12 = vmul.f32 %v9414_v6, %v8092_v59  ;;  %v1154_v59 = vld [vmem:[#allocation5 + $0x1fa0] sm:$0xff] }
 0x338   :  { %7086 = vmatpush1.bf16.msra.mxu0 %v9216_v24  ;;  %7250 = vmatpush1.bf16.msra.mxu1 %v9218_v45  ;;  %v1162_v24 = vld [vmem:[#allocation5 + $0x1fe0] sm:$0xff] }
 0x339   :  { %7087 = vmatprep.subr.bf16.mxu0 %v9233_v62  ;;  %v8156_v60 = vcombine.high %v8132_v12, %v8132_v12  ;;  %v8163_v21 = vrot.slane %v8132_v12, %v9619_v54  ;;  %7251 = vmatprep.subr.bf16.mxu1 %v9235_v2  ;;  %v1155_v62 = vld [vmem:[#allocation5 + $0x1fa8] sm:$0xff]  ;;  %v9280_v2 = vcombine.low %v1138_v55, %v1146_v38  ;;  %v157_v12 = vld [vmem:[#allocation5 + $0x78] sm:$0xff]  ;;  %v196_v55 = vld [vmem:[#allocation5 + $0x1b0] sm:$0xff] }
 0x33a   :  { %v9297_v5 = vcombine.high %v1154_v59, %v1162_v24  ;;  %v9299_v6 = vcombine.high %v1155_v62, %v1163_v63  ;;  %v204_v38 = vld [vmem:[#allocation5 + $0x1f0] sm:$0xff] }
 0x33b   :  { %v8170_v30 = vrot.slane %v8156_v60, %v9619_v54  ;;  %v8171_v31 = vcombine.high %v8163_v21, %v8163_v21  ;;  %v8231_v34 = vsel %vm7815_vm0, %v8163_v21, 0.0  ;;  %v8295_v60 = vcombine.high %v149_v9, %v157_v12  ;;  %v164_v21 = vld [vmem:[#allocation5 + $0xb0] sm:$0xff] }
 0x33c   :  { %7088 = vmatpush1.bf16.msra.mxu0 %v9232_v14  ;;  %v8232_v37 = vadd.f32 %v8231_v34, %v8230_v28  ;;  %7252 = vmatpush1.bf16.msra.mxu1 %v9234_v19  ;;  %v9296_v14 = vcombine.low %v1154_v59, %v1162_v24  ;;  %v9298_v19 = vcombine.low %v1155_v62, %v1163_v63  ;;  %v181_v34 = vld [vmem:[#allocation5 + $0x138] sm:$0xff]  ;;  %v236_v62 = vld [vmem:[#allocation5 + $0x2f0] sm:$0xff] }
 0x33d   :  { %7089 = vmatprep.subr.bf16.mxu0 %v9249_v20  ;;  %7253 = vmatprep.subr.bf16.mxu1 %v9251_v18  ;;  %v8172_v56 = vcombine.high %v8170_v30, %v8170_v30  ;;  %v8233_v39 = vsel %vm7815_vm0, %v8171_v31, 0.0  ;;  %v8235_v51 = vsel %vm7815_vm0, %v8170_v30, 0.0  ;;  %v8293_v20 = vcombine.high %v148_v7, %v156_v8  ;;  %v165_v18 = vld [vmem:[#allocation5 + $0xb8] sm:$0xff]  ;;  %v180_v30 = vld [vmem:[#allocation5 + $0x130] sm:$0xff] }
 0x33e   :  { %v8234_v41 = vadd.f32 %v8233_v39, %v8232_v37  ;;  %v8294_v28 = vcombine.low %v149_v9, %v157_v12  ;;  %v8309_v29 = vcombine.high %v164_v21, %v172_v22  ;;  %v8311_v4 = vcombine.high %v165_v18, %v173_v23  ;;  %v188_v31 = vld [vmem:[#allocation5 + $0x170] sm:$0xff]  ;;  %v205_v39 = vld [vmem:[#allocation5 + $0x1f8] sm:$0xff] }
 0x33f   :  { %v8237_v45 = vsel %vm7815_vm0, %v8172_v56, 0.0  ;;  %v8308_v37 = vcombine.low %v164_v21, %v172_v22  ;;  %v197_v56 = vld [vmem:[#allocation5 + $0x1b8] sm:$0xff]  ;;  %v8324_v40 = vcombine.low %v180_v30, %v188_v31  ;;  %v244_v8 = vld [vmem:[#allocation5 + $0x330] sm:$0xff] }
 0x340   :  { %7090 = vmatpush1.bf16.msra.mxu0 %v9248_v36  ;;  %7254 = vmatpush1.bf16.msra.mxu1 %v9250_v0  ;;  %v8236_v57 = vadd.f32 %v8235_v51, %v8234_v41  ;;  %v189_v36 = vld [vmem:[#allocation5 + $0x178] sm:$0xff]  ;;  %v8310_v0 = vcombine.low %v165_v18, %v173_v23  ;;  %v8341_v41 = vcombine.high %v196_v55, %v204_v38  ;;  %v212_v51 = vld [vmem:[#allocation5 + $0x230] sm:$0xff] }
 0x341   :  { %7091 = vmatprep.subr.bf16.mxu0 %v9265_v43  ;;  %7255 = vmatprep.subr.bf16.mxu1 %v9267_v49  ;;  %v8325_v43 = vcombine.high %v180_v30, %v188_v31  ;;  %v8327_v49 = vcombine.high %v181_v34, %v189_v36  ;;  %v8326_v33 = vcombine.low %v181_v34, %v189_v36  ;;  %v229_v63 = vld [vmem:[#allocation5 + $0x2b8] sm:$0xff]  ;;  %v252_v9 = vld [vmem:[#allocation5 + $0x370] sm:$0xff] }
 0x342   :  { %v9825_v1 = vadd.f32 %v8237_v45, %v8236_v57  ;;  %v221_v57 = vld [vmem:[#allocation5 + $0x278] sm:$0xff]  ;;  %v8342_v59 = vcombine.low %v197_v56, %v205_v39  ;;  %v228_v45 = vld [vmem:[#allocation5 + $0x2b0] sm:$0xff] }
 0x343   :  { %v245_v12 = vld [vmem:[#allocation5 + $0x338] sm:$0xff]  ;;  %v260_v22 = vld [vmem:[#allocation5 + $0x3b0] sm:$0xff] }
 0x344   :  { %7092 = vmatpush1.bf16.msra.mxu0 %v9264_v50  ;;  %7256 = vmatpush1.bf16.msra.mxu1 %v9266_v53  ;;  %v8343_v50 = vcombine.high %v197_v56, %v205_v39  ;;  %v220_v53 = vld [vmem:[#allocation5 + $0x270] sm:$0xff]  ;;  %v261_v23 = vld [vmem:[#allocation5 + $0x3b8] sm:$0xff] }
 0x345   :  { %7093 = vmatprep.subr.bf16.mxu0 %v9281_v17  ;;  %7257 = vmatprep.subr.bf16.mxu1 %v9283_v58  ;;  %v213_v17 = vld [vmem:[#allocation5 + $0x238] sm:$0xff]  ;;  %v8340_v58 = vcombine.low %v196_v55, %v204_v38  ;;  %v8357_v24 = vcombine.high %v212_v51, %v220_v53  ;;  %v268_v18 = vld [vmem:[#allocation5 + $0x3f0] sm:$0xff] }
 0x346   :  { %v276_v31 = vld [vmem:[#allocation5 + $0x430] sm:$0xff]  ;;  %v277_v36 = vld [vmem:[#allocation5 + $0x438] sm:$0xff] }
 0x347   :  { %v284_v34 = vld [vmem:[#allocation5 + $0x470] sm:$0xff]  ;;  %v293_v39 = vld [vmem:[#allocation5 + $0x4b8] sm:$0xff] }
 0x348   :  { %7094 = vmatpush1.bf16.msra.mxu0 %v9280_v2  ;;  %7258 = vmatpush1.bf16.msra.mxu1 %v9282_v61  ;;  %v237_v2 = vld [vmem:[#allocation5 + $0x2f8] sm:$0xff]  ;;  %v8356_v61 = vcombine.low %v212_v51, %v220_v53  ;;  %v292_v38 = vld [vmem:[#allocation5 + $0x4b0] sm:$0xff] }
 0x349   :  { %7095 = vmatprep.subr.bf16.mxu0 %v9297_v5  ;;  %7259 = vmatprep.subr.bf16.mxu1 %v9299_v6  ;;  %v8358_v5 = vcombine.low %v213_v17, %v221_v57  ;;  %v8373_v6 = vcombine.high %v228_v45, %v236_v62  ;;  %v8375_v7 = vcombine.high %v229_v63, %v237_v2  ;;  %v300_v56 = vld [vmem:[#allocation5 + $0x4f0] sm:$0xff] }
 0x34a   :  { %v308_v53 = vld [vmem:[#allocation5 + $0x530] sm:$0xff] }
 0x34c   :  { %7096 = vmatpush1.bf16.msra.mxu0 %v9296_v14  ;;  %7260 = vmatpush1.bf16.msra.mxu1 %v9298_v19  ;;  %v253_v14 = vld [vmem:[#allocation5 + $0x378] sm:$0xff]  ;;  %v8372_v19 = vcombine.low %v228_v45, %v236_v62  ;;  %v324_v62 = vld [vmem:[#allocation5 + $0x5b0] sm:$0xff] }
 0x34d   :  { %7270 = vmatprep.subr.bf16.mxu0 %v8293_v20  ;;  %7434 = vmatprep.subr.bf16.mxu1 %v8295_v60  ;;  %v8374_v20 = vcombine.low %v229_v63, %v237_v2  ;;  %v8389_v60 = vcombine.high %v244_v8, %v252_v9  ;;  %v8391_v21 = vcombine.high %v245_v12, %v253_v14  ;;  %v332_v63 = vld [vmem:[#allocation5 + $0x5f0] sm:$0xff]  ;;  %v325_v2 = vld [vmem:[#allocation5 + $0x5b8] sm:$0xff] }
 0x34f   :  { %7098 = vmatmul.mubr.bf16.vlgmr.msra.gmra.mrb[8].mxu0 %v9693_v27  ;;  %7262 = vmatmul.mubr.bf16.vlgmr.msra.gmra.mrb[8].mxu1 %v9693_v27 }
 0x350   :  { %7271 = vmatpush1.bf16.msra.mxu0 %v8292_v25  ;;  %7435 = vmatpush1.bf16.msra.mxu1 %v8294_v28  ;;  %v269_v25 = vld [vmem:[#allocation5 + $0x3f8] sm:$0xff]  ;;  %v8388_v28 = vcombine.low %v244_v8, %v252_v9  ;;  %v340_v9 = vld [vmem:[#allocation5 + $0x630] sm:$0xff] }
 0x351   :  { %7272 = vmatprep.subr.bf16.mxu0 %v8309_v29  ;;  %7436 = vmatprep.subr.bf16.mxu1 %v8311_v4  ;;  %v8390_v29 = vcombine.low %v245_v12, %v253_v14  ;;  %v8405_v4 = vcombine.high %v260_v22, %v268_v18  ;;  %v8407_v30 = vcombine.high %v261_v23, %v269_v25  ;;  %v348_v12 = vld [vmem:[#allocation5 + $0x670] sm:$0xff]  ;;  %v341_v14 = vld [vmem:[#allocation5 + $0x638] sm:$0xff] }
 0x352   :  { %7302 = vmatprep.mubr.bf16.mxu0 %v9632_v10  ;;  %7466 = vmatprep.mubr.bf16.mxu1 %v9632_v10  ;;  %v8359_v10 = vcombine.high %v213_v17, %v221_v57  ;;  %v316_v17 = vld [vmem:[#allocation5 + $0x570] sm:$0xff]  ;;  %v309_v57 = vld [vmem:[#allocation5 + $0x538] sm:$0xff] }
 0x354   :  { %7273 = vmatpush1.bf16.msra.mxu0 %v8308_v37  ;;  %7437 = vmatpush1.bf16.msra.mxu1 %v8310_v0  ;;  %v285_v37 = vld [vmem:[#allocation5 + $0x478] sm:$0xff]  ;;  %v8404_v0 = vcombine.low %v260_v22, %v268_v18  ;;  %v356_v18 = vld [vmem:[#allocation5 + $0x6b0] sm:$0xff] }
 0x355   :  { %7274 = vmatprep.subr.bf16.mxu0 %v8325_v43  ;;  %7438 = vmatprep.subr.bf16.mxu1 %v8327_v49  ;;  %v8406_v43 = vcombine.low %v261_v23, %v269_v25  ;;  %v8421_v49 = vcombine.high %v276_v31, %v284_v34  ;;  %v8423_v55 = vcombine.high %v277_v36, %v285_v37  ;;  %v364_v23 = vld [vmem:[#allocation5 + $0x6f0] sm:$0xff]  ;;  %v357_v25 = vld [vmem:[#allocation5 + $0x6b8] sm:$0xff] }
 0x358   :  { %7275 = vmatpush1.bf16.msra.mxu0 %v8324_v40  ;;  %7439 = vmatpush1.bf16.msra.mxu1 %v8326_v33  ;;  %v301_v40 = vld [vmem:[#allocation5 + $0x4f8] sm:$0xff]  ;;  %v8420_v33 = vcombine.low %v276_v31, %v284_v34  ;;  %v372_v34 = vld [vmem:[#allocation5 + $0x730] sm:$0xff] }
 0x359   :  { %7276 = vmatprep.subr.bf16.mxu0 %v8341_v41  ;;  %7440 = vmatprep.subr.bf16.mxu1 %v8343_v50  ;;  %v8422_v41 = vcombine.low %v277_v36, %v285_v37  ;;  %v8437_v50 = vcombine.high %v292_v38, %v300_v56  ;;  %v8439_v51 = vcombine.high %v293_v39, %v301_v40  ;;  %v380_v36 = vld [vmem:[#allocation5 + $0x770] sm:$0xff]  ;;  %v373_v37 = vld [vmem:[#allocation5 + $0x738] sm:$0xff] }
 0x35c   :  { %7277 = vmatpush1.bf16.msra.mxu0 %v8340_v58  ;;  %7441 = vmatpush1.bf16.msra.mxu1 %v8342_v59  ;;  %v317_v58 = vld [vmem:[#allocation5 + $0x578] sm:$0xff]  ;;  %v8436_v59 = vcombine.low %v292_v38, %v300_v56  ;;  %v388_v56 = vld [vmem:[#allocation5 + $0x7b0] sm:$0xff] }
 0x35d   :  { %7278 = vmatprep.subr.bf16.mxu0 %v8357_v24  ;;  %7442 = vmatprep.subr.bf16.mxu1 %v8359_v10  ;;  %v8438_v24 = vcombine.low %v293_v39, %v301_v40  ;;  %v8453_v10 = vcombine.high %v308_v53, %v316_v17  ;;  %v8455_v45 = vcombine.high %v309_v57, %v317_v58  ;;  %v396_v39 = vld [vmem:[#allocation5 + $0x7f0] sm:$0xff]  ;;  %v389_v40 = vld [vmem:[#allocation5 + $0x7b8] sm:$0xff] }
 0x360   :  { %7279 = vmatpush1.bf16.msra.mxu0 %v8356_v61  ;;  %7443 = vmatpush1.bf16.msra.mxu1 %v8358_v5  ;;  %v333_v61 = vld [vmem:[#allocation5 + $0x5f8] sm:$0xff]  ;;  %v8452_v5 = vcombine.low %v308_v53, %v316_v17  ;;  %v404_v17 = vld [vmem:[#allocation5 + $0x830] sm:$0xff] }
 0x361   :  { %7280 = vmatprep.subr.bf16.mxu0 %v8373_v6  ;;  %7444 = vmatprep.subr.bf16.mxu1 %v8375_v7  ;;  %v8454_v6 = vcombine.low %v309_v57, %v317_v58  ;;  %v8469_v7 = vcombine.high %v324_v62, %v332_v63  ;;  %v8471_v8 = vcombine.high %v325_v2, %v333_v61  ;;  %v412_v57 = vld [vmem:[#allocation5 + $0x870] sm:$0xff]  ;;  %v405_v58 = vld [vmem:[#allocation5 + $0x838] sm:$0xff] }
 0x364   :  { %7281 = vmatpush1.bf16.msra.mxu0 %v8372_v19  ;;  %7445 = vmatpush1.bf16.msra.mxu1 %v8374_v20  ;;  %v349_v19 = vld [vmem:[#allocation5 + $0x678] sm:$0xff]  ;;  %v8468_v20 = vcombine.low %v324_v62, %v332_v63  ;;  %v420_v63 = vld [vmem:[#allocation5 + $0x8b0] sm:$0xff] }
 0x365   :  { %7282 = vmatprep.subr.bf16.mxu0 %v8389_v60  ;;  %7446 = vmatprep.subr.bf16.mxu1 %v8391_v21  ;;  %v8470_v60 = vcombine.low %v325_v2, %v333_v61  ;;  %v8485_v21 = vcombine.high %v340_v9, %v348_v12  ;;  %v8487_v22 = vcombine.high %v341_v14, %v349_v19  ;;  %v428_v2 = vld [vmem:[#allocation5 + $0x8f0] sm:$0xff]  ;;  %v421_v61 = vld [vmem:[#allocation5 + $0x8b8] sm:$0xff] }
 0x368   :  { %7283 = vmatpush1.bf16.msra.mxu0 %v8388_v28  ;;  %7447 = vmatpush1.bf16.msra.mxu1 %v8390_v29  ;;  %v365_v28 = vld [vmem:[#allocation5 + $0x6f8] sm:$0xff]  ;;  %v8484_v29 = vcombine.low %v340_v9, %v348_v12  ;;  %v436_v12 = vld [vmem:[#allocation5 + $0x930] sm:$0xff] }
 0x369   :  { %7284 = vmatprep.subr.bf16.mxu0 %v8405_v4  ;;  %7448 = vmatprep.subr.bf16.mxu1 %v8407_v30  ;;  %v8486_v4 = vcombine.low %v341_v14, %v349_v19  ;;  %v8501_v30 = vcombine.high %v356_v18, %v364_v23  ;;  %v8503_v31 = vcombine.high %v357_v25, %v365_v28  ;;  %v444_v14 = vld [vmem:[#allocation5 + $0x970] sm:$0xff]  ;;  %v437_v19 = vld [vmem:[#allocation5 + $0x938] sm:$0xff] }
 0x36c   :  { %7285 = vmatpush1.bf16.msra.mxu0 %v8404_v0  ;;  %7449 = vmatpush1.bf16.msra.mxu1 %v8406_v43  ;;  %v381_v0 = vld [vmem:[#allocation5 + $0x778] sm:$0xff]  ;;  %v8500_v43 = vcombine.low %v356_v18, %v364_v23  ;;  %v452_v23 = vld [vmem:[#allocation5 + $0x9b0] sm:$0xff] }
 0x36d   :  { %7286 = vmatprep.subr.bf16.mxu0 %v8421_v49  ;;  %7450 = vmatprep.subr.bf16.mxu1 %v8423_v55  ;;  %v8502_v49 = vcombine.low %v357_v25, %v365_v28  ;;  %v8517_v55 = vcombine.high %v372_v34, %v380_v36  ;;  %v8519_v38 = vcombine.high %v373_v37, %v381_v0  ;;  %v460_v25 = vld [vmem:[#allocation5 + $0x9f0] sm:$0xff]  ;;  %v453_v28 = vld [vmem:[#allocation5 + $0x9b8] sm:$0xff] }
 0x370   :  { %7287 = vmatpush1.bf16.msra.mxu0 %v8420_v33  ;;  %7451 = vmatpush1.bf16.msra.mxu1 %v8422_v41  ;;  %v397_v33 = vld [vmem:[#allocation5 + $0x7f8] sm:$0xff]  ;;  %v8516_v41 = vcombine.low %v372_v34, %v380_v36  ;;  %v468_v34 = vld [vmem:[#allocation5 + $0xa30] sm:$0xff] }
 0x371   :  { %7288 = vmatprep.subr.bf16.mxu0 %v8437_v50  ;;  %7452 = vmatprep.subr.bf16.mxu1 %v8439_v51  ;;  %v8518_v50 = vcombine.low %v373_v37, %v381_v0  ;;  %v8533_v51 = vcombine.high %v388_v56, %v396_v39  ;;  %v8535_v53 = vcombine.high %v389_v40, %v397_v33  ;;  %v476_v36 = vld [vmem:[#allocation5 + $0xa70] sm:$0xff]  ;;  %v469_v37 = vld [vmem:[#allocation5 + $0xa38] sm:$0xff] }
 0x372   :  { %v477_v0 = vld [vmem:[#allocation5 + $0xa78] sm:$0xff] }
 0x374   :  { %7289 = vmatpush1.bf16.msra.mxu0 %v8436_v59  ;;  %7453 = vmatpush1.bf16.msra.mxu1 %v8438_v24  ;;  %v413_v59 = vld [vmem:[#allocation5 + $0x878] sm:$0xff]  ;;  %v8532_v24 = vcombine.low %v388_v56, %v396_v39  ;;  %v492_v56 = vld [vmem:[#allocation5 + $0xaf0] sm:$0xff] }
 0x375   :  { %7290 = vmatprep.subr.bf16.mxu0 %v8453_v10  ;;  %7454 = vmatprep.subr.bf16.mxu1 %v8455_v45  ;;  %v8534_v10 = vcombine.low %v389_v40, %v397_v33  ;;  %v8549_v45 = vcombine.high %v404_v17, %v412_v57  ;;  %v8551_v62 = vcombine.high %v405_v58, %v413_v59  ;;  %v485_v39 = vld [vmem:[#allocation5 + $0xab8] sm:$0xff] }
 0x376   :  { %v493_v40 = vld [vmem:[#allocation5 + $0xaf8] sm:$0xff]  ;;  %v8612_v33 = vcombine.low %v468_v34, %v476_v36 }
 0x378   :  { %7291 = vmatpush1.bf16.msra.mxu0 %v8452_v5  ;;  %7455 = vmatpush1.bf16.msra.mxu1 %v8454_v6  ;;  %v429_v5 = vld [vmem:[#allocation5 + $0x8f8] sm:$0xff]  ;;  %v8548_v6 = vcombine.low %v404_v17, %v412_v57  ;;  %v508_v17 = vld [vmem:[#allocation5 + $0xb70] sm:$0xff] }
 0x379   :  { %7292 = vmatprep.subr.bf16.mxu0 %v8469_v7  ;;  %7456 = vmatprep.subr.bf16.mxu1 %v8471_v8  ;;  %v8550_v7 = vcombine.low %v405_v58, %v413_v59  ;;  %v8565_v8 = vcombine.high %v420_v63, %v428_v2  ;;  %v8567_v9 = vcombine.high %v421_v61, %v429_v5  ;;  %v501_v57 = vld [vmem:[#allocation5 + $0xb38] sm:$0xff] }
 0x37a   :  { %v509_v58 = vld [vmem:[#allocation5 + $0xb78] sm:$0xff] }
 0x37c   :  { %7293 = vmatpush1.bf16.msra.mxu0 %v8468_v20  ;;  %7457 = vmatpush1.bf16.msra.mxu1 %v8470_v60  ;;  %v445_v20 = vld [vmem:[#allocation5 + $0x978] sm:$0xff]  ;;  %v8564_v60 = vcombine.low %v420_v63, %v428_v2  ;;  %v524_v63 = vld [vmem:[#allocation5 + $0xbf0] sm:$0xff] }
 0x37d   :  { %7294 = vmatprep.subr.bf16.mxu0 %v8485_v21  ;;  %7458 = vmatprep.subr.bf16.mxu1 %v8487_v22  ;;  %v8566_v21 = vcombine.low %v421_v61, %v429_v5  ;;  %v8581_v22 = vcombine.high %v436_v12, %v444_v14  ;;  %v8583_v18 = vcombine.high %v437_v19, %v445_v20  ;;  %v517_v2 = vld [vmem:[#allocation5 + $0xbb8] sm:$0xff] }
 0x37e   :  { %v525_v61 = vld [vmem:[#allocation5 + $0xbf8] sm:$0xff] }
 0x380   :  { %7295 = vmatpush1.bf16.msra.mxu0 %v8484_v29  ;;  %7459 = vmatpush1.bf16.msra.mxu1 %v8486_v4  ;;  %v461_v29 = vld [vmem:[#allocation5 + $0x9f8] sm:$0xff]  ;;  %v8580_v4 = vcombine.low %v436_v12, %v444_v14  ;;  %v540_v12 = vld [vmem:[#allocation5 + $0xc70] sm:$0xff] }
 0x381   :  { %7296 = vmatprep.subr.bf16.mxu0 %v8501_v30  ;;  %7460 = vmatprep.subr.bf16.mxu1 %v8503_v31  ;;  %v8597_v30 = vcombine.high %v452_v23, %v460_v25  ;;  %v8599_v31 = vcombine.high %v453_v28, %v461_v29  ;;  %v533_v14 = vld [vmem:[#allocation5 + $0xc38] sm:$0xff] }
 0x384   :  { %7297 = vmatpush1.bf16.msra.mxu0 %v8500_v43  ;;  %7461 = vmatpush1.bf16.msra.mxu1 %v8502_v49  ;;  %v8596_v43 = vcombine.low %v452_v23, %v460_v25  ;;  %v8598_v49 = vcombine.low %v453_v28, %v461_v29  ;;  %v556_v23 = vld [vmem:[#allocation5 + $0xcf0] sm:$0xff]  ;;  %v549_v25 = vld [vmem:[#allocation5 + $0xcb8] sm:$0xff] }
 0x385   :  { %7298 = vmatprep.subr.bf16.mxu0 %v8517_v55  ;;  %7462 = vmatprep.subr.bf16.mxu1 %v8519_v38  ;;  %v8613_v55 = vcombine.high %v468_v34, %v476_v36  ;;  %v484_v38 = vld [vmem:[#allocation5 + $0xab0] sm:$0xff]  ;;  %v557_v28 = vld [vmem:[#allocation5 + $0xcf8] sm:$0xff] }
 0x386   :  { %v8628_v59 = vcombine.low %v484_v38, %v492_v56  ;;  %v572_v34 = vld [vmem:[#allocation5 + $0xd70] sm:$0xff]  ;;  %v565_v36 = vld [vmem:[#allocation5 + $0xd38] sm:$0xff] }
 0x388   :  { %7299 = vmatpush1.bf16.msra.mxu0 %v8516_v41  ;;  %7463 = vmatpush1.bf16.msra.mxu1 %v8518_v50  ;;  %v8614_v41 = vcombine.low %v469_v37, %v477_v0  ;;  %v8629_v50 = vcombine.high %v484_v38, %v492_v56  ;;  %v588_v38 = vld [vmem:[#allocation5 + $0xdf0] sm:$0xff]  ;;  %v581_v56 = vld [vmem:[#allocation5 + $0xdb8] sm:$0xff] }
 0x389   :  { %7300 = vmatprep.subr.bf16.mxu0 %v8533_v51  ;;  %7464 = vmatprep.subr.bf16.mxu1 %v8535_v53  ;;  %v8631_v51 = vcombine.high %v485_v39, %v493_v40  ;;  %v500_v53 = vld [vmem:[#allocation5 + $0xb30] sm:$0xff] }
 0x38a   :  { %v8644_v5 = vcombine.low %v500_v53, %v508_v17 }
 0x38c   :  { %7301 = vmatpush1.bf16.msra.mxu0 %v8532_v24  ;;  %7465 = vmatpush1.bf16.msra.mxu1 %v8534_v10  ;;  %v8630_v24 = vcombine.low %v485_v39, %v493_v40  ;;  %v8645_v10 = vcombine.high %v500_v53, %v508_v17  ;;  %v589_v39 = vld [vmem:[#allocation5 + $0xdf8] sm:$0xff]  ;;  %v604_v53 = vld [vmem:[#allocation5 + $0xe70] sm:$0xff] }
 0x38d   :  { %7311 = vmatprep.subr.bf16.mxu0 %v8549_v45  ;;  %7475 = vmatprep.subr.bf16.mxu1 %v8551_v62  ;;  %v8647_v45 = vcombine.high %v501_v57, %v509_v58  ;;  %v516_v62 = vld [vmem:[#allocation5 + $0xbb0] sm:$0xff]  ;;  %v597_v17 = vld [vmem:[#allocation5 + $0xe38] sm:$0xff] }
 0x38f   :  { %7303 = vmatmul.mubr.bf16.vlgmr.msra.gmra.mrb[12].mxu0 %v9645_v26  ;;  %7467 = vmatmul.mubr.bf16.vlgmr.msra.gmra.mrb[12].mxu1 %v9645_v26  ;;  %v8582_v26 = vcombine.low %v437_v19, %v445_v20  ;;  %v541_v19 = vld [vmem:[#allocation5 + $0xc78] sm:$0xff]  ;;  %v8660_v20 = vcombine.low %v516_v62, %v524_v63 }
 0x390   :  { %7312 = vmatpush1.bf16.msra.mxu0 %v8548_v6  ;;  %7476 = vmatpush1.bf16.msra.mxu1 %v8550_v7  ;;  %v8646_v6 = vcombine.low %v501_v57, %v509_v58  ;;  %v8661_v7 = vcombine.high %v516_v62, %v524_v63  ;;  %v605_v57 = vld [vmem:[#allocation5 + $0xe78] sm:$0xff]  ;;  %v620_v62 = vld [vmem:[#allocation5 + $0xef0] sm:$0xff] }
 0x391   :  { %7313 = vmatprep.subr.bf16.mxu0 %v8565_v8  ;;  %7477 = vmatprep.subr.bf16.mxu1 %v8567_v9  ;;  %v8663_v8 = vcombine.high %v517_v2, %v525_v61  ;;  %v532_v9 = vld [vmem:[#allocation5 + $0xc30] sm:$0xff]  ;;  %v613_v63 = vld [vmem:[#allocation5 + $0xeb8] sm:$0xff] }
 0x392   :  { %7343 = vmatprep.mubr.bf16.mxu0 %v9647_v35  ;;  %7507 = vmatprep.mubr.bf16.mxu1 %v9647_v35  ;;  %v8615_v35 = vcombine.high %v469_v37, %v477_v0  ;;  %v8676_v29 = vcombine.low %v532_v9, %v540_v12  ;;  %v573_v37 = vld [vmem:[#allocation5 + $0xd78] sm:$0xff] }
 0x394   :  { %7314 = vmatpush1.bf16.msra.mxu0 %v8564_v60  ;;  %7478 = vmatpush1.bf16.msra.mxu1 %v8566_v21  ;;  %v8662_v60 = vcombine.low %v517_v2, %v525_v61  ;;  %v8677_v21 = vcombine.high %v532_v9, %v540_v12  ;;  %v621_v2 = vld [vmem:[#allocation5 + $0xef8] sm:$0xff]  ;;  %v636_v9 = vld [vmem:[#allocation5 + $0xf70] sm:$0xff] }
 0x395   :  { %7315 = vmatprep.subr.bf16.mxu0 %v8581_v22  ;;  %7479 = vmatprep.subr.bf16.mxu1 %v8583_v18  ;;  %v8679_v22 = vcombine.high %v533_v14, %v541_v19  ;;  %v548_v18 = vld [vmem:[#allocation5 + $0xcb0] sm:$0xff]  ;;  %v629_v12 = vld [vmem:[#allocation5 + $0xf38] sm:$0xff] }
 0x396   :  { %v8692_v0 = vcombine.low %v548_v18, %v556_v23 }
 0x398   :  { %7316 = vmatpush1.bf16.msra.mxu0 %v8580_v4  ;;  %7480 = vmatpush1.bf16.msra.mxu1 %v8582_v26  ;;  %v8678_v4 = vcombine.low %v533_v14, %v541_v19  ;;  %v8693_v26 = vcombine.high %v548_v18, %v556_v23  ;;  %v637_v14 = vld [vmem:[#allocation5 + $0xf78] sm:$0xff]  ;;  %v652_v18 = vld [vmem:[#allocation5 + $0xff0] sm:$0xff] }
 0x399   :  { %7317 = vmatprep.subr.bf16.mxu0 %v8597_v30  ;;  %7481 = vmatprep.subr.bf16.mxu1 %v8599_v31  ;;  %v8695_v30 = vcombine.high %v549_v25, %v557_v28  ;;  %v564_v31 = vld [vmem:[#allocation5 + $0xd30] sm:$0xff]  ;;  %v645_v23 = vld [vmem:[#allocation5 + $0xfb8] sm:$0xff] }
 0x39a   :  { %v8708_v40 = vcombine.low %v564_v31, %v572_v34 }
 0x39c   :  { %7318 = vmatpush1.bf16.msra.mxu0 %v8596_v43  ;;  %7482 = vmatpush1.bf16.msra.mxu1 %v8598_v49  ;;  %v8694_v43 = vcombine.low %v549_v25, %v557_v28  ;;  %v8709_v49 = vcombine.high %v564_v31, %v572_v34  ;;  %v653_v25 = vld [vmem:[#allocation5 + $0xff8] sm:$0xff]  ;;  %v668_v31 = vld [vmem:[#allocation5 + $0x1070] sm:$0xff] }
 0x39d   :  { %7319 = vmatprep.subr.bf16.mxu0 %v8613_v55  ;;  %7483 = vmatprep.subr.bf16.mxu1 %v8615_v35  ;;  %v8711_v55 = vcombine.high %v565_v36, %v573_v37  ;;  %v580_v35 = vld [vmem:[#allocation5 + $0xdb0] sm:$0xff]  ;;  %v661_v34 = vld [vmem:[#allocation5 + $0x1038] sm:$0xff] }
 0x39e   :  { %v8724_v58 = vcombine.low %v580_v35, %v588_v38 }
 0x3a0   :  { %7320 = vmatpush1.bf16.msra.mxu0 %v8612_v33  ;;  %7484 = vmatpush1.bf16.msra.mxu1 %v8614_v41  ;;  %v8710_v33 = vcombine.low %v565_v36, %v573_v37  ;;  %v8725_v41 = vcombine.high %v580_v35, %v588_v38  ;;  %v669_v36 = vld [vmem:[#allocation5 + $0x1078] sm:$0xff]  ;;  %v684_v35 = vld [vmem:[#allocation5 + $0x10f0] sm:$0xff] }
 0x3a1   :  { %7321 = vmatprep.subr.bf16.mxu0 %v8629_v50  ;;  %7485 = vmatprep.subr.bf16.mxu1 %v8631_v51  ;;  %v8727_v50 = vcombine.high %v581_v56, %v589_v39  ;;  %v596_v51 = vld [vmem:[#allocation5 + $0xe30] sm:$0xff]  ;;  %v677_v38 = vld [vmem:[#allocation5 + $0x10b8] sm:$0xff] }
 0x3a2   :  { %v8740_v61 = vcombine.low %v596_v51, %v604_v53 }
 0x3a4   :  { %7322 = vmatpush1.bf16.msra.mxu0 %v8628_v59  ;;  %7486 = vmatpush1.bf16.msra.mxu1 %v8630_v24  ;;  %v8726_v59 = vcombine.low %v581_v56, %v589_v39  ;;  %v8741_v24 = vcombine.high %v596_v51, %v604_v53  ;;  %v685_v56 = vld [vmem:[#allocation5 + $0x10f8] sm:$0xff]  ;;  %v700_v51 = vld [vmem:[#allocation5 + $0x1170] sm:$0xff] }
 0x3a5   :  { %7323 = vmatprep.subr.bf16.mxu0 %v8645_v10  ;;  %7487 = vmatprep.subr.bf16.mxu1 %v8647_v45  ;;  %v8743_v10 = vcombine.high %v597_v17, %v605_v57  ;;  %v612_v45 = vld [vmem:[#allocation5 + $0xeb0] sm:$0xff]  ;;  %v693_v53 = vld [vmem:[#allocation5 + $0x1138] sm:$0xff] }
 0x3a6   :  { %v8756_v19 = vcombine.low %v612_v45, %v620_v62 }
 0x3a8   :  { %7324 = vmatpush1.bf16.msra.mxu0 %v8644_v5  ;;  %7488 = vmatpush1.bf16.msra.mxu1 %v8646_v6  ;;  %v8742_v5 = vcombine.low %v597_v17, %v605_v57  ;;  %v8757_v6 = vcombine.high %v612_v45, %v620_v62  ;;  %v701_v17 = vld [vmem:[#allocation5 + $0x1178] sm:$0xff]  ;;  %v716_v45 = vld [vmem:[#allocation5 + $0x11f0] sm:$0xff] }
 0x3a9   :  { %7325 = vmatprep.subr.bf16.mxu0 %v8661_v7  ;;  %7489 = vmatprep.subr.bf16.mxu1 %v8663_v8  ;;  %v8759_v7 = vcombine.high %v613_v63, %v621_v2  ;;  %v628_v8 = vld [vmem:[#allocation5 + $0xf30] sm:$0xff]  ;;  %v709_v62 = vld [vmem:[#allocation5 + $0x11b8] sm:$0xff] }
 0x3aa   :  { %v8772_v28 = vcombine.low %v628_v8, %v636_v9 }
 0x3ac   :  { %7326 = vmatpush1.bf16.msra.mxu0 %v8660_v20  ;;  %7490 = vmatpush1.bf16.msra.mxu1 %v8662_v60  ;;  %v8758_v20 = vcombine.low %v613_v63, %v621_v2  ;;  %v8773_v60 = vcombine.high %v628_v8, %v636_v9  ;;  %v717_v63 = vld [vmem:[#allocation5 + $0x11f8] sm:$0xff] }
 0x3ad   :  { %7327 = vmatprep.subr.bf16.mxu0 %v8677_v21  ;;  %7491 = vmatprep.subr.bf16.mxu1 %v8679_v22  ;;  %v8775_v21 = vcombine.high %v629_v12, %v637_v14  ;;  %v644_v22 = vld [vmem:[#allocation5 + $0xfb0] sm:$0xff]  ;;  %v725_v8 = vld [vmem:[#allocation5 + $0x1238] sm:$0xff] }
 0x3ae   :  { %v8788_v37 = vcombine.low %v644_v22, %v652_v18  ;;  %v733_v9 = vld [vmem:[#allocation5 + $0x1278] sm:$0xff] }
 0x3b0   :  { %7328 = vmatpush1.bf16.msra.mxu0 %v8676_v29  ;;  %7492 = vmatpush1.bf16.msra.mxu1 %v8678_v4  ;;  %v8774_v29 = vcombine.low %v629_v12, %v637_v14  ;;  %v8789_v4 = vcombine.high %v644_v22, %v652_v18  ;;  %v8854_v14 = vcombine.low %v709_v62, %v717_v63  ;;  %v749_v22 = vld [vmem:[#allocation5 + $0x12f8] sm:$0xff] }
 0x3b1   :  { %7329 = vmatprep.subr.bf16.mxu0 %v8693_v26  ;;  %7493 = vmatprep.subr.bf16.mxu1 %v8695_v30  ;;  %v8791_v26 = vcombine.high %v645_v23, %v653_v25  ;;  %v660_v30 = vld [vmem:[#allocation5 + $0x1030] sm:$0xff] }
 0x3b2   :  { %v8804_v39 = vcombine.low %v660_v30, %v668_v31 }
 0x3b4   :  { %7330 = vmatpush1.bf16.msra.mxu0 %v8692_v0  ;;  %7494 = vmatpush1.bf16.msra.mxu1 %v8694_v43  ;;  %v8790_v0 = vcombine.low %v645_v23, %v653_v25  ;;  %v8805_v43 = vcombine.high %v660_v30, %v668_v31  ;;  %v8870_v23 = vcombine.low %v725_v8, %v733_v9  ;;  %v765_v30 = vld [vmem:[#allocation5 + $0x1378] sm:$0xff] }
 0x3b5   :  { %7331 = vmatprep.subr.bf16.mxu0 %v8709_v49  ;;  %7495 = vmatprep.subr.bf16.mxu1 %v8711_v55  ;;  %v8807_v49 = vcombine.high %v661_v34, %v669_v36  ;;  %v676_v55 = vld [vmem:[#allocation5 + $0x10b0] sm:$0xff] }
 0x3b6   :  { %v8820_v57 = vcombine.low %v676_v55, %v684_v35 }
 0x3b8   :  { %7332 = vmatpush1.bf16.msra.mxu0 %v8708_v40  ;;  %7496 = vmatpush1.bf16.msra.mxu1 %v8710_v33  ;;  %v8806_v40 = vcombine.low %v661_v34, %v669_v36  ;;  %v8821_v33 = vcombine.high %v676_v55, %v684_v35  ;;  %v781_v55 = vld [vmem:[#allocation5 + $0x13f8] sm:$0xff] }
 0x3b9   :  { %7333 = vmatprep.subr.bf16.mxu0 %v8725_v41  ;;  %7497 = vmatprep.subr.bf16.mxu1 %v8727_v50  ;;  %v8823_v41 = vcombine.high %v677_v38, %v685_v56  ;;  %v692_v50 = vld [vmem:[#allocation5 + $0x1130] sm:$0xff] }
 0x3ba   :  { %v8836_v2 = vcombine.low %v692_v50, %v700_v51 }
 0x3bc   :  { %7334 = vmatpush1.bf16.msra.mxu0 %v8724_v58  ;;  %7498 = vmatpush1.bf16.msra.mxu1 %v8726_v59  ;;  %v8822_v58 = vcombine.low %v677_v38, %v685_v56  ;;  %v8837_v59 = vcombine.high %v692_v50, %v700_v51  ;;  %v797_v50 = vld [vmem:[#allocation5 + $0x1478] sm:$0xff] }
 0x3bd   :  { %7335 = vmatprep.subr.bf16.mxu0 %v8741_v24  ;;  %7499 = vmatprep.subr.bf16.mxu1 %v8743_v10  ;;  %v8839_v24 = vcombine.high %v693_v53, %v701_v17  ;;  %v708_v10 = vld [vmem:[#allocation5 + $0x11b0] sm:$0xff] }
 0x3be   :  { %v8852_v12 = vcombine.low %v708_v10, %v716_v45 }
 0x3c0   :  { %7336 = vmatpush1.bf16.msra.mxu0 %v8740_v61  ;;  %7500 = vmatpush1.bf16.msra.mxu1 %v8742_v5  ;;  %v8853_v61 = vcombine.high %v708_v10, %v716_v45  ;;  %v8855_v5 = vcombine.high %v709_v62, %v717_v63  ;;  %v813_v10 = vld [vmem:[#allocation5 + $0x14f8] sm:$0xff] }
 0x3c1   :  { %7337 = vmatprep.subr.bf16.mxu0 %v8757_v6  ;;  %7501 = vmatprep.subr.bf16.mxu1 %v8759_v7  ;;  %v724_v6 = vld [vmem:[#allocation5 + $0x1230] sm:$0xff] }
 0x3c2   :  { %v732_v7 = vld [vmem:[#allocation5 + $0x1270] sm:$0xff] }
 0x3c3   :  { %v8868_v18 = vcombine.low %v724_v6, %v732_v7 }
 0x3c4   :  { %7338 = vmatpush1.bf16.msra.mxu0 %v8756_v19  ;;  %7502 = vmatpush1.bf16.msra.mxu1 %v8758_v20  ;;  %v8869_v19 = vcombine.high %v724_v6, %v732_v7  ;;  %v740_v20 = vld [vmem:[#allocation5 + $0x12b0] sm:$0xff]  ;;  %v829_v6 = vld [vmem:[#allocation5 + $0x1578] sm:$0xff] }
 0x3c5   :  { %7339 = vmatprep.subr.bf16.mxu0 %v8773_v60  ;;  %7503 = vmatprep.subr.bf16.mxu1 %v8775_v21  ;;  %v748_v60 = vld [vmem:[#allocation5 + $0x12f0] sm:$0xff]  ;;  %v741_v21 = vld [vmem:[#allocation5 + $0x12b8] sm:$0xff] }
 0x3c6   :  { %v8885_v25 = vcombine.high %v740_v20, %v748_v60  ;;  %v8884_v31 = vcombine.low %v740_v20, %v748_v60  ;;  %v8886_v34 = vcombine.low %v741_v21, %v749_v22  ;;  %v845_v20 = vld [vmem:[#allocation5 + $0x15f8] sm:$0xff] }
 0x3c8   :  { %7340 = vmatpush1.bf16.msra.mxu0 %v8772_v28  ;;  %7504 = vmatpush1.bf16.msra.mxu1 %v8774_v29  ;;  %v8887_v28 = vcombine.high %v741_v21, %v749_v22  ;;  %v756_v29 = vld [vmem:[#allocation5 + $0x1330] sm:$0xff] }
 0x3c9   :  { %7341 = vmatprep.subr.bf16.mxu0 %v8789_v4  ;;  %7505 = vmatprep.subr.bf16.mxu1 %v8791_v26  ;;  %v764_v4 = vld [vmem:[#allocation5 + $0x1370] sm:$0xff]  ;;  %v757_v26 = vld [vmem:[#allocation5 + $0x1338] sm:$0xff] }
 0x3ca   :  { %v8901_v36 = vcombine.high %v756_v29, %v764_v4  ;;  %v8900_v35 = vcombine.low %v756_v29, %v764_v4  ;;  %v8902_v38 = vcombine.low %v757_v26, %v765_v30  ;;  %v861_v29 = vld [vmem:[#allocation5 + $0x1678] sm:$0xff] }
 0x3cc   :  { %7342 = vmatpush1.bf16.msra.mxu0 %v8788_v37  ;;  %7506 = vmatpush1.bf16.msra.mxu1 %v8790_v0  ;;  %v8903_v37 = vcombine.high %v757_v26, %v765_v30  ;;  %v772_v0 = vld [vmem:[#allocation5 + $0x13b0] sm:$0xff] }
 0x3cd   :  { %7352 = vmatprep.subr.bf16.mxu0 %v8805_v43  ;;  %7516 = vmatprep.subr.bf16.mxu1 %v8807_v49  ;;  %v780_v43 = vld [vmem:[#allocation5 + $0x13f0] sm:$0xff]  ;;  %v773_v49 = vld [vmem:[#allocation5 + $0x13b8] sm:$0xff] }
 0x3ce   :  { %v8917_v56 = vcombine.high %v772_v0, %v780_v43  ;;  %v8916_v51 = vcombine.low %v772_v0, %v780_v43  ;;  %v877_v0 = vld [vmem:[#allocation5 + $0x16f8] sm:$0xff] }
 0x3cf   :  { %7344 = vmatmul.mubr.bf16.vlgmr.msra.gmra.mrb[12].mxu0 %v9666_v42  ;;  %7508 = vmatmul.mubr.bf16.vlgmr.msra.gmra.mrb[12].mxu1 %v9666_v42  ;;  %v8838_v42 = vcombine.low %v693_v53, %v701_v17  ;;  %v8918_v53 = vcombine.low %v773_v49, %v781_v55 }
 0x3d0   :  { %7353 = vmatpush1.bf16.msra.mxu0 %v8804_v39  ;;  %7517 = vmatpush1.bf16.msra.mxu1 %v8806_v40  ;;  %v8919_v39 = vcombine.high %v773_v49, %v781_v55  ;;  %v788_v40 = vld [vmem:[#allocation5 + $0x1430] sm:$0xff] }
 0x3d1   :  { %7354 = vmatprep.subr.bf16.mxu0 %v8821_v33  ;;  %7518 = vmatprep.subr.bf16.mxu1 %v8823_v41  ;;  %v796_v33 = vld [vmem:[#allocation5 + $0x1470] sm:$0xff]  ;;  %v789_v41 = vld [vmem:[#allocation5 + $0x1438] sm:$0xff] }
 0x3d2   :  { %7384 = vmatprep.mubr.bf16.mxu0 %v9668_v52  ;;  %7548 = vmatprep.mubr.bf16.mxu1 %v9668_v52  ;;  %v8871_v52 = vcombine.high %v725_v8, %v733_v9  ;;  %v8933_v17 = vcombine.high %v788_v40, %v796_v33  ;;  %v8932_v45 = vcombine.low %v788_v40, %v796_v33  ;;  %v893_v40 = vld [vmem:[#allocation5 + $0x1778] sm:$0xff] }
 0x3d3   :  { %v8934_v62 = vcombine.low %v789_v41, %v797_v50 }
 0x3d4   :  { %7355 = vmatpush1.bf16.msra.mxu0 %v8820_v57  ;;  %7519 = vmatpush1.bf16.msra.mxu1 %v8822_v58  ;;  %v8935_v57 = vcombine.high %v789_v41, %v797_v50  ;;  %v804_v58 = vld [vmem:[#allocation5 + $0x14b0] sm:$0xff] }
 0x3d5   :  { %7356 = vmatprep.subr.bf16.mxu0 %v8837_v59  ;;  %7520 = vmatprep.subr.bf16.mxu1 %v8839_v24  ;;  %v812_v59 = vld [vmem:[#allocation5 + $0x14f0] sm:$0xff]  ;;  %v805_v24 = vld [vmem:[#allocation5 + $0x14b8] sm:$0xff] }
 0x3d6   :  { %v8949_v63 = vcombine.high %v804_v58, %v812_v59  ;;  %v8948_v7 = vcombine.low %v804_v58, %v812_v59  ;;  %v8950_v8 = vcombine.low %v805_v24, %v813_v10  ;;  %v909_v58 = vld [vmem:[#allocation5 + $0x17f8] sm:$0xff] }
 0x3d8   :  { %7357 = vmatpush1.bf16.msra.mxu0 %v8836_v2  ;;  %7521 = vmatpush1.bf16.msra.mxu1 %v8838_v42  ;;  %v8951_v2 = vcombine.high %v805_v24, %v813_v10  ;;  %v820_v42 = vld [vmem:[#allocation5 + $0x1530] sm:$0xff] }
 0x3d9   :  { %7358 = vmatprep.subr.bf16.mxu0 %v8853_v61  ;;  %7522 = vmatprep.subr.bf16.mxu1 %v8855_v5  ;;  %v828_v61 = vld [vmem:[#allocation5 + $0x1570] sm:$0xff]  ;;  %v821_v5 = vld [vmem:[#allocation5 + $0x1538] sm:$0xff] }
 0x3da   :  { %v8965_v9 = vcombine.high %v820_v42, %v828_v61  ;;  %v8964_v60 = vcombine.low %v820_v42, %v828_v61  ;;  %v8966_v21 = vcombine.low %v821_v5, %v829_v6  ;;  %v925_v42 = vld [vmem:[#allocation5 + $0x1878] sm:$0xff] }
 0x3dc   :  { %7359 = vmatpush1.bf16.msra.mxu0 %v8852_v12  ;;  %7523 = vmatpush1.bf16.msra.mxu1 %v8854_v14  ;;  %v8967_v12 = vcombine.high %v821_v5, %v829_v6  ;;  %v836_v14 = vld [vmem:[#allocation5 + $0x15b0] sm:$0xff] }
 0x3dd   :  { %7360 = vmatprep.subr.bf16.mxu0 %v8869_v19  ;;  %7524 = vmatprep.subr.bf16.mxu1 %v8871_v52  ;;  %v844_v19 = vld [vmem:[#allocation5 + $0x15f0] sm:$0xff]  ;;  %v837_v52 = vld [vmem:[#allocation5 + $0x15b8] sm:$0xff] }
 0x3de   :  { %v8981_v22 = vcombine.high %v836_v14, %v844_v19  ;;  %v8980_v4 = vcombine.low %v836_v14, %v844_v19  ;;  %v8982_v26 = vcombine.low %v837_v52, %v845_v20  ;;  %v941_v14 = vld [vmem:[#allocation5 + $0x18f8] sm:$0xff] }
 0x3e0   :  { %7361 = vmatpush1.bf16.msra.mxu0 %v8868_v18  ;;  %7525 = vmatpush1.bf16.msra.mxu1 %v8870_v23  ;;  %v8983_v18 = vcombine.high %v837_v52, %v845_v20  ;;  %v852_v23 = vld [vmem:[#allocation5 + $0x1630] sm:$0xff] }
 0x3e1   :  { %7362 = vmatprep.subr.bf16.mxu0 %v8885_v25  ;;  %7526 = vmatprep.subr.bf16.mxu1 %v8887_v28  ;;  %v860_v25 = vld [vmem:[#allocation5 + $0x1670] sm:$0xff]  ;;  %v853_v28 = vld [vmem:[#allocation5 + $0x1638] sm:$0xff] }
 0x3e2   :  { %v8997_v30 = vcombine.high %v852_v23, %v860_v25  ;;  %v8996_v43 = vcombine.low %v852_v23, %v860_v25  ;;  %v8998_v49 = vcombine.low %v853_v28, %v861_v29  ;;  %v957_v23 = vld [vmem:[#allocation5 + $0x1978] sm:$0xff] }
 0x3e4   :  { %7363 = vmatpush1.bf16.msra.mxu0 %v8884_v31  ;;  %7527 = vmatpush1.bf16.msra.mxu1 %v8886_v34  ;;  %v8999_v31 = vcombine.high %v853_v28, %v861_v29  ;;  %v868_v34 = vld [vmem:[#allocation5 + $0x16b0] sm:$0xff] }
 0x3e5   :  { %7364 = vmatprep.subr.bf16.mxu0 %v8901_v36  ;;  %7528 = vmatprep.subr.bf16.mxu1 %v8903_v37  ;;  %v876_v36 = vld [vmem:[#allocation5 + $0x16f0] sm:$0xff]  ;;  %v869_v37 = vld [vmem:[#allocation5 + $0x16b8] sm:$0xff] }
 0x3e6   :  { %v9013_v55 = vcombine.high %v868_v34, %v876_v36  ;;  %v9012_v33 = vcombine.low %v868_v34, %v876_v36  ;;  %v9014_v41 = vcombine.low %v869_v37, %v877_v0  ;;  %v973_v34 = vld [vmem:[#allocation5 + $0x19f8] sm:$0xff] }
 0x3e8   :  { %7365 = vmatpush1.bf16.msra.mxu0 %v8900_v35  ;;  %7529 = vmatpush1.bf16.msra.mxu1 %v8902_v38  ;;  %v9015_v35 = vcombine.high %v869_v37, %v877_v0  ;;  %v884_v38 = vld [vmem:[#allocation5 + $0x1730] sm:$0xff] }
 0x3e9   :  { %7366 = vmatprep.subr.bf16.mxu0 %v8917_v56  ;;  %7530 = vmatprep.subr.bf16.mxu1 %v8919_v39  ;;  %v892_v56 = vld [vmem:[#allocation5 + $0x1770] sm:$0xff]  ;;  %v885_v39 = vld [vmem:[#allocation5 + $0x1738] sm:$0xff] }
 0x3ea   :  { %v9029_v50 = vcombine.high %v884_v38, %v892_v56  ;;  %v9028_v59 = vcombine.low %v884_v38, %v892_v56  ;;  %v9030_v24 = vcombine.low %v885_v39, %v893_v40  ;;  %v9843_v56 = vld [vmem:[#allocation9 + $0x8] sm:$0xff] }
 0x3ec   :  { %7367 = vmatpush1.bf16.msra.mxu0 %v8916_v51  ;;  %7531 = vmatpush1.bf16.msra.mxu1 %v8918_v53  ;;  %v9031_v51 = vcombine.high %v885_v39, %v893_v40  ;;  %v900_v53 = vld [vmem:[#allocation5 + $0x17b0] sm:$0xff] }
 0x3ed   :  { %7368 = vmatprep.subr.bf16.mxu0 %v8933_v17  ;;  %7532 = vmatprep.subr.bf16.mxu1 %v8935_v57  ;;  %v908_v17 = vld [vmem:[#allocation5 + $0x17f0] sm:$0xff]  ;;  %v901_v57 = vld [vmem:[#allocation5 + $0x17b8] sm:$0xff] }
 0x3ee   :  { %v9045_v10 = vcombine.high %v900_v53, %v908_v17  ;;  %v9044_v61 = vcombine.low %v900_v53, %v908_v17  ;;  %v9046_v5 = vcombine.low %v901_v57, %v909_v58  ;;  %v7890_v53 = vrot.slane %v9843_v56, %v9738_v32 }
 0x3ef   :  { %v7894_v17 = vrot.slane %v9843_v56, %v9741_v16 }
 0x3f0   :  { %7369 = vmatpush1.bf16.msra.mxu0 %v8932_v45  ;;  %7533 = vmatpush1.bf16.msra.mxu1 %v8934_v62  ;;  %v9047_v45 = vcombine.high %v901_v57, %v909_v58  ;;  %v916_v62 = vld [vmem:[#allocation5 + $0x1830] sm:$0xff]  ;;  %v997_v57 = vld [vmem:[#allocation5 + $0x1ab8] sm:$0xff] }
 0x3f1   :  { %7370 = vmatprep.subr.bf16.mxu0 %v8949_v63  ;;  %7534 = vmatprep.subr.bf16.mxu1 %v8951_v2  ;;  %v924_v63 = vld [vmem:[#allocation5 + $0x1870] sm:$0xff]  ;;  %v917_v2 = vld [vmem:[#allocation5 + $0x1838] sm:$0xff] }
 0x3f2   :  { %v9061_v6 = vcombine.high %v916_v62, %v924_v63  ;;  %v9060_v19 = vcombine.low %v916_v62, %v924_v63  ;;  %v9062_v52 = vcombine.low %v917_v2, %v925_v42  ;;  %v1005_v58 = vld [vmem:[#allocation5 + $0x1af8] sm:$0xff]  ;;  %v1012_v62 = vld [vmem:[#allocation5 + $0x1b30] sm:$0xff] }
 0x3f3   :  { %v1020_v63 = vld [vmem:[#allocation5 + $0x1b70] sm:$0xff] }
 0x3f4   :  { %7371 = vmatpush1.bf16.msra.mxu0 %v8948_v7  ;;  %7535 = vmatpush1.bf16.msra.mxu1 %v8950_v8  ;;  %v9063_v7 = vcombine.high %v917_v2, %v925_v42  ;;  %v932_v8 = vld [vmem:[#allocation5 + $0x18b0] sm:$0xff]  ;;  %v7946_v42 = vcombine.low %v7890_v53, %v7894_v17 }
 0x3f5   :  { %7372 = vmatprep.subr.bf16.mxu0 %v8965_v9  ;;  %7536 = vmatprep.subr.bf16.mxu1 %v8967_v12  ;;  %v940_v9 = vld [vmem:[#allocation5 + $0x18f0] sm:$0xff]  ;;  %v933_v12 = vld [vmem:[#allocation5 + $0x18b8] sm:$0xff] }
 0x3f6   :  { %v9077_v20 = vcombine.high %v932_v8, %v940_v9  ;;  %v9076_v25 = vcombine.low %v932_v8, %v940_v9  ;;  %v9078_v28 = vcombine.low %v933_v12, %v941_v14  ;;  %v9157_v8 = vcombine.high %v1012_v62, %v1020_v63 }
 0x3f8   :  { %7373 = vmatpush1.bf16.msra.mxu0 %v8964_v60  ;;  %7537 = vmatpush1.bf16.msra.mxu1 %v8966_v21  ;;  %v9079_v60 = vcombine.high %v933_v12, %v941_v14  ;;  %v948_v21 = vld [vmem:[#allocation5 + $0x1930] sm:$0xff] }
 0x3f9   :  { %7374 = vmatprep.subr.bf16.mxu0 %v8981_v22  ;;  %7538 = vmatprep.subr.bf16.mxu1 %v8983_v18  ;;  %v956_v22 = vld [vmem:[#allocation5 + $0x1970] sm:$0xff]  ;;  %v949_v18 = vld [vmem:[#allocation5 + $0x1938] sm:$0xff] }
 0x3fa   :  { %v9093_v29 = vcombine.high %v948_v21, %v956_v22  ;;  %v9092_v36 = vcombine.low %v948_v21, %v956_v22  ;;  %v1028_v14 = vld [vmem:[#allocation5 + $0x1bb0] sm:$0xff]  ;;  %v7960_v21 = vrot.slane %v7946_v42, %v9619_v54  ;;  %v1029_v22 = vld [vmem:[#allocation5 + $0x1bb8] sm:$0xff] }
 0x3fc   :  { %7375 = vmatpush1.bf16.msra.mxu0 %v8980_v4  ;;  %7539 = vmatpush1.bf16.msra.mxu1 %v8982_v26  ;;  %v9095_v4 = vcombine.high %v949_v18, %v957_v23  ;;  %v964_v26 = vld [vmem:[#allocation5 + $0x19b0] sm:$0xff] }
 0x3fd   :  { %7376 = vmatprep.subr.bf16.mxu0 %v8997_v30  ;;  %7540 = vmatprep.subr.bf16.mxu1 %v8999_v31  ;;  %v972_v30 = vld [vmem:[#allocation5 + $0x19f0] sm:$0xff]  ;;  %v965_v31 = vld [vmem:[#allocation5 + $0x19b8] sm:$0xff] }
 0x3fe   :  { %v9109_v37 = vcombine.high %v964_v26, %v972_v30  ;;  %v9111_v0 = vcombine.high %v965_v31, %v973_v34  ;;  %v9108_v38 = vcombine.low %v964_v26, %v972_v30  ;;  %v9110_v39 = vcombine.low %v965_v31, %v973_v34  ;;  %v9855_v26 = vld [vmem:[#allocation10 + $0x8] sm:$0xff] }
 0x400   :  { %7377 = vmatpush1.bf16.msra.mxu0 %v8996_v43  ;;  %7541 = vmatpush1.bf16.msra.mxu1 %v8998_v49  ;;  %v980_v43 = vld [vmem:[#allocation5 + $0x1a30] sm:$0xff] }
 0x401   :  { %7378 = vmatprep.subr.bf16.mxu0 %v9013_v55  ;;  %7542 = vmatprep.subr.bf16.mxu1 %v9015_v35  ;;  %v988_v49 = vld [vmem:[#allocation5 + $0x1a70] sm:$0xff]  ;;  %v981_v55 = vld [vmem:[#allocation5 + $0x1a38] sm:$0xff] }
 0x402   :  { %v989_v35 = vld [vmem:[#allocation5 + $0x1a78] sm:$0xff] }
 0x403   :  { %v9127_v40 = vcombine.high %v981_v55, %v989_v35 }
 0x404   :  { %7379 = vmatpush1.bf16.msra.mxu0 %v9012_v33  ;;  %7543 = vmatpush1.bf16.msra.mxu1 %v9014_v41  ;;  %v996_v33 = vld [vmem:[#allocation5 + $0x1ab0] sm:$0xff] }
 0x405   :  { %7380 = vmatprep.subr.bf16.mxu0 %v9029_v50  ;;  %7544 = vmatprep.subr.bf16.mxu1 %v9031_v51  ;;  %v1004_v41 = vld [vmem:[#allocation5 + $0x1af0] sm:$0xff]  ;;  %v7882_v50 = vrot.slane %v9843_v56, %v9732_v11  ;;  %v7886_v51 = vrot.slane %v9843_v56, %v9735_v15 }
 0x407   :  { %v7945_v2 = vcombine.low %v7882_v50, %v7886_v51  ;;  %v8042_v50 = vrot.slane %v9855_v26, %v9741_v16 }
 0x408   :  { %7381 = vmatpush1.bf16.msra.mxu0 %v9028_v59  ;;  %7545 = vmatpush1.bf16.msra.mxu1 %v9030_v24  ;;  %v9124_v59 = vcombine.low %v980_v43, %v988_v49  ;;  %v9126_v24 = vcombine.low %v981_v55, %v989_v35 }
 0x409   :  { %7382 = vmatprep.subr.bf16.mxu0 %v9045_v10  ;;  %7546 = vmatprep.subr.bf16.mxu1 %v9047_v45  ;;  %v9141_v10 = vcombine.high %v996_v33, %v1004_v41  ;;  %v9143_v45 = vcombine.high %v997_v57, %v1005_v58 }
 0x40c   :  { %7383 = vmatpush1.bf16.msra.mxu0 %v9044_v61  ;;  %7547 = vmatpush1.bf16.msra.mxu1 %v9046_v5  ;;  %v1013_v61 = vld [vmem:[#allocation5 + $0x1b38] sm:$0xff] }
 0x40d   :  { %7393 = vmatprep.subr.bf16.mxu0 %v9061_v6  ;;  %7557 = vmatprep.subr.bf16.mxu1 %v9063_v7  ;;  %v1021_v5 = vld [vmem:[#allocation5 + $0x1b78] sm:$0xff]  ;;  %v9140_v6 = vcombine.low %v996_v33, %v1004_v41  ;;  %v9142_v7 = vcombine.low %v997_v57, %v1005_v58  ;;  %v8034_v33 = vrot.slane %v9855_v26, %v9735_v15  ;;  %v1060_v58 = vld [vmem:[#allocation5 + $0x1cb0] sm:$0xff] }
 0x40e   :  { %v9159_v12 = vcombine.high %v1013_v61, %v1021_v5  ;;  %v9158_v34 = vcombine.low %v1013_v61, %v1021_v5  ;;  %v8038_v41 = vrot.slane %v9855_v26, %v9738_v32 }
 0x40f   :  { %7385 = vmatmul.mubr.bf16.vlgmr.msra.gmra.mrb[12].mxu0 %v9683_v3  ;;  %7549 = vmatmul.mubr.bf16.vlgmr.msra.gmra.mrb[12].mxu1 %v9683_v3  ;;  %v9094_v3 = vcombine.low %v949_v18, %v957_v23  ;;  %v1037_v18 = vld [vmem:[#allocation5 + $0x1bf8] sm:$0xff] }
 0x410   :  { %7394 = vmatpush1.bf16.msra.mxu0 %v9060_v19  ;;  %7558 = vmatpush1.bf16.msra.mxu1 %v9062_v52  ;;  %v1036_v19 = vld [vmem:[#allocation5 + $0x1bf0] sm:$0xff]  ;;  %v9174_v53 = vcombine.low %v1029_v22, %v1037_v18 }
 0x411   :  { %7395 = vmatprep.subr.bf16.mxu0 %v9077_v20  ;;  %7559 = vmatprep.subr.bf16.mxu1 %v9079_v60  ;;  %v7953_v60 = vrot.slane %v7945_v2, %v9619_v54 }
 0x412   :  { %7425 = vmatprep.mubr.bf16.mxu0 %v9685_v13  ;;  %7589 = vmatprep.mubr.bf16.mxu1 %v9685_v13  ;;  %v9125_v13 = vcombine.high %v980_v43, %v988_v49  ;;  %v1044_v43 = vld [vmem:[#allocation5 + $0x1c30] sm:$0xff] }
 0x413   :  { %v1052_v49 = vld [vmem:[#allocation5 + $0x1c70] sm:$0xff]  ;;  %v7961_v35 = vcombine.low %v7953_v60, %v7960_v21 }
 0x414   :  { %7396 = vmatpush1.bf16.msra.mxu0 %v9076_v25  ;;  %7560 = vmatpush1.bf16.msra.mxu1 %v9078_v28  ;;  %v9189_v17 = vcombine.high %v1044_v43, %v1052_v49  ;;  %v9188_v2 = vcombine.low %v1044_v43, %v1052_v49  ;;  %v1092_v21 = vld [vmem:[#allocation5 + $0x1db0] sm:$0xff] }
 0x415   :  { %7397 = vmatprep.subr.bf16.mxu0 %v9093_v29  ;;  %7561 = vmatprep.subr.bf16.mxu1 %v9095_v4  ;;  %v9156_v29 = vcombine.low %v1012_v62, %v1020_v63  ;;  %v8094_v63 = vcombine.low %v8038_v41, %v8042_v50  ;;  %v1133_v41 = vld [vmem:[#allocation5 + $0x1ef8] sm:$0xff] }
 0x418   :  { %7398 = vmatpush1.bf16.msra.mxu0 %v9092_v36  ;;  %7562 = vmatpush1.bf16.msra.mxu1 %v9094_v3  ;;  %v9173_v36 = vcombine.high %v1028_v14, %v1036_v19 }
 0x419   :  { %7399 = vmatprep.subr.bf16.mxu0 %v9109_v37  ;;  %7563 = vmatprep.subr.bf16.mxu1 %v9111_v0  ;;  %v9175_v0 = vcombine.high %v1029_v22, %v1037_v18  ;;  %v1100_v22 = vld [vmem:[#allocation5 + $0x1df0] sm:$0xff]  ;;  %v1093_v18 = vld [vmem:[#allocation5 + $0x1db8] sm:$0xff] }
 0x41a   :  { %v9236_v43 = vcombine.low %v1092_v21, %v1100_v22 }
 0x41c   :  { %7400 = vmatpush1.bf16.msra.mxu0 %v9108_v38  ;;  %7564 = vmatpush1.bf16.msra.mxu1 %v9110_v39  ;;  %v9172_v38 = vcombine.low %v1028_v14, %v1036_v19  ;;  %v1045_v39 = vld [vmem:[#allocation5 + $0x1c38] sm:$0xff]  ;;  %v8108_v14 = vrot.slane %v8094_v63, %v9619_v54 }
 0x41d   :  { %7401 = vmatprep.subr.bf16.mxu0 %v9125_v13  ;;  %7565 = vmatprep.subr.bf16.mxu1 %v9127_v40  ;;  %v1053_v13 = vld [vmem:[#allocation5 + $0x1c78] sm:$0xff]  ;;  %v8030_v40 = vrot.slane %v9855_v26, %v9732_v11 }
 0x41e   :  { %v9191_v57 = vcombine.high %v1045_v39, %v1053_v13  ;;  %v9190_v42 = vcombine.low %v1045_v39, %v1053_v13  ;;  %v1132_v39 = vld [vmem:[#allocation5 + $0x1ef0] sm:$0xff] }
 0x41f   :  { %v8093_v62 = vcombine.low %v8030_v40, %v8034_v33  ;;  %v1125_v33 = vld [vmem:[#allocation5 + $0x1eb8] sm:$0xff] }
 0x420   :  { %7402 = vmatpush1.bf16.msra.mxu0 %v9124_v59  ;;  %7566 = vmatpush1.bf16.msra.mxu1 %v9126_v24  ;;  %v1068_v59 = vld [vmem:[#allocation5 + $0x1cf0] sm:$0xff] }
 0x421   :  { %7403 = vmatprep.subr.bf16.mxu0 %v9141_v10  ;;  %7567 = vmatprep.subr.bf16.mxu1 %v9143_v45  ;;  %v1061_v10 = vld [vmem:[#allocation5 + $0x1cb8] sm:$0xff]  ;;  %v9205_v61 = vcombine.high %v1060_v58, %v1068_v59  ;;  %v9204_v19 = vcombine.low %v1060_v58, %v1068_v59 }
 0x422   :  { %v7099_v9 = vpop.f32.mrb[8].mxu0  ;;  %v7263_v52 = vpop.f32.mrb[8].mxu1  ;;  %v1069_v45 = vld [vmem:[#allocation5 + $0x1cf8] sm:$0xff] }
 0x423   :  { %v7101_v20 = vpop.f32.mrb[9].mxu0  ;;  %v7265_v25 = vpop.f32.mrb[9].mxu1  ;;  %v9207_v5 = vcombine.high %v1061_v10, %v1069_v45 }
 0x424   :  { %v7648_v23 = vcombine.low %v7099_v9, %v7101_v20  ;;  %v7103_v28 = vpop.f32.mrb[10].mxu0  ;;  %7404 = vmatpush1.bf16.msra.mxu0 %v9140_v6  ;;  %v7649_v4 = vcombine.low %v7263_v52, %v7265_v25  ;;  %v7267_v30 = vpop.f32.mrb[10].mxu1  ;;  %7568 = vmatpush1.bf16.msra.mxu1 %v9142_v7  ;;  %v1076_v6 = vld [vmem:[#allocation5 + $0x1d30] sm:$0xff]  ;;  %v1085_v9 = vld [vmem:[#allocation5 + $0x1d78] sm:$0xff]  ;;  %v9206_v52 = vcombine.low %v1061_v10, %v1069_v45 }
 0x425   :  { %v7104_v31 = vpop.f32.mrb[11].mxu0  ;;  %7405 = vmatprep.subr.bf16.mxu0 %v9157_v8  ;;  %v7268_v37 = vpop.f32.mrb[11].mxu1  ;;  %7569 = vmatprep.subr.bf16.mxu1 %v9159_v12  ;;  %v1084_v7 = vld [vmem:[#allocation5 + $0x1d70] sm:$0xff]  ;;  %v1077_v8 = vld [vmem:[#allocation5 + $0x1d38] sm:$0xff]  ;;  %v8101_v12 = vrot.slane %v8093_v62, %v9619_v54 }
 0x426   :  { %v7656_v3 = vrot.slane %v7648_v23, %v9619_v54  ;;  %v7663_v55 = vrot.slane %v7649_v4, %v9619_v54  ;;  %v9221_v20 = vcombine.high %v1076_v6, %v1084_v7  ;;  %v9223_v60 = vcombine.high %v1077_v8, %v1085_v9  ;;  %v1101_v23 = vld [vmem:[#allocation5 + $0x1df8] sm:$0xff]  ;;  %v1108_v31 = vld [vmem:[#allocation5 + $0x1e30] sm:$0xff] }
 0x427   :  { %v8109_v25 = vcombine.low %v8101_v12, %v8108_v14  ;;  %v9220_v28 = vcombine.low %v1076_v6, %v1084_v7  ;;  %v9237_v4 = vcombine.high %v1092_v21, %v1100_v22  ;;  %v9239_v30 = vcombine.high %v1093_v18, %v1101_v23  ;;  %v1117_v37 = vld [vmem:[#allocation5 + $0x1e78] sm:$0xff]  ;;  %v1140_v10 = vld [vmem:[#allocation5 + $0x1f30] sm:$0xff] }
 0x428   :  { %7406 = vmatpush1.bf16.msra.mxu0 %v9156_v29  ;;  %v7664_v51 = vcombine.low %v7656_v3, %v7663_v55  ;;  %7570 = vmatpush1.bf16.msra.mxu1 %v9158_v34  ;;  %v9222_v29 = vcombine.low %v1077_v8, %v1085_v9  ;;  %v1116_v34 = vld [vmem:[#allocation5 + $0x1e70] sm:$0xff]  ;;  %v1109_v3 = vld [vmem:[#allocation5 + $0x1e38] sm:$0xff]  ;;  %v9238_v49 = vcombine.low %v1093_v18, %v1101_v23 }
 0x429   :  { %7407 = vmatprep.subr.bf16.mxu0 %v9173_v36  ;;  %7571 = vmatprep.subr.bf16.mxu1 %v9175_v0  ;;  %v9253_v55 = vcombine.high %v1108_v31, %v1116_v34  ;;  %v9252_v50 = vcombine.low %v1108_v31, %v1116_v34  ;;  %v1148_v45 = vld [vmem:[#allocation5 + $0x1f70] sm:$0xff]  ;;  %v9270_v7 = vcombine.low %v1125_v33, %v1133_v41 }
 0x42a   :  { %v7985_v24 = vadd.f32 %v7961_v35, %v7664_v51  ;;  %v9255_v35 = vcombine.high %v1109_v3, %v1117_v37  ;;  %v9285_v8 = vcombine.high %v1140_v10, %v1148_v45  ;;  %v1156_v12 = vld [vmem:[#allocation5 + $0x1fb0] sm:$0xff]  ;;  %v9284_v21 = vcombine.low %v1140_v10, %v1148_v45 }
 0x42b   :  { %v1164_v14 = vld [vmem:[#allocation5 + $0x1ff0] sm:$0xff] }
 0x42c   :  { %7408 = vmatpush1.bf16.msra.mxu0 %v9172_v38  ;;  %9415 = vtanh.f32 %v7985_v24  ;;  %7572 = vmatpush1.bf16.msra.mxu1 %v9174_v53  ;;  %v1124_v38 = vld [vmem:[#allocation5 + $0x1eb0] sm:$0xff]  ;;  %v9271_v24 = vcombine.high %v1125_v33, %v1133_v41  ;;  %v9301_v18 = vcombine.high %v1156_v12, %v1164_v14 }
 0x42d   :  { %7409 = vmatprep.subr.bf16.mxu0 %v9189_v17  ;;  %7573 = vmatprep.subr.bf16.mxu1 %v9191_v57  ;;  %v9254_v57 = vcombine.low %v1109_v3, %v1117_v37  ;;  %v9269_v58 = vcombine.high %v1124_v38, %v1132_v39 }
 0x430   :  { %7410 = vmatpush1.bf16.msra.mxu0 %v9188_v2  ;;  %7574 = vmatpush1.bf16.msra.mxu1 %v9190_v42  ;;  %v1141_v2 = vld [vmem:[#allocation5 + $0x1f38] sm:$0xff] }
 0x431   :  { %7411 = vmatprep.subr.bf16.mxu0 %v9205_v61  ;;  %7575 = vmatprep.subr.bf16.mxu1 %v9207_v5  ;;  %v1149_v42 = vld [vmem:[#allocation5 + $0x1f78] sm:$0xff]  ;;  %v9268_v5 = vcombine.low %v1124_v38, %v1132_v39 }
 0x432   :  { %v9286_v22 = vcombine.low %v1141_v2, %v1149_v42 }
 0x434   :  { %7412 = vmatpush1.bf16.msra.mxu0 %v9204_v19  ;;  %7576 = vmatpush1.bf16.msra.mxu1 %v9206_v52  ;;  %v1157_v52 = vld [vmem:[#allocation5 + $0x1fb8] sm:$0xff] }
 0x435   :  { %7413 = vmatprep.subr.bf16.mxu0 %v9221_v20  ;;  %7577 = vmatprep.subr.bf16.mxu1 %v9223_v60  ;;  %v1165_v20 = vld [vmem:[#allocation5 + $0x1ff8] sm:$0xff] }
 0x436   :  { %v9416_v36 = vpop.eup %9415  ;;  %v9303_v23 = vcombine.high %v1157_v52, %v1165_v20 }
 0x437   :  { %v8133_v0 = vmul.f32 %v9416_v36, %v8109_v25  ;;  %v9300_v25 = vcombine.low %v1156_v12, %v1164_v14 }
 0x438   :  { %7414 = vmatpush1.bf16.msra.mxu0 %v9220_v28  ;;  %7578 = vmatpush1.bf16.msra.mxu1 %v9222_v29  ;;  %v9302_v28 = vcombine.low %v1157_v52, %v1165_v20  ;;  %v7699_v29 = vld [vmem:[#allocation7] sm:$0xff]  ;;  %v9522_v52 = vmov 0.0   ;;  %v7898_v20 = vrot.slane %v9843_v56, %v9773_v44 }
 0x439   :  { %7415 = vmatprep.subr.bf16.mxu0 %v9237_v4  ;;  %7579 = vmatprep.subr.bf16.mxu1 %v9239_v30  ;;  %v8173_v13 = vcombine.high %v8133_v0, %v8133_v0  ;;  %v8180_v40 = vrot.slane %v8133_v0, %v9619_v54  ;;  %v7704_v4 = vrot.slane %v7699_v29, %v9732_v11 }
 0x43a   :  { %v7708_v30 = vrot.slane %v7699_v29, %v9735_v15  ;;  %v7712_v31 = vrot.slane %v7699_v29, %v9738_v32  ;;  %v7716_v34 = vrot.slane %v7699_v29, %v9741_v16  ;;  %v7732_v11 = vrot.slane %v7699_v29, %v9782_v48  ;;  %v9419_v15 = vld [vmem:[%s9945_s0] sm:$0xff]  ;;  %83 = vst.msk [vmem:[#allocation3] sm:$0x3] %vm82_vm1, %v9522_v52 }
 0x43b   :  { %v8187_v51 = vrot.slane %v8173_v13, %v9619_v54  ;;  %v8188_v53 = vcombine.high %v8180_v40, %v8180_v40  ;;  %v8239_v17 = vsel %vm7815_vm0, %v8180_v40, 0.0 }
 0x43c   :  { %7416 = vmatpush1.bf16.msra.mxu0 %v9236_v43  ;;  %7580 = vmatpush1.bf16.msra.mxu1 %v9238_v49  ;;  %v8240_v59 = vadd.f32 %v8239_v17, %v9825_v1  ;;  %v9287_v1 = vcombine.high %v1141_v2, %v1149_v42  ;;  %v7733_v36 = vcombine.low %v7704_v4, %v7708_v30  ;;  %v9420_v17 = vld [vmem:[%s9945_s0 + $0x8] sm:$0xff] }
 0x43d   :  { %7417 = vmatprep.subr.bf16.mxu0 %v9253_v55  ;;  %7581 = vmatprep.subr.bf16.mxu1 %v9255_v35  ;;  %v8189_v62 = vcombine.high %v8187_v51, %v8187_v51  ;;  %v8241_v63 = vsel %vm7815_vm0, %v8188_v53, 0.0  ;;  %v8243_v6 = vsel %vm7815_vm0, %v8187_v51, 0.0  ;;  %v7734_v3 = vcombine.low %v7712_v31, %v7716_v34 }
 0x43e   :  { %v8242_v61 = vadd.f32 %v8241_v63, %v8240_v59  ;;  %v7741_v37 = vrot.slane %v7733_v36, %v9619_v54  ;;  %v7720_v49 = vrot.slane %v7699_v29, %v9773_v44  ;;  %v7728_v55 = vrot.slane %v7699_v29, %v9779_v47 }
 0x43f   :  { %v8245_v19 = vsel %vm7815_vm0, %v8189_v62, 0.0  ;;  %v7748_v0 = vrot.slane %v7734_v3, %v9619_v54 }
 0x440   :  { %7418 = vmatpush1.bf16.msra.mxu0 %v9252_v50  ;;  %7582 = vmatpush1.bf16.msra.mxu1 %v9254_v57  ;;  %v8244_v9 = vadd.f32 %v8243_v6, %v8242_v61  ;;  %v7751_v35 = vcombine.low %v7728_v55, %v7732_v11  ;;  %v8046_v11 = vrot.slane %v9855_v26, %v9773_v44 }
 0x441   :  { %7419 = vmatprep.subr.bf16.mxu0 %v9269_v58  ;;  %7583 = vmatprep.subr.bf16.mxu1 %v9271_v24  ;;  %v7749_v43 = vcombine.low %v7741_v37, %v7748_v0 }
 0x442   :  { %v9876_v60 = vadd.f32 %v8245_v19, %v8244_v9  ;;  %v7765_v13 = vrot.slane %v7751_v35, %v9619_v54 }
 0x443   :  { %v7769_v32 = vmul.f32 %v9419_v15, %v7749_v43  ;;  %v8050_v15 = vrot.slane %v9855_v26, %v9776_v46 }
 0x444   :  { %7420 = vmatpush1.bf16.msra.mxu0 %v9268_v5  ;;  %7584 = vmatpush1.bf16.msra.mxu1 %v9270_v7 }
 0x445   :  { %7421 = vmatprep.subr.bf16.mxu0 %v9285_v8  ;;  %7585 = vmatprep.subr.bf16.mxu1 %v9287_v1  ;;  %v7780_v38 = vrot.slane %v7769_v32, %v9619_v54  ;;  %v7773_v40 = vcombine.high %v7769_v32, %v7769_v32  ;;  %v8054_v32 = vrot.slane %v9855_v26, %v9779_v47 }
 0x447   :  { %v7788_v33 = vcombine.high %v7780_v38, %v7780_v38  ;;  %v7787_v50 = vrot.slane %v7773_v40, %v9619_v54  ;;  %v7816_v51 = vsel %vm7815_vm0, %v7780_v38, 0.0 }
 0x448   :  { %7422 = vmatpush1.bf16.msra.mxu0 %v9284_v21  ;;  %7586 = vmatpush1.bf16.msra.mxu1 %v9286_v22  ;;  %v7902_v21 = vrot.slane %v9843_v56, %v9776_v46  ;;  %v7906_v22 = vrot.slane %v9843_v56, %v9779_v47 }
 0x449   :  { %7423 = vmatprep.subr.bf16.mxu0 %v9301_v18  ;;  %7587 = vmatprep.subr.bf16.mxu1 %v9303_v23  ;;  %v7817_v53 = vsel %vm7815_vm0, %v7788_v33, 0.0  ;;  %v7789_v58 = vcombine.high %v7787_v50, %v7787_v50  ;;  %v7819_v24 = vsel %vm7815_vm0, %v7787_v50, 0.0  ;;  %v7910_v18 = vrot.slane %v9843_v56, %v9782_v48 }
 0x44a   :  { %v7818_v59 = vadd.f32 %v7817_v53, %v7816_v51  ;;  %v7962_v23 = vcombine.low %v7898_v20, %v7902_v21 }
 0x44b   :  { %v7821_v63 = vsel %vm7815_vm0, %v7789_v58, 0.0 }
 0x44c   :  { %7424 = vmatpush1.bf16.msra.mxu0 %v9300_v25  ;;  %7588 = vmatpush1.bf16.msra.mxu1 %v9302_v28  ;;  %v7820_v62 = vadd.f32 %v7819_v24, %v7818_v59  ;;  %v7963_v25 = vcombine.low %v7906_v22, %v7910_v18  ;;  %v7970_v30 = vrot.slane %v7962_v23, %v9619_v54 }
 0x44e   :  { %v7822_v61 = vadd.f32 %v7821_v63, %v7820_v62  ;;  %v7977_v31 = vrot.slane %v7963_v25, %v9619_v54  ;;  %v7698_v62 = vld [vmem:[#allocation3] sm:$0x3] }
 0x44f   :  { %7426 = vmatmul.mubr.bf16.vlgmr.msra.gmra.mrb[12].mxu0 %v9693_v27  ;;  %7590 = vmatmul.mubr.bf16.vlgmr.msra.gmra.mrb[12].mxu1 %v9693_v27  ;;  %v7724_v27 = vrot.slane %v7699_v29, %v9776_v46 }
 0x450   :  { %v7978_v55 = vcombine.low %v7970_v30, %v7977_v31 }
 0x451   :  { %v7750_v16 = vcombine.low %v7720_v49, %v7724_v27 }
 0x453   :  { %v7758_v39 = vrot.slane %v7750_v16, %v9619_v54  ;;  %v8058_v16 = vrot.slane %v9855_v26, %v9782_v48 }
 0x455   :  { %v7766_v41 = vcombine.low %v7758_v39, %v7765_v13  ;;  %v8110_v39 = vcombine.low %v8046_v11, %v8050_v15  ;;  %v8111_v13 = vcombine.low %v8054_v32, %v8058_v16 }
 0x457   :  { %v7770_v57 = vmul.f32 %v9420_v17, %v7766_v41  ;;  %v8118_v40 = vrot.slane %v8110_v39, %v9619_v54  ;;  %v8125_v33 = vrot.slane %v8111_v13, %v9619_v54 }
 0x459   :  { %v7790_v10 = vcombine.high %v7770_v57, %v7770_v57  ;;  %v7797_v45 = vrot.slane %v7770_v57, %v9619_v54  ;;  %v8126_v41 = vcombine.low %v8118_v40, %v8125_v33 }
 0x45b   :  { %v7804_v2 = vrot.slane %v7790_v10, %v9619_v54  ;;  %v7805_v42 = vcombine.high %v7797_v45, %v7797_v45  ;;  %v7823_v5 = vsel %vm7815_vm0, %v7797_v45, 0.0 }
 0x45c   :  { %v7824_v7 = vadd.f32 %v7823_v5, %v7822_v61 }
 0x45d   :  { %v7806_v6 = vcombine.high %v7804_v2, %v7804_v2  ;;  %v7825_v8 = vsel %vm7815_vm0, %v7805_v42, 0.0  ;;  %v7827_v9 = vsel %vm7815_vm0, %v7804_v2, 0.0 }
 0x45e   :  { %v7826_v1 = vadd.f32 %v7825_v8, %v7824_v7 }
 0x45f   :  { %v7829_v12 = vsel %vm7815_vm0, %v7806_v6, 0.0 }
 0x460   :  { %v7828_v14 = vadd.f32 %v7827_v9, %v7826_v1 }
 0x462   :  { %v7830_v19 = vadd.f32 %v7829_v12, %v7828_v14 }
 0x464   :  { %7831 = vadd.xlane.f32.xlu0 %v7830_v19 }
 0x4f1   :  { %v7832_v63 = vpop.xlane.xlu0 %7831 }
 0x4f2   :  { %v7833_v2 = vadd.f32 %v7832_v63, %v7698_v62 }
 0x4f4   :  { %7835 = vst.msk [vmem:[#allocation3] sm:$0x3] %vm82_vm1, %v7833_v2 }
 0x4fb   :  { %v8257_v42 = vld [vmem:[#allocation3] sm:$0x3] }
 0x522   :  { %v7427_v28 = vpop.f32.mrb[12].mxu0  ;;  %v7591_v29 = vpop.f32.mrb[12].mxu1 }
 0x523   :  { %v7429_v4 = vpop.f32.mrb[13].mxu0  ;;  %v7593_v36 = vpop.f32.mrb[13].mxu1 }
 0x524   :  { %v7665_v34 = vcombine.low %v7427_v28, %v7429_v4  ;;  %v7431_v3 = vpop.f32.mrb[14].mxu0  ;;  %v7666_v37 = vcombine.low %v7591_v29, %v7593_v36  ;;  %v7595_v0 = vpop.f32.mrb[14].mxu1 }
 0x525   :  { %v7432_v43 = vpop.f32.mrb[15].mxu0  ;;  %v7596_v27 = vpop.f32.mrb[15].mxu1 }
 0x526   :  { %v7673_v49 = vrot.slane %v7665_v34, %v9619_v54  ;;  %v7680_v56 = vrot.slane %v7666_v37, %v9619_v54 }
 0x528   :  { %v7681_v35 = vcombine.low %v7673_v49, %v7680_v56 }
 0x52a   :  { %v7986_v38 = vadd.f32 %v7978_v55, %v7681_v35 }
 0x52c   :  { %9417 = vtanh.f32 %v7986_v38 }
 0x536   :  { %v9418_v44 = vpop.eup %9417 }
 0x537   :  { %v8134_v50 = vmul.f32 %v9418_v44, %v8126_v41 }
 0x539   :  { %v8190_v51 = vcombine.high %v8134_v50, %v8134_v50  ;;  %v8197_v46 = vrot.slane %v8134_v50, %v9619_v54 }
 0x53b   :  { %v8204_v47 = vrot.slane %v8190_v51, %v9619_v54  ;;  %v8205_v53 = vcombine.high %v8197_v46, %v8197_v46  ;;  %v8247_v48 = vsel %vm7815_vm0, %v8197_v46, 0.0  ;;  %v9304_v54 = vld [vmem:[#allocation4] ss:$0 sm:$0xff] }
 0x53c   :  { %v8248_v26 = vadd.f32 %v8247_v48, %v9876_v60  ;;  %v8265_v61 = vadd.f32 %v9304_v54, %v8257_v42 }
 0x53d   :  { %v8206_v17 = vcombine.high %v8204_v47, %v8204_v47  ;;  %v8249_v57 = vsel %vm7815_vm0, %v8205_v53, 0.0  ;;  %v8251_v59 = vsel %vm7815_vm0, %v8204_v47, 0.0 }
 0x53e   :  { %v8250_v58 = vadd.f32 %v8249_v57, %v8248_v26 }
 0x53f   :  { %v8253_v10 = vsel %vm7815_vm0, %v8206_v17, 0.0 }
 0x540   :  { %v8252_v24 = vadd.f32 %v8251_v59, %v8250_v58 }
 0x542   :  { %v8254_v45 = vadd.f32 %v8253_v10, %v8252_v24 }
 0x544   :  { %8255 = vadd.xlane.f32.xlu0 %v8254_v45 }
 0x5d1   :  { %v8256_v60 = vpop.xlane.xlu0 %8255 }
 0x5d2   :  { %v8270_v5 = vadd.f32 %v8265_v61, %v8256_v60 }
 0x5d4   :  { %8272 = vst.msk [vmem:[%s9951_s6] sm:$0x3] %vm82_vm1, %v8270_v5 }
 0x5d5   :  { %8277 = vsyncpa [#allocation6], 1 }
 0x5d6   :  { %8278 = vsyncpa [#allocation8], 1 }
 0x5d7   :  { %8279 = vsyncpa [#allocation11], 1 }

</bundles_post_ra>
